<compile_context>
chip_gen: v7x
topology: tpu7x:2x2x1
jax: 0.10.0
libtpu: 0.0.40
codegen_flags: <defaults>
</compile_context>

<pallas_src>
import functools

import numpy as np
import jax
import jax.numpy as jnp
from jax.experimental import pallas as pl
from jax.experimental.pallas import tpu as pltpu


# ----------------------------- Pallas kernel ------------------------------ #
def _gemm_bias_act_kernel(w_ref, x_ref, b_ref, o_ref, *, activation):
    # w_ref: (OC, K) bf16   x_ref: (K, M) bf16   b_ref: (OC, 1) f32
    # o_ref: (OC, M) f32.   M = OH*OW is the lane axis -> lane-dense stores.
    acc = jnp.dot(w_ref[...], x_ref[...], preferred_element_type=jnp.float32)
    acc = acc + b_ref[...]
    if activation == "relu":
        acc = jnp.maximum(acc, 0.0)
    elif activation == "sigmoid":
        # exp + approximate reciprocal both run on the EUP slot.
        acc = pl.reciprocal(1.0 + jnp.exp(-acc), approx=True)
    o_ref[...] = acc


def gemm_bias_act(w_mat, cols, bias, activation):
    """w_mat: (OC, K), cols: (N, K, M), bias: (OC,) -> (N, OC, M) float32."""
    oc, k = w_mat.shape
    n, _, m = cols.shape
    w_bf = w_mat.astype(jnp.bfloat16)          # bf16 MXU inputs, f32 accumulate
    cols_bf = cols.astype(jnp.bfloat16)
    bias_col = bias.astype(jnp.float32).reshape(oc, 1)
    return pl.pallas_call(
        functools.partial(_gemm_bias_act_kernel, activation=activation),
        out_shape=jax.ShapeDtypeStruct((n, oc, m), jnp.float32),
        grid=(n,),                              # one step per batch sample
        in_specs=[
            pl.BlockSpec((oc, k), lambda i: (0, 0)),          # weights resident
            pl.BlockSpec((None, k, m), lambda i: (i, 0, 0)),  # sample's im2col
            pl.BlockSpec((oc, 1), lambda i: (0, 0)),          # bias column
        ],
        out_specs=pl.BlockSpec((None, oc, m), lambda i: (i, 0, 0)),
        compiler_params=pltpu.CompilerParams(
            dimension_semantics=("parallel",)),
    )(w_bf, cols_bf, bias_col)


# ------------------------------ conv plumbing ----------------------------- #
def _im2col(x, kh, kw, stride):
    """x: (N, C, H, W), already spatially padded.
    Returns (N, C*kh*kw, OH*OW) directly in the GEMM's (K, M) layout
    (K ordered (c, ky, kx), matching weight.reshape(OC, -1)), plus OH, OW."""
    n, c, h, w = x.shape
    oh = (h - kh) // stride + 1
    ow = (w - kw) // stride + 1
    patches = []
    for i in range(kh):
        for j in range(kw):
            patches.append(
                x[:, :, i:i + stride * oh:stride, j:j + stride * ow:stride])
    cols = jnp.stack(patches, axis=2)              # (N, C, kh*kw, OH, OW)
    return cols.reshape(n, c * kh * kw, oh * ow), oh, ow
    # TODO(synk): gather patches in-kernel from a VMEM-resident padded input
    # instead of materializing the im2col matrix in HBM.


def _conv_gemm(xp, w_mat, bias, kh, kw, stride, activation):
    """Padded NCHW input + (OC, K) weight matrix -> NCHW output via Pallas."""
    n = xp.shape[0]
    oc = w_mat.shape[0]
    cols, oh, ow = _im2col(xp, kh, kw, stride)
    out = gemm_bias_act(w_mat, cols, bias, activation)   # (N, OC, OH*OW)
    return out.reshape(n, oc, oh, ow)


def conv2d(x, w, b, *, stride=1, padding=0, activation="none"):
    """x: (N,C,H,W), w: (OC,C,k,k), b: (OC,). Regular conv via Pallas GEMM."""
    oc, _, k, _ = w.shape
    xp = jnp.pad(x, ((0, 0), (0, 0), (padding, padding), (padding, padding)))
    return _conv_gemm(xp, w.reshape(oc, -1), b, k, k, stride, activation)


def conv_transpose2d(x, w, b, *, stride=1, padding=0, output_padding=0,
                     activation="none"):
    """PyTorch ConvTranspose2d. w: (IC, OC, k, k).

    stride == 1  -> regular conv on the padded input with flipped weights.
    stride  > 1  -> sub-pixel (phase) decomposition: each output phase
                    (py, px) in [0,s)^2 is a small conv on the *undilated*
                    input; all s^2 phases are fused into one GEMM with
                    s^2*OC output rows, followed by a pixel shuffle."""
    n, c, h, wd = x.shape
    ic, oc, k, _ = w.shape
    s = stride
    oh = (h - 1) * s - 2 * padding + k + output_padding
    ow = (wd - 1) * s - 2 * padding + k + output_padding

    if s == 1:
        lo = k - 1 - padding
        hi = k - 1 - padding + output_padding
        xp = jnp.pad(x, ((0, 0), (0, 0), (lo, hi), (lo, hi)))
        w_conv = jnp.flip(w, axis=(2, 3)).transpose(1, 0, 2, 3)   # (OC, IC, k, k)
        return _conv_gemm(xp, w_conv.reshape(oc, -1), b, k, k, 1, activation)

    # ---- stride > 1: phase decomposition ----
    # For output phase p along one axis, valid taps are {ky : (p+pad-ky)%s==0};
    # tap ky reads the undilated input at offset dy = (p + pad - ky)//s.
    taps = []
    for p in range(s):
        taps.append([(ky, (p + padding - ky) // s) for ky in range(k)
                     if (p + padding - ky) % s == 0])
    offs = [d for t in taps for (_, d) in t]
    dmin, dmax = min(offs), max(offs)
    win = dmax - dmin + 1
    q_h, q_w = oh // s, ow // s
    lo = -dmin
    hi_h = (q_h - 1) + dmax - (h - 1)
    hi_w = (q_w - 1) + dmax - (wd - 1)
    use_phase = (oh % s == 0 and ow % s == 0 and lo >= 0
                 and hi_h >= 0 and hi_w >= 0)

    if not use_phase:
        # Fallback: zero-dilated-input lowering (exact, but 75% wasted taps).
        xd = jnp.zeros((n, c, (h - 1) * s + 1, (wd - 1) * s + 1), x.dtype)
        xd = xd.at[:, :, ::s, ::s].set(x)
        plo = k - 1 - padding
        phi = k - 1 - padding + output_padding
        xp = jnp.pad(xd, ((0, 0), (0, 0), (plo, phi), (plo, phi)))
        w_conv = jnp.flip(w, axis=(2, 3)).transpose(1, 0, 2, 3)
        return _conv_gemm(xp, w_conv.reshape(oc, -1), b, k, k, 1, activation)

    xp = jnp.pad(x, ((0, 0), (0, 0), (lo, hi_h), (lo, hi_w)))
    # Assemble the fused (s*s*OC, C, win, win) weight: row block ph = py*s+px
    # holds phase (py, px)'s sub-filter, zero elsewhere.
    w_big = jnp.zeros((s * s * oc, c, win, win), w.dtype)
    for py in range(s):
        for px in range(s):
            ph = py * s + px
            for (ky, dy) in taps[py]:
                for (kx, dx) in taps[px]:
                    w_big = w_big.at[ph * oc:(ph + 1) * oc, :,
                                     dy - dmin, dx - dmin].set(w[:, :, ky, kx].T)
    y = _conv_gemm(xp, w_big.reshape(s * s * oc, -1), jnp.tile(b, s * s),
                   win, win, 1, activation)          # (N, s*s*OC, q_h, q_w)
    # Pixel shuffle: out[n, oc, s*qy+py, s*qx+px] = y[n, (py*s+px)*OC+oc, qy, qx]
    y = y.reshape(n, s, s, oc, q_h, q_w)
    y = y.transpose(0, 3, 4, 1, 5, 2).reshape(n, oc, oh, ow)
    return y


# --------------------------------- model ---------------------------------- #
def init_params(key):
    def conv_init(key, oc, ic, k):
        k1, k2 = jax.random.split(key)
        bound = 1.0 / np.sqrt(ic * k * k)
        w = jax.random.uniform(k1, (oc, ic, k, k), jnp.float32, -bound, bound)
        b = jax.random.uniform(k2, (oc,), jnp.float32, -bound, bound)
        return w, b

    def convT_init(key, ic, oc, k):
        k1, k2 = jax.random.split(key)
        bound = 1.0 / np.sqrt(oc * k * k)
        w = jax.random.uniform(k1, (ic, oc, k, k), jnp.float32, -bound, bound)
        b = jax.random.uniform(k2, (oc,), jnp.float32, -bound, bound)
        return w, b

    keys = jax.random.split(key, 6)
    return {
        "enc1": conv_init(keys[0], 16, 3, 3),
        "enc2": conv_init(keys[1], 32, 16, 3),
        "enc3": conv_init(keys[2], 64, 32, 7),
        "dec1": convT_init(keys[3], 64, 32, 7),
        "dec2": convT_init(keys[4], 32, 16, 3),
        "dec3": convT_init(keys[5], 16, 3, 3),
    }


def autoencoder_forward(params, x):
    w, b = params["enc1"]; x = conv2d(x, w, b, stride=2, padding=1, activation="relu")
    w, b = params["enc2"]; x = conv2d(x, w, b, stride=2, padding=1, activation="relu")
    w, b = params["enc3"]; x = conv2d(x, w, b, stride=1, padding=0, activation="none")
    w, b = params["dec1"]; x = conv_transpose2d(x, w, b, stride=1, padding=0,
                                                output_padding=0, activation="relu")
    w, b = params["dec2"]; x = conv_transpose2d(x, w, b, stride=2, padding=1,
                                                output_padding=1, activation="relu")
    w, b = params["dec3"]; x = conv_transpose2d(x, w, b, stride=2, padding=1,
                                                output_padding=1, activation="sigmoid")
    return x


# ------------------------- pure-JAX reference check ------------------------ #
def _ref_forward(params, x, *, bf16_inputs):
    """lax.conv reference. bf16_inputs=True matches the kernel's MXU precision
    (bf16 operands, f32 accumulation); False is the full-f32 PyTorch-equivalent."""
    dn = ("NCHW", "OIHW", "NCHW")
    cdt = jnp.bfloat16 if bf16_inputs else jnp.float32
    prec = jax.lax.Precision.DEFAULT if bf16_inputs else jax.lax.Precision.HIGHEST

    def conv(x, w, b, stride, padding):
        y = jax.lax.conv_general_dilated(
            x.astype(cdt), w.astype(cdt), (stride, stride),
            [(padding, padding)] * 2, dimension_numbers=dn, precision=prec,
            preferred_element_type=jnp.float32)
        return y + b[None, :, None, None]

    def convT(x, w, b, stride, padding, output_padding):
        k = w.shape[2]
        w_conv = jnp.flip(w, (2, 3)).transpose(1, 0, 2, 3)
        pad = (k - 1 - padding, k - 1 - padding + output_padding)
        y = jax.lax.conv_general_dilated(
            x.astype(cdt), w_conv.astype(cdt), (1, 1), [pad, pad],
            lhs_dilation=(stride, stride), dimension_numbers=dn, precision=prec,
            preferred_element_type=jnp.float32)
        return y + b[None, :, None, None]

    w, b = params["enc1"]; x = jax.nn.relu(conv(x, w, b, 2, 1))
    w, b = params["enc2"]; x = jax.nn.relu(conv(x, w, b, 2, 1))
    w, b = params["enc3"]; x = conv(x, w, b, 1, 0)
    w, b = params["dec1"]; x = jax.nn.relu(convT(x, w, b, 1, 0, 0))
    w, b = params["dec2"]; x = jax.nn.relu(convT(x, w, b, 2, 1, 1))
    w, b = params["dec3"]; x = jax.nn.sigmoid(convT(x, w, b, 2, 1, 1))
    return x


if __name__ == "__main__":
    key = jax.random.PRNGKey(0)
    pkey, xkey = jax.random.split(key)
    params = init_params(pkey)
    # 28x28 spatial: two stride-2 convs -> 7x7, 7x7 bottleneck conv -> 1x1,
    # decoder round-trips back to 28x28.
    x = jax.random.uniform(xkey, (2, 3, 28, 28), dtype=jnp.float32)

    y = jax.jit(autoencoder_forward)(params, x)
    y = jax.block_until_ready(y)
    assert y.shape == (2, 3, 28, 28), y.shape

    # Algebra check vs a precision-matched (bf16-operand, f32-accum) reference.
    y_bf = _ref_forward(params, x, bf16_inputs=True)
    np.testing.assert_allclose(np.asarray(y), np.asarray(y_bf),
                               atol=5e-3, rtol=5e-3)
    # Sanity check vs the full-f32 reference (looser: bf16 MXU inputs).
    y_f32 = _ref_forward(params, x, bf16_inputs=False)
    np.testing.assert_allclose(np.asarray(y), np.asarray(y_f32),
                               atol=3e-2, rtol=3e-2)
    print("KERNEL_OK")
</pallas_src>

<mosaic_0001>
module attributes {stable_mosaic.version = 11 : i64} {
  func.func @_gemm_bias_act_kernel(%arg0: i32, %arg1: memref<16x27xbf16, #tpu.memory_space<vmem>>, %arg2: memref<1x27x196xbf16, #tpu.memory_space<vmem>>, %arg3: memref<16x1xf32, #tpu.memory_space<vmem>>, %arg4: memref<1x16x196xf32, #tpu.memory_space<vmem>>) attributes {dimension_semantics = [#tpu.dimension_semantics<parallel>], iteration_bounds = array<i64: 2>, scalar_prefetch = 0 : i64, scratch_operands = 0 : i64, tpu.core_type = #tpu.core_type<tc>, window_params = [{pipeline_mode = #tpu.pipeline_mode<synchronous>, transform_indices = @transform_0, window_bounds = array<i64: 16, 27>}, {transform_indices = @transform_1, window_bounds = array<i64: 1, 27, 196>}, {pipeline_mode = #tpu.pipeline_mode<synchronous>, transform_indices = @transform_2, window_bounds = array<i64: 16, 1>}, {transform_indices = @transform_3, window_bounds = array<i64: 1, 16, 196>}]} {
    %c0 = arith.constant 0 : index
    %c0_0 = arith.constant 0 : index
    %0 = vector.load %arg1[%c0, %c0_0] : memref<16x27xbf16, #tpu.memory_space<vmem>>, vector<16x27xbf16>
    %c0_1 = arith.constant 0 : index
    %c0_2 = arith.constant 0 : index
    %c0_3 = arith.constant 0 : index
    %1 = vector.load %arg2[%c0_1, %c0_2, %c0_3] : memref<1x27x196xbf16, #tpu.memory_space<vmem>>, vector<1x27x196xbf16>
    %2 = vector.shape_cast %1 : vector<1x27x196xbf16> to vector<27x196xbf16>
    %cst = arith.constant dense<0.000000e+00> : vector<16x196xf32>
    %3 = tpu.matmul %0, %2, %cst {dimension_numbers = #tpu.dot_dimension_numbers<[1], [0], [0], [1], [0, 0, 1, 1], [], []>} : vector<16x27xbf16>, vector<27x196xbf16>, vector<16x196xf32> -> vector<16x196xf32>
    %c0_4 = arith.constant 0 : index
    %c0_5 = arith.constant 0 : index
    %4 = vector.load %arg3[%c0_4, %c0_5] : memref<16x1xf32, #tpu.memory_space<vmem>>, vector<16x1xf32>
    %5 = vector.broadcast %4 : vector<16x1xf32> to vector<16x196xf32>
    %6 = arith.addf %3, %5 : vector<16x196xf32>
    %cst_6 = arith.constant 0.000000e+00 : f32
    %7 = vector.broadcast %cst_6 : f32 to vector<16x196xf32>
    %8 = arith.maximumf %6, %7 : vector<16x196xf32>
    %c0_7 = arith.constant 0 : index
    %c0_8 = arith.constant 0 : index
    %c0_9 = arith.constant 0 : index
    %9 = vector.load %arg4[%c0_7, %c0_8, %c0_9] : memref<1x16x196xf32, #tpu.memory_space<vmem>>, vector<1x16x196xf32>
    %10 = vector.shape_cast %9 : vector<1x16x196xf32> to vector<16x196xf32>
    %11 = vector.shape_cast %8 : vector<16x196xf32> to vector<1x16x196xf32>
    tpu.vector_store %arg4[%c0_7, %c0_8, %c0_9], %11 {strides = array<i32>} : memref<1x16x196xf32, #tpu.memory_space<vmem>>, vector<1x16x196xf32>,
    return
  }
  func.func @transform_0(%arg0: i32) -> (i32, i32) {
    %c0_i32 = arith.constant 0 : i32
    %c0_i32_0 = arith.constant 0 : i32
    %c0_i32_1 = arith.constant 0 : i32
    return %c0_i32, %c0_i32_0 : i32, i32
  }
  func.func @transform_1(%arg0: i32) -> (i32, i32, i32) {
    %c0_i32 = arith.constant 0 : i32
    %c0_i32_0 = arith.constant 0 : i32
    %c0_i32_1 = arith.constant 0 : i32
    return %arg0, %c0_i32, %c0_i32_0 : i32, i32, i32
  }
  func.func @transform_2(%arg0: i32) -> (i32, i32) {
    %c0_i32 = arith.constant 0 : i32
    %c0_i32_0 = arith.constant 0 : i32
    %c0_i32_1 = arith.constant 0 : i32
    return %c0_i32, %c0_i32_0 : i32, i32
  }
  func.func @transform_3(%arg0: i32) -> (i32, i32, i32) {
    %c0_i32 = arith.constant 0 : i32
    %c0_i32_0 = arith.constant 0 : i32
    %c0_i32_1 = arith.constant 0 : i32
    return %arg0, %c0_i32, %c0_i32_0 : i32, i32, i32
  }
}

module attributes {stable_mosaic.version = 11 : i64} {
  func.func @_gemm_bias_act_kernel(%arg0: i32, %arg1: memref<32x144xbf16, #tpu.memory_space<vmem>>, %arg2: memref<1x144x49xbf16, #tpu.memory_space<vmem>>, %arg3: memref<32x1xf32, #tpu.memory_space<vmem>>, %arg4: memref<1x32x49xf32, #tpu.memory_space<vmem>>) attributes {dimension_semantics = [#tpu.dimension_semantics<parallel>], iteration_bounds = array<i64: 2>, scalar_prefetch = 0 : i64, scratch_operands = 0 : i64, tpu.core_type = #tpu.core_type<tc>, window_params = [{pipeline_mode = #tpu.pipeline_mode<synchronous>, transform_indices = @transform_0, window_bounds = array<i64: 32, 144>}, {transform_indices = @transform_1, window_bounds = array<i64: 1, 144, 49>}, {pipeline_mode = #tpu.pipeline_mode<synchronous>, transform_indices = @transform_2, window_bounds = array<i64: 32, 1>}, {transform_indices = @transform_3, window_bounds = array<i64: 1, 32, 49>}]} {
    %c0 = arith.constant 0 : index
    %c0_0 = arith.constant 0 : index
    %0 = vector.load %arg1[%c0, %c0_0] : memref<32x144xbf16, #tpu.memory_space<vmem>>, vector<32x144xbf16>
    %c0_1 = arith.constant 0 : index
    %c0_2 = arith.constant 0 : index
    %c0_3 = arith.constant 0 : index
    %1 = vector.load %arg2[%c0_1, %c0_2, %c0_3] : memref<1x144x49xbf16, #tpu.memory_space<vmem>>, vector<1x144x49xbf16>
    %2 = vector.shape_cast %1 : vector<1x144x49xbf16> to vector<144x49xbf16>
    %cst = arith.constant dense<0.000000e+00> : vector<32x49xf32>
    %3 = tpu.matmul %0, %2, %cst {dimension_numbers = #tpu.dot_dimension_numbers<[1], [0], [0], [1], [0, 0, 1, 1], [], []>} : vector<32x144xbf16>, vector<144x49xbf16>, vector<32x49xf32> -> vector<32x49xf32>
    %c0_4 = arith.constant 0 : index
    %c0_5 = arith.constant 0 : index
    %4 = vector.load %arg3[%c0_4, %c0_5] : memref<32x1xf32, #tpu.memory_space<vmem>>, vector<32x1xf32>
    %5 = vector.broadcast %4 : vector<32x1xf32> to vector<32x49xf32>
    %6 = arith.addf %3, %5 : vector<32x49xf32>
    %cst_6 = arith.constant 0.000000e+00 : f32
    %7 = vector.broadcast %cst_6 : f32 to vector<32x49xf32>
    %8 = arith.maximumf %6, %7 : vector<32x49xf32>
    %c0_7 = arith.constant 0 : index
    %c0_8 = arith.constant 0 : index
    %c0_9 = arith.constant 0 : index
    %9 = vector.load %arg4[%c0_7, %c0_8, %c0_9] : memref<1x32x49xf32, #tpu.memory_space<vmem>>, vector<1x32x49xf32>
    %10 = vector.shape_cast %9 : vector<1x32x49xf32> to vector<32x49xf32>
    %11 = vector.shape_cast %8 : vector<32x49xf32> to vector<1x32x49xf32>
    tpu.vector_store %arg4[%c0_7, %c0_8, %c0_9], %11 {strides = array<i32>} : memref<1x32x49xf32, #tpu.memory_space<vmem>>, vector<1x32x49xf32>,
    return
  }
  func.func @transform_0(%arg0: i32) -> (i32, i32) {
    %c0_i32 = arith.constant 0 : i32
    %c0_i32_0 = arith.constant 0 : i32
    %c0_i32_1 = arith.constant 0 : i32
    return %c0_i32, %c0_i32_0 : i32, i32
  }
  func.func @transform_1(%arg0: i32) -> (i32, i32, i32) {
    %c0_i32 = arith.constant 0 : i32
    %c0_i32_0 = arith.constant 0 : i32
    %c0_i32_1 = arith.constant 0 : i32
    return %arg0, %c0_i32, %c0_i32_0 : i32, i32, i32
  }
  func.func @transform_2(%arg0: i32) -> (i32, i32) {
    %c0_i32 = arith.constant 0 : i32
    %c0_i32_0 = arith.constant 0 : i32
    %c0_i32_1 = arith.constant 0 : i32
    return %c0_i32, %c0_i32_0 : i32, i32
  }
  func.func @transform_3(%arg0: i32) -> (i32, i32, i32) {
    %c0_i32 = arith.constant 0 : i32
    %c0_i32_0 = arith.constant 0 : i32
    %c0_i32_1 = arith.constant 0 : i32
    return %arg0, %c0_i32, %c0_i32_0 : i32, i32, i32
  }
}

module attributes {stable_mosaic.version = 11 : i64} {
  func.func @_gemm_bias_act_kernel(%arg0: i32, %arg1: memref<64x1568xbf16, #tpu.memory_space<vmem>>, %arg2: memref<1x1568x1xbf16, #tpu.memory_space<vmem>>, %arg3: memref<64x1xf32, #tpu.memory_space<vmem>>, %arg4: memref<1x64x1xf32, #tpu.memory_space<vmem>>) attributes {dimension_semantics = [#tpu.dimension_semantics<parallel>], iteration_bounds = array<i64: 2>, scalar_prefetch = 0 : i64, scratch_operands = 0 : i64, tpu.core_type = #tpu.core_type<tc>, window_params = [{pipeline_mode = #tpu.pipeline_mode<synchronous>, transform_indices = @transform_0, window_bounds = array<i64: 64, 1568>}, {transform_indices = @transform_1, window_bounds = array<i64: 1, 1568, 1>}, {pipeline_mode = #tpu.pipeline_mode<synchronous>, transform_indices = @transform_2, window_bounds = array<i64: 64, 1>}, {transform_indices = @transform_3, window_bounds = array<i64: 1, 64, 1>}]} {
    %c0 = arith.constant 0 : index
    %c0_0 = arith.constant 0 : index
    %0 = vector.load %arg1[%c0, %c0_0] : memref<64x1568xbf16, #tpu.memory_space<vmem>>, vector<64x1568xbf16>
    %c0_1 = arith.constant 0 : index
    %c0_2 = arith.constant 0 : index
    %c0_3 = arith.constant 0 : index
    %1 = vector.load %arg2[%c0_1, %c0_2, %c0_3] : memref<1x1568x1xbf16, #tpu.memory_space<vmem>>, vector<1x1568x1xbf16>
    %2 = vector.shape_cast %1 : vector<1x1568x1xbf16> to vector<1568x1xbf16>
    %cst = arith.constant dense<0.000000e+00> : vector<64x1xf32>
    %3 = tpu.matmul %0, %2, %cst {dimension_numbers = #tpu.dot_dimension_numbers<[1], [0], [0], [1], [0, 0, 1, 1], [], []>} : vector<64x1568xbf16>, vector<1568x1xbf16>, vector<64x1xf32> -> vector<64x1xf32>
    %c0_4 = arith.constant 0 : index
    %c0_5 = arith.constant 0 : index
    %4 = vector.load %arg3[%c0_4, %c0_5] : memref<64x1xf32, #tpu.memory_space<vmem>>, vector<64x1xf32>
    %5 = arith.addf %3, %4 : vector<64x1xf32>
    %c0_6 = arith.constant 0 : index
    %c0_7 = arith.constant 0 : index
    %c0_8 = arith.constant 0 : index
    %6 = vector.load %arg4[%c0_6, %c0_7, %c0_8] : memref<1x64x1xf32, #tpu.memory_space<vmem>>, vector<1x64x1xf32>
    %7 = vector.shape_cast %6 : vector<1x64x1xf32> to vector<64x1xf32>
    %8 = vector.shape_cast %5 : vector<64x1xf32> to vector<1x64x1xf32>
    tpu.vector_store %arg4[%c0_6, %c0_7, %c0_8], %8 {strides = array<i32>} : memref<1x64x1xf32, #tpu.memory_space<vmem>>, vector<1x64x1xf32>,
    return
  }
  func.func @transform_0(%arg0: i32) -> (i32, i32) {
    %c0_i32 = arith.constant 0 : i32
    %c0_i32_0 = arith.constant 0 : i32
    %c0_i32_1 = arith.constant 0 : i32
    return %c0_i32, %c0_i32_0 : i32, i32
  }
  func.func @transform_1(%arg0: i32) -> (i32, i32, i32) {
    %c0_i32 = arith.constant 0 : i32
    %c0_i32_0 = arith.constant 0 : i32
    %c0_i32_1 = arith.constant 0 : i32
    return %arg0, %c0_i32, %c0_i32_0 : i32, i32, i32
  }
  func.func @transform_2(%arg0: i32) -> (i32, i32) {
    %c0_i32 = arith.constant 0 : i32
    %c0_i32_0 = arith.constant 0 : i32
    %c0_i32_1 = arith.constant 0 : i32
    return %c0_i32, %c0_i32_0 : i32, i32
  }
  func.func @transform_3(%arg0: i32) -> (i32, i32, i32) {
    %c0_i32 = arith.constant 0 : i32
    %c0_i32_0 = arith.constant 0 : i32
    %c0_i32_1 = arith.constant 0 : i32
    return %arg0, %c0_i32, %c0_i32_0 : i32, i32, i32
  }
}

module attributes {stable_mosaic.version = 11 : i64} {
  func.func @_gemm_bias_act_kernel(%arg0: i32, %arg1: memref<32x3136xbf16, #tpu.memory_space<vmem>>, %arg2: memref<1x3136x49xbf16, #tpu.memory_space<vmem>>, %arg3: memref<32x1xf32, #tpu.memory_space<vmem>>, %arg4: memref<1x32x49xf32, #tpu.memory_space<vmem>>) attributes {dimension_semantics = [#tpu.dimension_semantics<parallel>], iteration_bounds = array<i64: 2>, scalar_prefetch = 0 : i64, scratch_operands = 0 : i64, tpu.core_type = #tpu.core_type<tc>, window_params = [{pipeline_mode = #tpu.pipeline_mode<synchronous>, transform_indices = @transform_0, window_bounds = array<i64: 32, 3136>}, {transform_indices = @transform_1, window_bounds = array<i64: 1, 3136, 49>}, {pipeline_mode = #tpu.pipeline_mode<synchronous>, transform_indices = @transform_2, window_bounds = array<i64: 32, 1>}, {transform_indices = @transform_3, window_bounds = array<i64: 1, 32, 49>}]} {
    %c0 = arith.constant 0 : index
    %c0_0 = arith.constant 0 : index
    %0 = vector.load %arg1[%c0, %c0_0] : memref<32x3136xbf16, #tpu.memory_space<vmem>>, vector<32x3136xbf16>
    %c0_1 = arith.constant 0 : index
    %c0_2 = arith.constant 0 : index
    %c0_3 = arith.constant 0 : index
    %1 = vector.load %arg2[%c0_1, %c0_2, %c0_3] : memref<1x3136x49xbf16, #tpu.memory_space<vmem>>, vector<1x3136x49xbf16>
    %2 = vector.shape_cast %1 : vector<1x3136x49xbf16> to vector<3136x49xbf16>
    %cst = arith.constant dense<0.000000e+00> : vector<32x49xf32>
    %3 = tpu.matmul %0, %2, %cst {dimension_numbers = #tpu.dot_dimension_numbers<[1], [0], [0], [1], [0, 0, 1, 1], [], []>} : vector<32x3136xbf16>, vector<3136x49xbf16>, vector<32x49xf32> -> vector<32x49xf32>
    %c0_4 = arith.constant 0 : index
    %c0_5 = arith.constant 0 : index
    %4 = vector.load %arg3[%c0_4, %c0_5] : memref<32x1xf32, #tpu.memory_space<vmem>>, vector<32x1xf32>
    %5 = vector.broadcast %4 : vector<32x1xf32> to vector<32x49xf32>
    %6 = arith.addf %3, %5 : vector<32x49xf32>
    %cst_6 = arith.constant 0.000000e+00 : f32
    %7 = vector.broadcast %cst_6 : f32 to vector<32x49xf32>
    %8 = arith.maximumf %6, %7 : vector<32x49xf32>
    %c0_7 = arith.constant 0 : index
    %c0_8 = arith.constant 0 : index
    %c0_9 = arith.constant 0 : index
    %9 = vector.load %arg4[%c0_7, %c0_8, %c0_9] : memref<1x32x49xf32, #tpu.memory_space<vmem>>, vector<1x32x49xf32>
    %10 = vector.shape_cast %9 : vector<1x32x49xf32> to vector<32x49xf32>
    %11 = vector.shape_cast %8 : vector<32x49xf32> to vector<1x32x49xf32>
    tpu.vector_store %arg4[%c0_7, %c0_8, %c0_9], %11 {strides = array<i32>} : memref<1x32x49xf32, #tpu.memory_space<vmem>>, vector<1x32x49xf32>,
    return
  }
  func.func @transform_0(%arg0: i32) -> (i32, i32) {
    %c0_i32 = arith.constant 0 : i32
    %c0_i32_0 = arith.constant 0 : i32
    %c0_i32_1 = arith.constant 0 : i32
    return %c0_i32, %c0_i32_0 : i32, i32
  }
  func.func @transform_1(%arg0: i32) -> (i32, i32, i32) {
    %c0_i32 = arith.constant 0 : i32
    %c0_i32_0 = arith.constant 0 : i32
    %c0_i32_1 = arith.constant 0 : i32
    return %arg0, %c0_i32, %c0_i32_0 : i32, i32, i32
  }
  func.func @transform_2(%arg0: i32) -> (i32, i32) {
    %c0_i32 = arith.constant 0 : i32
    %c0_i32_0 = arith.constant 0 : i32
    %c0_i32_1 = arith.constant 0 : i32
    return %c0_i32, %c0_i32_0 : i32, i32
  }
  func.func @transform_3(%arg0: i32) -> (i32, i32, i32) {
    %c0_i32 = arith.constant 0 : i32
    %c0_i32_0 = arith.constant 0 : i32
    %c0_i32_1 = arith.constant 0 : i32
    return %arg0, %c0_i32, %c0_i32_0 : i32, i32, i32
  }
}

module attributes {stable_mosaic.version = 11 : i64} {
  func.func @_gemm_bias_act_kernel(%arg0: i32, %arg1: memref<64x128xbf16, #tpu.memory_space<vmem>>, %arg2: memref<1x128x49xbf16, #tpu.memory_space<vmem>>, %arg3: memref<64x1xf32, #tpu.memory_space<vmem>>, %arg4: memref<1x64x49xf32, #tpu.memory_space<vmem>>) attributes {dimension_semantics = [#tpu.dimension_semantics<parallel>], iteration_bounds = array<i64: 2>, scalar_prefetch = 0 : i64, scratch_operands = 0 : i64, tpu.core_type = #tpu.core_type<tc>, window_params = [{pipeline_mode = #tpu.pipeline_mode<synchronous>, transform_indices = @transform_0, window_bounds = array<i64: 64, 128>}, {transform_indices = @transform_1, window_bounds = array<i64: 1, 128, 49>}, {pipeline_mode = #tpu.pipeline_mode<synchronous>, transform_indices = @transform_2, window_bounds = array<i64: 64, 1>}, {transform_indices = @transform_3, window_bounds = array<i64: 1, 64, 49>}]} {
    %c0 = arith.constant 0 : index
    %c0_0 = arith.constant 0 : index
    %0 = vector.load %arg1[%c0, %c0_0] : memref<64x128xbf16, #tpu.memory_space<vmem>>, vector<64x128xbf16>
    %c0_1 = arith.constant 0 : index
    %c0_2 = arith.constant 0 : index
    %c0_3 = arith.constant 0 : index
    %1 = vector.load %arg2[%c0_1, %c0_2, %c0_3] : memref<1x128x49xbf16, #tpu.memory_space<vmem>>, vector<1x128x49xbf16>
    %2 = vector.shape_cast %1 : vector<1x128x49xbf16> to vector<128x49xbf16>
    %cst = arith.constant dense<0.000000e+00> : vector<64x49xf32>
    %3 = tpu.matmul %0, %2, %cst {dimension_numbers = #tpu.dot_dimension_numbers<[1], [0], [0], [1], [0, 0, 1, 1], [], []>} : vector<64x128xbf16>, vector<128x49xbf16>, vector<64x49xf32> -> vector<64x49xf32>
    %c0_4 = arith.constant 0 : index
    %c0_5 = arith.constant 0 : index
    %4 = vector.load %arg3[%c0_4, %c0_5] : memref<64x1xf32, #tpu.memory_space<vmem>>, vector<64x1xf32>
    %5 = vector.broadcast %4 : vector<64x1xf32> to vector<64x49xf32>
    %6 = arith.addf %3, %5 : vector<64x49xf32>
    %cst_6 = arith.constant 0.000000e+00 : f32
    %7 = vector.broadcast %cst_6 : f32 to vector<64x49xf32>
    %8 = arith.maximumf %6, %7 : vector<64x49xf32>
    %c0_7 = arith.constant 0 : index
    %c0_8 = arith.constant 0 : index
    %c0_9 = arith.constant 0 : index
    %9 = vector.load %arg4[%c0_7, %c0_8, %c0_9] : memref<1x64x49xf32, #tpu.memory_space<vmem>>, vector<1x64x49xf32>
    %10 = vector.shape_cast %9 : vector<1x64x49xf32> to vector<64x49xf32>
    %11 = vector.shape_cast %8 : vector<64x49xf32> to vector<1x64x49xf32>
    tpu.vector_store %arg4[%c0_7, %c0_8, %c0_9], %11 {strides = array<i32>} : memref<1x64x49xf32, #tpu.memory_space<vmem>>, vector<1x64x49xf32>,
    return
  }
  func.func @transform_0(%arg0: i32) -> (i32, i32) {
    %c0_i32 = arith.constant 0 : i32
    %c0_i32_0 = arith.constant 0 : i32
    %c0_i32_1 = arith.constant 0 : i32
    return %c0_i32, %c0_i32_0 : i32, i32
  }
  func.func @transform_1(%arg0: i32) -> (i32, i32, i32) {
    %c0_i32 = arith.constant 0 : i32
    %c0_i32_0 = arith.constant 0 : i32
    %c0_i32_1 = arith.constant 0 : i32
    return %arg0, %c0_i32, %c0_i32_0 : i32, i32, i32
  }
  func.func @transform_2(%arg0: i32) -> (i32, i32) {
    %c0_i32 = arith.constant 0 : i32
    %c0_i32_0 = arith.constant 0 : i32
    %c0_i32_1 = arith.constant 0 : i32
    return %c0_i32, %c0_i32_0 : i32, i32
  }
  func.func @transform_3(%arg0: i32) -> (i32, i32, i32) {
    %c0_i32 = arith.constant 0 : i32
    %c0_i32_0 = arith.constant 0 : i32
    %c0_i32_1 = arith.constant 0 : i32
    return %arg0, %c0_i32, %c0_i32_0 : i32, i32, i32
  }
}

module attributes {stable_mosaic.version = 11 : i64} {
  func.func @_gemm_bias_act_kernel(%arg0: i32, %arg1: memref<12x64xbf16, #tpu.memory_space<vmem>>, %arg2: memref<1x64x196xbf16, #tpu.memory_space<vmem>>, %arg3: memref<12x1xf32, #tpu.memory_space<vmem>>, %arg4: memref<1x12x196xf32, #tpu.memory_space<vmem>>) attributes {dimension_semantics = [#tpu.dimension_semantics<parallel>], iteration_bounds = array<i64: 2>, scalar_prefetch = 0 : i64, scratch_operands = 0 : i64, tpu.core_type = #tpu.core_type<tc>, window_params = [{pipeline_mode = #tpu.pipeline_mode<synchronous>, transform_indices = @transform_0, window_bounds = array<i64: 12, 64>}, {transform_indices = @transform_1, window_bounds = array<i64: 1, 64, 196>}, {pipeline_mode = #tpu.pipeline_mode<synchronous>, transform_indices = @transform_2, window_bounds = array<i64: 12, 1>}, {transform_indices = @transform_3, window_bounds = array<i64: 1, 12, 196>}]} {
    %c0 = arith.constant 0 : index
    %c0_0 = arith.constant 0 : index
    %0 = vector.load %arg1[%c0, %c0_0] : memref<12x64xbf16, #tpu.memory_space<vmem>>, vector<12x64xbf16>
    %c0_1 = arith.constant 0 : index
    %c0_2 = arith.constant 0 : index
    %c0_3 = arith.constant 0 : index
    %1 = vector.load %arg2[%c0_1, %c0_2, %c0_3] : memref<1x64x196xbf16, #tpu.memory_space<vmem>>, vector<1x64x196xbf16>
    %2 = vector.shape_cast %1 : vector<1x64x196xbf16> to vector<64x196xbf16>
    %cst = arith.constant dense<0.000000e+00> : vector<12x196xf32>
    %3 = tpu.matmul %0, %2, %cst {dimension_numbers = #tpu.dot_dimension_numbers<[1], [0], [0], [1], [0, 0, 1, 1], [], []>} : vector<12x64xbf16>, vector<64x196xbf16>, vector<12x196xf32> -> vector<12x196xf32>
    %c0_4 = arith.constant 0 : index
    %c0_5 = arith.constant 0 : index
    %4 = vector.load %arg3[%c0_4, %c0_5] : memref<12x1xf32, #tpu.memory_space<vmem>>, vector<12x1xf32>
    %5 = vector.broadcast %4 : vector<12x1xf32> to vector<12x196xf32>
    %6 = arith.addf %3, %5 : vector<12x196xf32>
    %cst_6 = arith.constant 0.000000e+00 : f32
    %7 = vector.broadcast %cst_6 : f32 to vector<12x196xf32>
    %8 = arith.subf %7, %6 : vector<12x196xf32>
    %9 = math.exp %8 : vector<12x196xf32>
    %cst_7 = arith.constant 1.000000e+00 : f32
    %10 = vector.broadcast %cst_7 : f32 to vector<12x196xf32>
    %11 = arith.addf %10, %9 : vector<12x196xf32>
    %12 = tpu.reciprocal %11 {approx = true} : vector<12x196xf32> -> vector<12x196xf32>
    %c0_8 = arith.constant 0 : index
    %c0_9 = arith.constant 0 : index
    %c0_10 = arith.constant 0 : index
    %13 = vector.load %arg4[%c0_8, %c0_9, %c0_10] : memref<1x12x196xf32, #tpu.memory_space<vmem>>, vector<1x12x196xf32>
    %14 = vector.shape_cast %13 : vector<1x12x196xf32> to vector<12x196xf32>
    %15 = vector.shape_cast %12 : vector<12x196xf32> to vector<1x12x196xf32>
    tpu.vector_store %arg4[%c0_8, %c0_9, %c0_10], %15 {strides = array<i32>} : memref<1x12x196xf32, #tpu.memory_space<vmem>>, vector<1x12x196xf32>,
    return
  }
  func.func @transform_0(%arg0: i32) -> (i32, i32) {
    %c0_i32 = arith.constant 0 : i32
    %c0_i32_0 = arith.constant 0 : i32
    %c0_i32_1 = arith.constant 0 : i32
    return %c0_i32, %c0_i32_0 : i32, i32
  }
  func.func @transform_1(%arg0: i32) -> (i32, i32, i32) {
    %c0_i32 = arith.constant 0 : i32
    %c0_i32_0 = arith.constant 0 : i32
    %c0_i32_1 = arith.constant 0 : i32
    return %arg0, %c0_i32, %c0_i32_0 : i32, i32, i32
  }
  func.func @transform_2(%arg0: i32) -> (i32, i32) {
    %c0_i32 = arith.constant 0 : i32
    %c0_i32_0 = arith.constant 0 : i32
    %c0_i32_1 = arith.constant 0 : i32
    return %c0_i32, %c0_i32_0 : i32, i32
  }
  func.func @transform_3(%arg0: i32) -> (i32, i32, i32) {
    %c0_i32 = arith.constant 0 : i32
    %c0_i32_0 = arith.constant 0 : i32
    %c0_i32_1 = arith.constant 0 : i32
    return %arg0, %c0_i32, %c0_i32_0 : i32, i32, i32
  }
}

</mosaic_0001>

<bundles_post_ra>
// kernel: autoencoder_forward.6
= control target key start
LH: loop header
LB: loop body
LE: loop exit
PB: predicated region body
PF: predicated region fallthrough
CT: control target
= control target key end

     0   :  { %s401_s12 = smov 0   ;;  %s430_s0 = inlined_call_operand.vmem [shape: bf16[16,27], index: 0, kind: input, shape index: {}]   ;;  %s431_s1 = inlined_call_operand.vmem [shape: bf16[2,27,196], index: 1, kind: input, shape index: {}]   ;;  %s432_s2 = inlined_call_operand.vmem [shape: f32[16,1], index: 2, kind: input, shape index: {}]   ;;  %s433_s3 = inlined_call_operand.vmem [shape: f32[2,16,196], index: 3, kind: output, shape index: {}]  }
   0x1 LB: > { %s334_s13 = sadd.s32 4294967295, %s377_s12   ;;  %p338_p0 = scmp.ge.s32.totalorder %s377_s12, 1  ;;  %s377_s12 = sphi %s401_s12, %s13_s12  }
   0x2   : > { %p137_p1 = scmp.lt.s32.totalorder %s377_s12, 3 }
   0x4   : > { %p138_p2 = pnand %p338_p0, %p137_p1 }
   0x5   : > { %p161_p3 = scmp.lt.s32.totalorder (!%p138_p2), %s334_s13, 1  ;;  %vm217_vm0 = vcmask (!%p138_p2), 1044480   ;;  %v379_v0 = vmov (!%p138_p2), 0   ;;  %v178_v1 = vld [vmem:[%s432_s2] sm:$0xff] (!%p138_p2)  ;;  %vm218_vm1 = vcmask (!%p138_p2), 1045504   ;;  %v380_v2 = vmov (!%p138_p2), 65535  }
   0x6   : > { %141 = sbr.rel (%p138_p2) target bundleno = 245 (0xf5), region = 32  ;;  %259 = vmatprep.mubr.bf16.mxu0 (!%p138_p2), %v379_v0  ;;  %363 = vset.pattern.permute.xlu0 (!%p138_p2), %v379_v0  ;;  %v219_v3 = vsel (!%p138_p2), %vm217_vm0, 4294967295, %v380_v2  ;;  %v179_v4 = vld [vmem:[%s432_s2 + $0x8] sm:$0xff] (!%p138_p2)  ;;  %v370_v12 = vld [vmem:[%s430_s0] sm:$0xff] (!%p138_p2)   ;;  %vm213_vm2 = vcmask (!%p138_p2), 220160   ;;  %vm275_vm3 = vcmask (!%p138_p2), 556032  }
   0x7   : > { %182 = vperm.xlu0 (!%p138_p2), %363, %v178_v1   ;;  %v220_v7 = vsel (!%p138_p2), %vm218_vm1, %v219_v3, 0 }
   0xb   : > { %187 = vperm.xlu0 (!%p138_p2), %363, %v179_v4  }
   0xd   : > { %s435_s13 = smov (!%p161_p3, %s334_s13), 1 }
   0xe   : > { %s351_s16 = sshll.u32 %s435_s13, 5 }
   0xf   : > { %s165_s21 = scalar_lea.vmem %s431_s1, %s351_s16  ;;  %s170_s26 = scalar_lea.vmem %s433_s3, %s351_s16 }
  0x10   : > { %v364_v5 = vld [vmem:[%s165_s21 + $0x4] ss:$8 sps:$4 sm:$0xff]   ;;  %v366_v6 = vld [vmem:[%s165_s21] ss:$8 sps:$4 sm:$0xff]  }
  0x11   : > { %227 = vmatprep.subr.bf16.mxu0 %v364_v5  ;;  %v367_v8 = vld [vmem:[%s165_s21 + $0x14] ss:$8 sps:$4 sm:$0x3f]   ;;  %v369_v9 = vld [vmem:[%s165_s21 + $0x10] ss:$8 sps:$4 sm:$0x3f]  }
  0x12   : > { %228 = vmatpush1.bf16.msra.mxu0 %v366_v6  ;;  %v225_v10 = vand.u32 %v367_v8, %v220_v7  ;;  %v222_v11 = vand.u32 %v369_v9, %v220_v7 }
  0x14   : > { %229 = vmatprep.subr.bf16.mxu0 %v225_v10 }
  0x16   : > { %230 = vmatpush1.bf16.msra.mxu0 %v222_v11 }
  0x19   : > { %348 = vmatmul.mubr.msk.bf16.vlgmr.msra.gmra.mrb[0].mxu0 %vm213_vm2, %v370_v12 }
  0x86   : > { %v183_v13 = vpop.permute.xlu0 %182 }
  0x8a   : > { %v188_v17 = vpop.permute.xlu0 %187 }
  0xec   : > { %v261_v14 = vpop.f32.mrb[0].mxu0 }
  0xed   : > { %v262_v15 = vadd.f32 %v261_v14, %v183_v13  ;;  %v263_v16 = vpop.f32.mrb[1].mxu0 }
  0xee   : > { %v264_v18 = vadd.f32 %v263_v16, %v183_v13  ;;  %v265_v19 = vpop.f32.mrb[2].mxu0 }
  0xef   : > { %v270_v20 = vmax.f32 %v262_v15, 0.0  ;;  %v266_v21 = vadd.f32 %v265_v19, %v188_v17  ;;  %v267_v22 = vpop.f32.mrb[3].mxu0 }
  0xf0   : > { %v271_v23 = vmax.f32 %v264_v18, 0.0  ;;  %v268_v24 = vadd.f32 %v267_v22, %v188_v17 }
  0xf1   : > { %274 = vst [vmem:[%s170_s26] sm:$0xff] %v270_v20  ;;  %v272_v25 = vmax.f32 %v266_v21, 0.0 }
  0xf2   : > { %276 = vst.msk [vmem:[%s170_s26 + $0x8] sm:$0xff] %vm275_vm3, %v271_v23  ;;  %v273_v26 = vmax.f32 %v268_v24, 0.0 }
  0xf3   : > { %277 = vst [vmem:[%s170_s26 + $0x10] sm:$0xff] %v272_v25 }
  0xf4   : > { %278 = vst.msk [vmem:[%s170_s26 + $0x18] sm:$0xff] %vm275_vm3, %v273_v26 }
  0xf5 PF: > { %s13_s12 = sadd.s32 1, %s377_s12  }
  0xf6   : > { %p10_p4 = scmp.ge.s32.totalorder %s13_s12, 4  }
  0xf8   :  { %12 = sbr.rel (!%p10_p4) target bundleno = 1 (0x1), region = 62 }

// kernel: autoencoder_forward.7
= control target key start
LH: loop header
LB: loop body
LE: loop exit
PB: predicated region body
PF: predicated region fallthrough
CT: control target
= control target key end

     0   :  { %s510_s12 = smov 0   ;;  %s566_s0 = inlined_call_operand.vmem [shape: bf16[32,144], index: 0, kind: input, shape index: {}]   ;;  %s567_s1 = inlined_call_operand.vmem [shape: bf16[2,144,49], index: 1, kind: input, shape index: {}]   ;;  %s568_s2 = inlined_call_operand.vmem [shape: f32[32,1], index: 2, kind: input, shape index: {}]   ;;  %s569_s3 = inlined_call_operand.vmem [shape: f32[2,32,49], index: 3, kind: output, shape index: {}]  }
   0x1 LB: > { %s410_s13 = sadd.s32 4294967295, %s487_s12   ;;  %p414_p0 = scmp.ge.s32.totalorder %s487_s12, 1  ;;  %s487_s12 = sphi %s510_s12, %s13_s12  }
   0x2   : > { %p137_p1 = scmp.lt.s32.totalorder %s487_s12, 3 }
   0x4   : > { %p138_p2 = pnand %p414_p0, %p137_p1 }
   0x5   : > { %p161_p3 = scmp.lt.s32.totalorder (!%p138_p2), %s410_s13, 1  ;;  %v489_v0 = vmov (!%p138_p2), 0   ;;  %v477_v1 = vld [vmem:[%s566_s0 + $0x4] ss:$8 sps:$4 sm:$0xff] (!%p138_p2)   ;;  %vm290_vm0 = vcmask (!%p138_p2), 130048   ;;  %v196_v3 = vld [vmem:[%s568_s2 + $0x10] sm:$0xff] (!%p138_p2) }
   0x6   : > { %141 = sbr.rel (%p138_p2) target bundleno = 272 (0x110), region = 32  ;;  %297 = vmatprep.subr.bf16.mxu0 (!%p138_p2), %v489_v0  ;;  %436 = vmatprep.subr.bf16.mxu1 (!%p138_p2), %v489_v0  ;;  %v480_v2 = vld [vmem:[%s566_s0 + $0x14] ss:$8 sps:$4 sm:$0xff] (!%p138_p2)   ;;  %v194_v4 = vld [vmem:[%s568_s2] sm:$0xff] (!%p138_p2)  ;;  %v195_v6 = vld [vmem:[%s568_s2 + $0x8] sm:$0xff] (!%p138_p2)  ;;  %vm350_vm1 = vcmask (!%p138_p2), 400384  }
   0x7   : > { %465 = vset.pattern.permute.xlu1 (!%p138_p2), %v489_v0  ;;  %464 = vset.pattern.permute.xlu0 (!%p138_p2), %v489_v0  ;;  %v197_v5 = vld [vmem:[%s568_s2 + $0x18] sm:$0xff] (!%p138_p2)  ;;  %v475_v16 = vld [vmem:[%s566_s0] ss:$8 sps:$4 sm:$0xff] (!%p138_p2)  }
   0x8   : > { %431 = vmatprep.mubr.msk.bf16.mxu0 (!%p138_p2), %vm290_vm0, %v477_v1  ;;  %210 = vperm.xlu1 (!%p138_p2), %465, %v196_v3   ;;  %v478_v17 = vld [vmem:[%s566_s0 + $0x10] ss:$8 sps:$4 sm:$0xff] (!%p138_p2)  }
   0x9   : > { %432 = vmatprep.mubr.msk.bf16.mxu1 (!%p138_p2), %vm290_vm0, %v480_v2  ;;  %200 = vperm.xlu0 (!%p138_p2), %464, %v194_v4  }
   0xc   : > { %215 = vperm.xlu1 (!%p138_p2), %465, %v197_v5  }
   0xd   : > { %s571_s13 = smov (!%p161_p3, %s410_s13), 1  ;;  %205 = vperm.xlu0 %464, %v195_v6  }
   0xe   : > { %s454_s22 = smul.u32 72, %s571_s13  ;;  %s435_s7 = sshll.u32 %s571_s13, 5 }
   0xf   : > { %s170_s10 = scalar_lea.vmem %s569_s3, %s435_s7 }
  0x10   : > { %s542_s29 = scalar_lea.vmem %s567_s1, %s454_s22 }
  0x11   : > { %v466_v7 = vld [vmem:[%s542_s29] sm:$0xff]   ;;  %v467_v8 = vld [vmem:[%s542_s29 + $0x8] sm:$0xff]   ;;  %v468_v9 = vld [vmem:[%s542_s29 + $0x10] sm:$0xff]  }
  0x12   : > { %298 = vmatpush1.bf16.msra.mxu0 %v466_v7  ;;  %445 = vmatpush1.bf16.msra.mxu1 %v466_v7  ;;  %v469_v10 = vld [vmem:[%s542_s29 + $0x18] sm:$0xff]   ;;  %v470_v11 = vld [vmem:[%s542_s29 + $0x20] sm:$0xff]   ;;  %v471_v12 = vld [vmem:[%s542_s29 + $0x28] sm:$0xff]  }
  0x13   : > { %299 = vmatprep.subr.bf16.mxu0 %v489_v0  ;;  %437 = vmatprep.subr.bf16.mxu1 %v489_v0  ;;  %v472_v13 = vld [vmem:[%s542_s29 + $0x30] sm:$0xff]   ;;  %v473_v14 = vld [vmem:[%s542_s29 + $0x38] sm:$0xff]   ;;  %v474_v15 = vld [vmem:[%s542_s29 + $0x40] sm:$0xff]  }
  0x16   : > { %300 = vmatpush1.bf16.msra.mxu0 %v467_v8  ;;  %446 = vmatpush1.bf16.msra.mxu1 %v467_v8 }
  0x17   : > { %301 = vmatprep.subr.bf16.mxu0 %v489_v0  ;;  %438 = vmatprep.subr.bf16.mxu1 %v489_v0 }
  0x1a   : > { %302 = vmatpush1.bf16.msra.mxu0 %v468_v9  ;;  %447 = vmatpush1.bf16.msra.mxu1 %v468_v9 }
  0x1b   : > { %303 = vmatprep.subr.bf16.mxu0 %v489_v0  ;;  %439 = vmatprep.subr.bf16.mxu1 %v489_v0 }
  0x1e   : > { %304 = vmatpush1.bf16.msra.mxu0 %v469_v10  ;;  %448 = vmatpush1.bf16.msra.mxu1 %v469_v10 }
  0x1f   : > { %305 = vmatprep.subr.bf16.mxu0 %v489_v0  ;;  %440 = vmatprep.subr.bf16.mxu1 %v489_v0 }
  0x22   : > { %306 = vmatpush1.bf16.msra.mxu0 %v470_v11  ;;  %449 = vmatpush1.bf16.msra.mxu1 %v470_v11 }
  0x23   : > { %307 = vmatprep.subr.bf16.mxu0 %v489_v0  ;;  %441 = vmatprep.subr.bf16.mxu1 %v489_v0 }
  0x26   : > { %308 = vmatpush1.bf16.msra.mxu0 %v471_v12  ;;  %450 = vmatpush1.bf16.msra.mxu1 %v471_v12 }
  0x27   : > { %309 = vmatprep.subr.bf16.mxu0 %v489_v0  ;;  %442 = vmatprep.subr.bf16.mxu1 %v489_v0 }
  0x2a   : > { %310 = vmatpush1.bf16.msra.mxu0 %v472_v13  ;;  %451 = vmatpush1.bf16.msra.mxu1 %v472_v13 }
  0x2b   : > { %311 = vmatprep.subr.bf16.mxu0 %v489_v0  ;;  %443 = vmatprep.subr.bf16.mxu1 %v489_v0 }
  0x2e   : > { %312 = vmatpush1.bf16.msra.mxu0 %v473_v14  ;;  %452 = vmatpush1.bf16.msra.mxu1 %v473_v14 }
  0x2f   : > { %313 = vmatprep.subr.bf16.mxu0 %v489_v0  ;;  %444 = vmatprep.subr.bf16.mxu1 %v489_v0 }
  0x32   : > { %314 = vmatpush1.bf16.msra.mxu0 %v474_v15  ;;  %453 = vmatpush1.bf16.msra.mxu1 %v474_v15 }
  0x35   : > { %330 = vmatmul.mubr.bf16.vlgmr.msra.gmra.mrb[0].mxu0 %v475_v16  ;;  %338 = vmatmul.mubr.bf16.vlgmr.msra.gmra.mrb[0].mxu1 %v478_v17 }
  0x87   : > { %v211_v18 = vpop.permute.xlu1 %210 }
  0x88   : > { %v201_v19 = vpop.permute.xlu0 %200 }
  0x8b   : > { %v216_v20 = vpop.permute.xlu1 %215 }
  0x8c   : > { %v206_v21 = vpop.permute.xlu0 %205 }
 0x108   : > { %v331_v22 = vpop.f32.mrb[0].mxu0  ;;  %v339_v23 = vpop.f32.mrb[0].mxu1 }
 0x109   : > { %v332_v24 = vadd.f32 %v331_v22, %v201_v19  ;;  %v340_v25 = vadd.f32 %v339_v23, %v211_v18  ;;  %v333_v26 = vpop.f32.mrb[1].mxu0  ;;  %v341_v27 = vpop.f32.mrb[1].mxu1 }
 0x10a   : > { %v334_v28 = vpop.f32.mrb[2].mxu0  ;;  %v342_v29 = vpop.f32.mrb[2].mxu1 }
 0x10b   : > { %v346_v30 = vmax.f32 %v332_v24, 0.0  ;;  %v348_v31 = vmax.f32 %v340_v25, 0.0  ;;  %v335_v32 = vadd.f32 %v334_v28, %v206_v21  ;;  %v343_v33 = vadd.f32 %v342_v29, %v216_v20  ;;  %v336_v34 = vpop.f32.mrb[3].mxu0  ;;  %v344_v35 = vpop.f32.mrb[3].mxu1 }
 0x10d   : > { %351 = vst.msk [vmem:[%s170_s10] sm:$0xff] %vm350_vm1, %v346_v30  ;;  %353 = vst.msk [vmem:[%s170_s10 + $0x10] sm:$0xff] %vm350_vm1, %v348_v31  ;;  %v347_v36 = vmax.f32 %v335_v32, 0.0  ;;  %v349_v37 = vmax.f32 %v343_v33, 0.0 }
 0x10f   : > { %352 = vst.msk [vmem:[%s170_s10 + $0x8] sm:$0xff] %vm350_vm1, %v347_v36  ;;  %354 = vst.msk [vmem:[%s170_s10 + $0x18] sm:$0xff] %vm350_vm1, %v349_v37 }
 0x110 PF: > { %s13_s12 = sadd.s32 1, %s487_s12  }
 0x111   : > { %p10_p4 = scmp.ge.s32.totalorder %s13_s12, 4  }
 0x113   :  { %12 = sbr.rel (!%p10_p4) target bundleno = 1 (0x1), region = 62 }

// kernel: autoencoder_forward.8
= control target key start
LH: loop header
LB: loop body
LE: loop exit
PB: predicated region body
PF: predicated region fallthrough
CT: control target
= control target key end

     0   :  { %s2450_s12 = smov 0   ;;  %s2786_s0 = inlined_call_operand.vmem [shape: bf16[64,1568], index: 0, kind: input, shape index: {}]   ;;  %s2787_s1 = inlined_call_operand.vmem [shape: bf16[2,1568,1], index: 1, kind: input, shape index: {}]   ;;  %s2788_s2 = inlined_call_operand.vmem [shape: f32[64,1], index: 2, kind: input, shape index: {}]   ;;  %s2789_s3 = inlined_call_operand.vmem [shape: f32[2,64,1], index: 3, kind: output, shape index: {}]  }
   0x1 LB: > { %s1812_s13 = sadd.s32 4294967295, %s2428_s12   ;;  %p1816_p0 = scmp.ge.s32.totalorder %s2428_s12, 1  ;;  %s2428_s12 = sphi %s2450_s12, %s13_s12  }
   0x2   : > { %p137_p1 = scmp.lt.s32.totalorder %s2428_s12, 3 }
   0x4   : > { %p138_p2 = pnand %p1816_p0, %p137_p1 }
   0x5   : > { %p161_p3 = scmp.lt.s32.totalorder (!%p138_p2), %s1812_s13, 1  ;;  %v2282_v0 = vld [vmem:[%s2786_s0 + $0x4] ss:$52 sps:$4 sm:$0xff] (!%p138_p2)   ;;  %v2285_v1 = vld [vmem:[%s2786_s0 + $0xc] ss:$52 sps:$4 sm:$0xff] (!%p138_p2)   ;;  %vm1280_vm0 = vcmask (!%p138_p2), 261120  }
   0x6   : > { %141 = sbr.rel (%p138_p2) target bundleno = 366 (0x16e), region = 32  ;;  %1325 = vmatprep.mubr.bf16.mxu0 (!%p138_p2), %v2282_v0  ;;  %1390 = vmatprep.mubr.bf16.mxu1 (!%p138_p2), %v2285_v1  ;;  %v2280_v32 = vld [vmem:[%s2786_s0] ss:$52 sps:$4 sm:$0xff] (!%p138_p2)   ;;  %v2283_v34 = vld [vmem:[%s2786_s0 + $0x8] ss:$52 sps:$4 sm:$0xff] (!%p138_p2)   ;;  %vm1748_vm1 = vcmask (!%p138_p2), 7168  }
   0x7   : > { %v2294_v36 = vld [vmem:[%s2786_s0 + $0x6c] ss:$52 sps:$4 sm:$0xff] (!%p138_p2)   ;;  %v2296_v38 = vld [vmem:[%s2786_s0 + $0x74] ss:$52 sps:$4 sm:$0xff] (!%p138_p2)   ;;  %v2299_v46 = vld [vmem:[%s2786_s0 + $0x70] ss:$52 sps:$4 sm:$0xff] (!%p138_p2)  }
   0x8   : > { %v2298_v44 = vld [vmem:[%s2786_s0 + $0x68] ss:$52 sps:$4 sm:$0xff] (!%p138_p2)   ;;  %v2312_v58 = vld [vmem:[%s2786_s0 + $0xd0] ss:$52 sps:$4 sm:$0xff] (!%p138_p2)   ;;  %v2313_v59 = vld [vmem:[%s2786_s0 + $0xd8] ss:$52 sps:$4 sm:$0xff] (!%p138_p2)  }
   0x9   : > { %v2308_v48 = vld [vmem:[%s2786_s0 + $0xd4] ss:$52 sps:$4 sm:$0xff] (!%p138_p2)   ;;  %v2310_v57 = vld [vmem:[%s2786_s0 + $0xdc] ss:$52 sps:$4 sm:$0xff] (!%p138_p2)  }
   0xd   : > { %s2791_s13 = smov (!%p161_p3, %s1812_s13), 1 }
   0xe   : > { %s2239_s18 = smul.u32 784, %s2791_s13  ;;  %s1976_s15 = sshll.u32 %s2791_s13, 6 }
  0x10   : > { %s2470_s21 = scalar_lea.vmem %s2787_s1, %s2239_s18  ;;  %s170_s18 = scalar_lea.vmem %s2789_s3, %s1976_s15 }
  0x11   : > { %v2248_v2 = vld [vmem:[%s2470_s21 + $0x40] sm:$0xff]   ;;  %v2252_v6 = vld [vmem:[%s2470_s21 + $0x48] sm:$0xff]   ;;  %v2256_v10 = vld [vmem:[%s2470_s21 + $0x50] sm:$0xff]  }
  0x12   : > { %v2249_v3 = vld [vmem:[%s2470_s21 + $0xc0] sm:$0xff]   ;;  %1977 = vmatprep.subr.bf16.mxu0 %v2248_v2  ;;  %v2253_v7 = vld [vmem:[%s2470_s21 + $0xc8] sm:$0xff]   ;;  %v2257_v11 = vld [vmem:[%s2470_s21 + $0xd0] sm:$0xff]  }
  0x13   : > { %v2250_v4 = vld [vmem:[%s2470_s21] sm:$0xff]   ;;  %2017 = vmatprep.subr.bf16.mxu1 %v2249_v3  ;;  %v2254_v8 = vld [vmem:[%s2470_s21 + $0x8] sm:$0xff]   ;;  %v2258_v12 = vld [vmem:[%s2470_s21 + $0x10] sm:$0xff]  }
  0x14   : > { %v2251_v5 = vld [vmem:[%s2470_s21 + $0x80] sm:$0xff]   ;;  %1978 = vmatpush3.bf16.msra.mxu0 %v2250_v4  ;;  %v2255_v9 = vld [vmem:[%s2470_s21 + $0x88] sm:$0xff]   ;;  %v2259_v13 = vld [vmem:[%s2470_s21 + $0x90] sm:$0xff]  }
  0x15   : > { %2018 = vmatpush3.bf16.msra.mxu1 %v2251_v5  ;;  %1979 = vmatprep.subr.bf16.mxu0 %v2252_v6  ;;  %v2260_v14 = vld [vmem:[%s2470_s21 + $0x58] sm:$0xff]   ;;  %v2264_v18 = vld [vmem:[%s2470_s21 + $0x60] sm:$0xff]   ;;  %v2268_v22 = vld [vmem:[%s2470_s21 + $0x68] sm:$0xff]  }
  0x16   : > { %2019 = vmatprep.subr.bf16.mxu1 %v2253_v7  ;;  %v2261_v15 = vld [vmem:[%s2470_s21 + $0xd8] sm:$0xff]   ;;  %v2265_v19 = vld [vmem:[%s2470_s21 + $0xe0] sm:$0xff]   ;;  %v2269_v23 = vld [vmem:[%s2470_s21 + $0xe8] sm:$0xff]  }
  0x17   : > { %v2262_v16 = vld [vmem:[%s2470_s21 + $0x18] sm:$0xff]   ;;  %v2266_v20 = vld [vmem:[%s2470_s21 + $0x20] sm:$0xff]   ;;  %v2270_v24 = vld [vmem:[%s2470_s21 + $0x28] sm:$0xff]  }
  0x18   : > { %1980 = vmatpush3.bf16.msra.mxu0 %v2254_v8  ;;  %v2263_v17 = vld [vmem:[%s2470_s21 + $0x98] sm:$0xff]   ;;  %v2267_v21 = vld [vmem:[%s2470_s21 + $0xa0] sm:$0xff]   ;;  %v2271_v25 = vld [vmem:[%s2470_s21 + $0xa8] sm:$0xff]  }
  0x19   : > { %2020 = vmatpush3.bf16.msra.mxu1 %v2255_v9  ;;  %1981 = vmatprep.subr.bf16.mxu0 %v2256_v10  ;;  %v2272_v26 = vld [vmem:[%s2470_s21 + $0x70] sm:$0xff]   ;;  %v2276_v30 = vld [vmem:[%s2470_s21 + $0x78] sm:$0xff]   ;;  %v2286_v37 = vld [vmem:[%s2470_s21 + $0x140] sm:$0xff]  }
  0x1a   : > { %2021 = vmatprep.subr.bf16.mxu1 %v2257_v11  ;;  %v2273_v27 = vld [vmem:[%s2470_s21 + $0xf0] sm:$0xff]   ;;  %v2277_v31 = vld [vmem:[%s2470_s21 + $0xf8] sm:$0xff]   ;;  %v2287_v39 = vld [vmem:[%s2470_s21 + $0x1c0] sm:$0xff]  }
  0x1b   : > { %v2274_v28 = vld [vmem:[%s2470_s21 + $0x30] sm:$0xff]   ;;  %v2278_v33 = vld [vmem:[%s2470_s21 + $0x38] sm:$0xff]   ;;  %v2288_v40 = vld [vmem:[%s2470_s21 + $0x100] sm:$0xff]  }
  0x1c   : > { %1982 = vmatpush3.bf16.msra.mxu0 %v2258_v12  ;;  %v2275_v29 = vld [vmem:[%s2470_s21 + $0xb0] sm:$0xff]   ;;  %v2279_v35 = vld [vmem:[%s2470_s21 + $0xb8] sm:$0xff]   ;;  %v2289_v41 = vld [vmem:[%s2470_s21 + $0x180] sm:$0xff]  }
  0x1d   : > { %2022 = vmatpush3.bf16.msra.mxu1 %v2259_v13  ;;  %1983 = vmatprep.subr.bf16.mxu0 %v2260_v14  ;;  %v2290_v42 = vld [vmem:[%s2470_s21 + $0x148] sm:$0xff]   ;;  %v2300_v49 = vld [vmem:[%s2470_s21 + $0x150] sm:$0xff]   ;;  %v2304_v53 = vld [vmem:[%s2470_s21 + $0x158] sm:$0xff]  }
  0x1e   : > { %2023 = vmatprep.subr.bf16.mxu1 %v2261_v15  ;;  %v2291_v43 = vld [vmem:[%s2470_s21 + $0x1c8] sm:$0xff]   ;;  %v2301_v50 = vld [vmem:[%s2470_s21 + $0x1d0] sm:$0xff]   ;;  %v2305_v54 = vld [vmem:[%s2470_s21 + $0x1d8] sm:$0xff]  }
  0x1f   : > { %v2292_v45 = vld [vmem:[%s2470_s21 + $0x108] sm:$0xff]   ;;  %v2302_v51 = vld [vmem:[%s2470_s21 + $0x110] sm:$0xff]   ;;  %v2306_v55 = vld [vmem:[%s2470_s21 + $0x118] sm:$0xff]  }
  0x20   : > { %1984 = vmatpush3.bf16.msra.mxu0 %v2262_v16  ;;  %v2293_v47 = vld [vmem:[%s2470_s21 + $0x188] sm:$0xff]   ;;  %v2303_v52 = vld [vmem:[%s2470_s21 + $0x190] sm:$0xff]   ;;  %v2307_v56 = vld [vmem:[%s2470_s21 + $0x198] sm:$0xff]  }
  0x21   : > { %2024 = vmatpush3.bf16.msra.mxu1 %v2263_v17  ;;  %1985 = vmatprep.subr.bf16.mxu0 %v2264_v18  ;;  %v2314_v60 = vld [vmem:[%s2470_s21 + $0x160] sm:$0xff]   ;;  %v2318_v0 = vld [vmem:[%s2470_s21 + $0x168] sm:$0xff]   ;;  %v2322_v4 = vld [vmem:[%s2786_s0 + $0x13c] ss:$52 sps:$4 sm:$0xff]  }
  0x22   : > { %2025 = vmatprep.subr.bf16.mxu1 %v2265_v19  ;;  %v2315_v61 = vld [vmem:[%s2470_s21 + $0x1e0] sm:$0xff]   ;;  %v2319_v1 = vld [vmem:[%s2470_s21 + $0x1e8] sm:$0xff]   ;;  %v2328_v8 = vld [vmem:[%s2470_s21 + $0x170] sm:$0xff]  }
  0x23   : > { %v2316_v62 = vld [vmem:[%s2470_s21 + $0x120] sm:$0xff]   ;;  %v2320_v2 = vld [vmem:[%s2470_s21 + $0x128] sm:$0xff]   ;;  %v2329_v9 = vld [vmem:[%s2470_s21 + $0x1f0] sm:$0xff]  }
  0x24   : > { %1986 = vmatpush3.bf16.msra.mxu0 %v2266_v20  ;;  %v2317_v63 = vld [vmem:[%s2470_s21 + $0x1a0] sm:$0xff]   ;;  %v2321_v3 = vld [vmem:[%s2470_s21 + $0x1a8] sm:$0xff]   ;;  %v2330_v10 = vld [vmem:[%s2470_s21 + $0x130] sm:$0xff]  }
  0x25   : > { %2026 = vmatpush3.bf16.msra.mxu1 %v2267_v21  ;;  %1987 = vmatprep.subr.bf16.mxu0 %v2268_v22  ;;  %v2324_v5 = vld [vmem:[%s2786_s0 + $0x144] ss:$52 sps:$4 sm:$0xff]   ;;  %v2327_v7 = vld [vmem:[%s2786_s0 + $0x140] ss:$52 sps:$4 sm:$0xff]   ;;  %v2341_v19 = vld [vmem:[%s2786_s0 + $0x1c] ss:$52 sps:$4 sm:$0xff]  }
  0x26   : > { %2027 = vmatprep.subr.bf16.mxu1 %v2269_v23  ;;  %v2326_v6 = vld [vmem:[%s2786_s0 + $0x138] ss:$52 sps:$4 sm:$0xff]   ;;  %v2331_v11 = vld [vmem:[%s2470_s21 + $0x1b0] sm:$0xff]   ;;  %v2342_v20 = vld [vmem:[%s2470_s21 + $0x240] sm:$0xff]  }
  0x27   : > { %v2332_v12 = vld [vmem:[%s2470_s21 + $0x178] sm:$0xff]   ;;  %v2336_v16 = vld [vmem:[%s2786_s0 + $0x10] ss:$52 sps:$4 sm:$0xff]   ;;  %v2338_v17 = vld [vmem:[%s2786_s0 + $0x14] ss:$52 sps:$4 sm:$0xff]  }
  0x28   : > { %1988 = vmatpush3.bf16.msra.mxu0 %v2270_v24  ;;  %v2333_v13 = vld [vmem:[%s2470_s21 + $0x1f8] sm:$0xff]   ;;  %v2343_v21 = vld [vmem:[%s2470_s21 + $0x2c0] sm:$0xff]   ;;  %v2346_v24 = vld [vmem:[%s2470_s21 + $0x248] sm:$0xff]  }
  0x29   : > { %2028 = vmatpush3.bf16.msra.mxu1 %v2271_v25  ;;  %1989 = vmatprep.subr.bf16.mxu0 %v2272_v26  ;;  %v2334_v14 = vld [vmem:[%s2470_s21 + $0x138] sm:$0xff]   ;;  %v2344_v22 = vld [vmem:[%s2470_s21 + $0x200] sm:$0xff]   ;;  %v2347_v25 = vld [vmem:[%s2470_s21 + $0x2c8] sm:$0xff]  }
  0x2a   : > { %2029 = vmatprep.subr.bf16.mxu1 %v2273_v27  ;;  %v2335_v15 = vld [vmem:[%s2470_s21 + $0x1b8] sm:$0xff]   ;;  %v2345_v23 = vld [vmem:[%s2470_s21 + $0x280] sm:$0xff]   ;;  %v2348_v26 = vld [vmem:[%s2470_s21 + $0x208] sm:$0xff]  }
  0x2b   : > { %v2339_v18 = vld [vmem:[%s2786_s0 + $0x18] ss:$52 sps:$4 sm:$0xff]  }
  0x2c   : > { %1990 = vmatpush3.bf16.msra.mxu0 %v2274_v28  ;;  %v2349_v27 = vld [vmem:[%s2470_s21 + $0x288] sm:$0xff]   ;;  %v2350_v28 = vld [vmem:[%s2786_s0 + $0x7c] ss:$52 sps:$4 sm:$0xff]  }
  0x2d   : > { %2030 = vmatpush3.bf16.msra.mxu1 %v2275_v29  ;;  %1991 = vmatprep.subr.bf16.mxu0 %v2276_v30  ;;  %v2352_v29 = vld [vmem:[%s2786_s0 + $0x84] ss:$52 sps:$4 sm:$0xff]  }
  0x2e   : > { %2031 = vmatprep.subr.bf16.mxu1 %v2277_v31  ;;  %v2354_v30 = vld [vmem:[%s2786_s0 + $0x78] ss:$52 sps:$4 sm:$0xff]   ;;  %v2355_v31 = vld [vmem:[%s2786_s0 + $0x80] ss:$52 sps:$4 sm:$0xff]  }
  0x30   : > { %1992 = vmatpush3.bf16.msra.mxu0 %v2278_v33  ;;  %v2357_v33 = vld [vmem:[%s2470_s21 + $0x2d0] sm:$0xff]  }
  0x31   : > { %2032 = vmatpush3.bf16.msra.mxu1 %v2279_v35  ;;  %2057 = vmatprep.subr.bf16.mxu0 %v2286_v37  ;;  %v2359_v35 = vld [vmem:[%s2470_s21 + $0x290] sm:$0xff]   ;;  %v2361_v37 = vld [vmem:[%s2470_s21 + $0x2d8] sm:$0xff]  }
  0x32   : > { %2097 = vmatprep.subr.bf16.mxu1 %v2287_v39  ;;  %v2363_v39 = vld [vmem:[%s2470_s21 + $0x298] sm:$0xff]  }
  0x33   : > { %1326 = vmatmul.mubr.bf16.vlgmr.msra.gmra.mrb[0].mxu0 %v2280_v32  ;;  %v2356_v32 = vld [vmem:[%s2470_s21 + $0x250] sm:$0xff]  }
  0x34   : > { %1391 = vmatmul.mubr.bf16.vlgmr.msra.gmra.mrb[0].mxu1 %v2283_v34  ;;  %2058 = vmatpush3.bf16.msra.mxu0 %v2288_v40  ;;  %v2358_v34 = vld [vmem:[%s2470_s21 + $0x210] sm:$0xff]   ;;  %v2364_v40 = vld [vmem:[%s2786_s0 + $0xe4] ss:$52 sps:$4 sm:$0xff]  }
  0x35   : > { %2098 = vmatpush3.bf16.msra.mxu1 %v2289_v41  ;;  %1333 = vmatprep.mubr.bf16.mxu0 %v2294_v36  ;;  %v2360_v36 = vld [vmem:[%s2470_s21 + $0x258] sm:$0xff]   ;;  %v2366_v41 = vld [vmem:[%s2786_s0 + $0xec] ss:$52 sps:$4 sm:$0xff]  }
  0x36   : > { %2059 = vmatprep.subr.bf16.mxu0 %v2290_v42  ;;  %1398 = vmatprep.mubr.bf16.mxu1 %v2296_v38  ;;  %v2362_v38 = vld [vmem:[%s2470_s21 + $0x218] sm:$0xff]   ;;  %v2368_v42 = vld [vmem:[%s2786_s0 + $0xe0] ss:$52 sps:$4 sm:$0xff]  }
  0x37   : > { %2099 = vmatprep.subr.bf16.mxu1 %v2291_v43  ;;  %v2369_v43 = vld [vmem:[%s2786_s0 + $0xe8] ss:$52 sps:$4 sm:$0xff]  }
  0x38   : > { %2060 = vmatpush3.bf16.msra.mxu0 %v2292_v45  ;;  %v2371_v45 = vld [vmem:[%s2470_s21 + $0x2e0] sm:$0xff]  }
  0x39   : > { %2100 = vmatpush3.bf16.msra.mxu1 %v2293_v47  ;;  %2061 = vmatprep.subr.bf16.mxu0 %v2300_v49  ;;  %v2373_v47 = vld [vmem:[%s2470_s21 + $0x2a0] sm:$0xff]   ;;  %v2375_v49 = vld [vmem:[%s2470_s21 + $0x2e8] sm:$0xff]  }
  0x3a   : > { %2101 = vmatprep.subr.bf16.mxu1 %v2301_v50  ;;  %v2376_v50 = vld [vmem:[%s2470_s21 + $0x228] sm:$0xff]  }
  0x3b   : > { %1334 = vmatmul.mubr.bf16.gmra.mrb[4].mxu0 %v2298_v44  ;;  %v2370_v44 = vld [vmem:[%s2470_s21 + $0x260] sm:$0xff]  }
  0x3c   : > { %1399 = vmatmul.mubr.bf16.gmra.mrb[4].mxu1 %v2299_v46  ;;  %2062 = vmatpush3.bf16.msra.mxu0 %v2302_v51  ;;  %v2372_v46 = vld [vmem:[%s2470_s21 + $0x220] sm:$0xff]   ;;  %v2377_v51 = vld [vmem:[%s2470_s21 + $0x2a8] sm:$0xff]  }
  0x3d   : > { %2102 = vmatpush3.bf16.msra.mxu1 %v2303_v52  ;;  %1341 = vmatprep.mubr.bf16.mxu0 %v2308_v48  ;;  %v2374_v48 = vld [vmem:[%s2470_s21 + $0x268] sm:$0xff]  }
  0x3e   : > { %2063 = vmatprep.subr.bf16.mxu0 %v2304_v53  ;;  %2103 = vmatprep.subr.bf16.mxu1 %v2305_v54  ;;  %v2378_v52 = vld [vmem:[%s2786_s0 + $0x14c] ss:$52 sps:$4 sm:$0xff]   ;;  %v2380_v53 = vld [vmem:[%s2786_s0 + $0x154] ss:$52 sps:$4 sm:$0xff]  }
  0x3f   : > { %1406 = vmatprep.mubr.bf16.mxu1 %v2310_v57  ;;  %v2382_v54 = vld [vmem:[%s2786_s0 + $0x148] ss:$52 sps:$4 sm:$0xff]   ;;  %v2385_v57 = vld [vmem:[%s2470_s21 + $0x2f0] sm:$0xff]  }
  0x40   : > { %2064 = vmatpush3.bf16.msra.mxu0 %v2306_v55  ;;  %v2383_v55 = vld [vmem:[%s2786_s0 + $0x150] ss:$52 sps:$4 sm:$0xff]  }
  0x41   : > { %2104 = vmatpush3.bf16.msra.mxu1 %v2307_v56  ;;  %2065 = vmatprep.subr.bf16.mxu0 %v2314_v60  ;;  %v2384_v56 = vld [vmem:[%s2470_s21 + $0x270] sm:$0xff]   ;;  %v2388_v60 = vld [vmem:[%s2470_s21 + $0x278] sm:$0xff]  }
  0x42   : > { %2105 = vmatprep.subr.bf16.mxu1 %v2315_v61  ;;  %v2389_v61 = vld [vmem:[%s2470_s21 + $0x2f8] sm:$0xff]  }
  0x43   : > { %1342 = vmatmul.mubr.bf16.gmra.mrb[8].mxu0 %v2312_v58  ;;  %v2386_v58 = vld [vmem:[%s2470_s21 + $0x230] sm:$0xff]  }
  0x44   : > { %1407 = vmatmul.mubr.bf16.gmra.mrb[8].mxu1 %v2313_v59  ;;  %2066 = vmatpush3.bf16.msra.mxu0 %v2316_v62  ;;  %v2387_v59 = vld [vmem:[%s2470_s21 + $0x2b0] sm:$0xff]   ;;  %v2390_v62 = vld [vmem:[%s2470_s21 + $0x238] sm:$0xff]  }
  0x45   : > { %2106 = vmatpush3.bf16.msra.mxu1 %v2317_v63  ;;  %2067 = vmatprep.subr.bf16.mxu0 %v2318_v0  ;;  %v2391_v63 = vld [vmem:[%s2470_s21 + $0x2b8] sm:$0xff]   ;;  %v2392_v0 = vld [vmem:[%s2786_s0 + $0x20] ss:$52 sps:$4 sm:$0xff]  }
  0x46   : > { %2107 = vmatprep.subr.bf16.mxu1 %v2319_v1  ;;  %1349 = vmatprep.mubr.bf16.mxu0 %v2322_v4  ;;  %v2394_v1 = vld [vmem:[%s2786_s0 + $0x24] ss:$52 sps:$4 sm:$0xff]  }
  0x47   : > { %1414 = vmatprep.mubr.bf16.mxu1 %v2324_v5  ;;  %v2398_v4 = vld [vmem:[%s2470_s21 + $0x300] sm:$0xff]  }
  0x48   : > { %2068 = vmatpush3.bf16.msra.mxu0 %v2320_v2  ;;  %v2395_v2 = vld [vmem:[%s2786_s0 + $0x28] ss:$52 sps:$4 sm:$0xff]   ;;  %v2399_v5 = vld [vmem:[%s2786_s0 + $0x8c] ss:$52 sps:$4 sm:$0xff]  }
  0x49   : > { %2108 = vmatpush3.bf16.msra.mxu1 %v2321_v3  ;;  %2069 = vmatprep.subr.bf16.mxu0 %v2328_v8  ;;  %v2397_v3 = vld [vmem:[%s2786_s0 + $0x2c] ss:$52 sps:$4 sm:$0xff]   ;;  %v2404_v8 = vld [vmem:[%s2786_s0 + $0x90] ss:$52 sps:$4 sm:$0xff]  }
  0x4a   : > { %2109 = vmatprep.subr.bf16.mxu1 %v2329_v9  ;;  %v2405_v9 = vld [vmem:[%s2786_s0 + $0xf4] ss:$52 sps:$4 sm:$0xff]  }
  0x4b   : > { %1350 = vmatmul.mubr.bf16.gmra.mrb[12].mxu0 %v2326_v6  ;;  %v2401_v6 = vld [vmem:[%s2786_s0 + $0x94] ss:$52 sps:$4 sm:$0xff]  }
  0x4c   : > { %1415 = vmatmul.mubr.bf16.gmra.mrb[12].mxu1 %v2327_v7  ;;  %2070 = vmatpush3.bf16.msra.mxu0 %v2330_v10  ;;  %v2403_v7 = vld [vmem:[%s2786_s0 + $0x88] ss:$52 sps:$4 sm:$0xff]  }
  0x4d   : > { %2110 = vmatpush3.bf16.msra.mxu1 %v2331_v11  ;;  %2071 = vmatprep.subr.bf16.mxu0 %v2332_v12  ;;  %v2407_v10 = vld [vmem:[%s2786_s0 + $0xfc] ss:$52 sps:$4 sm:$0xff]   ;;  %v2411_v11 = vld [vmem:[%s2470_s21 + $0x308] sm:$0xff]  }
  0x4e   : > { %2111 = vmatprep.subr.bf16.mxu1 %v2333_v13  ;;  %1455 = vmatprep.mubr.bf16.mxu0 %v2338_v17  ;;  %v2409_v12 = vld [vmem:[%s2786_s0 + $0xf0] ss:$52 sps:$4 sm:$0xff]   ;;  %v2410_v13 = vld [vmem:[%s2786_s0 + $0xf8] ss:$52 sps:$4 sm:$0xff]   ;;  %v2417_v17 = vld [vmem:[%s2786_s0 + $0x160] ss:$52 sps:$4 sm:$0xff]  }
  0x4f   : > { %1520 = vmatprep.mubr.bf16.mxu1 %v2341_v19  ;;  %v2419_v19 = vld [vmem:[%s2786_s0 + $0x100] ss:$52 sps:$4 sm:$0xff]  }
  0x50   : > { %2072 = vmatpush3.bf16.msra.mxu0 %v2334_v14  ;;  %v2412_v14 = vld [vmem:[%s2786_s0 + $0x15c] ss:$52 sps:$4 sm:$0xff]  }
  0x51   : > { %2112 = vmatpush3.bf16.msra.mxu1 %v2335_v15  ;;  %2137 = vmatprep.subr.bf16.mxu0 %v2342_v20  ;;  %v2414_v15 = vld [vmem:[%s2786_s0 + $0x164] ss:$52 sps:$4 sm:$0xff]  }
  0x52   : > { %2177 = vmatprep.subr.bf16.mxu1 %v2343_v21  ;;  %v2420_v20 = vld [vmem:[%s2786_s0 + $0x98] ss:$52 sps:$4 sm:$0xff]   ;;  %v2421_v21 = vld [vmem:[%s2786_s0 + $0x168] ss:$52 sps:$4 sm:$0xff]  }
  0x53   : > { %1456 = vmatmul.mubr.bf16.vlgmr.msra.gmra.mrb[16].mxu0 %v2336_v16  ;;  %v2416_v16 = vld [vmem:[%s2786_s0 + $0x158] ss:$52 sps:$4 sm:$0xff]  }
  0x54   : > { %1521 = vmatmul.mubr.bf16.vlgmr.msra.gmra.mrb[16].mxu1 %v2339_v18  ;;  %2138 = vmatpush3.bf16.msra.mxu0 %v2344_v22  ;;  %v2418_v18 = vld [vmem:[%s2786_s0 + $0x30] ss:$52 sps:$4 sm:$0xff]  }
  0x55   : > { %2178 = vmatpush3.bf16.msra.mxu1 %v2345_v23  ;;  %2139 = vmatprep.subr.bf16.mxu0 %v2346_v24  ;;  %v424_v24 = vld [vmem:[%s2788_s2] sm:$0xff] }
  0x56   : > { %2179 = vmatprep.subr.bf16.mxu1 %v2347_v25  ;;  %1463 = vmatprep.mubr.bf16.mxu0 %v2350_v28 }
  0x57   : > { %1528 = vmatprep.mubr.bf16.mxu1 %v2352_v29 }
  0x58   : > { %2140 = vmatpush3.bf16.msra.mxu0 %v2348_v26 }
  0x59   : > { %2180 = vmatpush3.bf16.msra.mxu1 %v2349_v27  ;;  %2141 = vmatprep.subr.bf16.mxu0 %v2356_v32 }
  0x5a   : > { %2181 = vmatprep.subr.bf16.mxu1 %v2357_v33 }
  0x5b   : > { %1464 = vmatmul.mubr.bf16.gmra.mrb[20].mxu0 %v2354_v30 }
  0x5c   : > { %1529 = vmatmul.mubr.bf16.gmra.mrb[20].mxu1 %v2355_v31  ;;  %2142 = vmatpush3.bf16.msra.mxu0 %v2358_v34  ;;  %v425_v31 = vld [vmem:[%s2788_s2 + $0x8] sm:$0xff] }
  0x5d   : > { %2182 = vmatpush3.bf16.msra.mxu1 %v2359_v35  ;;  %2143 = vmatprep.subr.bf16.mxu0 %v2360_v36 }
  0x5e   : > { %2183 = vmatprep.subr.bf16.mxu1 %v2361_v37  ;;  %1471 = vmatprep.mubr.bf16.mxu0 %v2364_v40 }
  0x5f   : > { %1536 = vmatprep.mubr.bf16.mxu1 %v2366_v41 }
  0x60   : > { %2144 = vmatpush3.bf16.msra.mxu0 %v2362_v38 }
  0x61   : > { %2184 = vmatpush3.bf16.msra.mxu1 %v2363_v39  ;;  %2145 = vmatprep.subr.bf16.mxu0 %v2370_v44 }
  0x62   : > { %2185 = vmatprep.subr.bf16.mxu1 %v2371_v45 }
  0x63   : > { %1472 = vmatmul.mubr.bf16.gmra.mrb[24].mxu0 %v2368_v42  ;;  %v426_v42 = vld [vmem:[%s2788_s2 + $0x10] sm:$0xff] }
  0x64   : > { %1537 = vmatmul.mubr.bf16.gmra.mrb[24].mxu1 %v2369_v43  ;;  %2146 = vmatpush3.bf16.msra.mxu0 %v2372_v46 }
  0x65   : > { %2186 = vmatpush3.bf16.msra.mxu1 %v2373_v47  ;;  %2147 = vmatprep.subr.bf16.mxu0 %v2374_v48 }
  0x66   : > { %2187 = vmatprep.subr.bf16.mxu1 %v2375_v49  ;;  %1479 = vmatprep.mubr.bf16.mxu0 %v2378_v52  ;;  %v427_v49 = vld [vmem:[%s2788_s2 + $0x18] sm:$0xff] }
  0x67   : > { %1544 = vmatprep.mubr.bf16.mxu1 %v2380_v53 }
  0x68   : > { %2148 = vmatpush3.bf16.msra.mxu0 %v2376_v50 }
  0x69   : > { %2188 = vmatpush3.bf16.msra.mxu1 %v2377_v51  ;;  %2149 = vmatprep.subr.bf16.mxu0 %v2384_v56 }
  0x6a   : > { %2189 = vmatprep.subr.bf16.mxu1 %v2385_v57 }
  0x6b   : > { %1480 = vmatmul.mubr.bf16.gmra.mrb[28].mxu0 %v2382_v54 }
  0x6c   : > { %1545 = vmatmul.mubr.bf16.gmra.mrb[28].mxu1 %v2383_v55  ;;  %2150 = vmatpush3.bf16.msra.mxu0 %v2386_v58 }
  0x6d   : > { %2190 = vmatpush3.bf16.msra.mxu1 %v2387_v59  ;;  %2151 = vmatprep.subr.bf16.mxu0 %v2388_v60  ;;  %v428_v60 = vld [vmem:[%s2788_s2 + $0x20] sm:$0xff] }
  0x6e   : > { %2191 = vmatprep.subr.bf16.mxu1 %v2389_v61  ;;  %1585 = vmatprep.mubr.bf16.mxu0 %v2394_v1 }
  0x6f   : > { %1650 = vmatprep.mubr.bf16.mxu1 %v2397_v3  ;;  %v429_v3 = vld [vmem:[%s2788_s2 + $0x28] sm:$0xff] }
  0x70   : > { %2152 = vmatpush3.bf16.msra.mxu0 %v2390_v62 }
  0x71   : > { %2192 = vmatpush3.bf16.msra.mxu1 %v2391_v63  ;;  %2223 = vmatprep.subr.bf16.mxu0 %v2398_v4 }
  0x72   : > { %2235 = vmatprep.subr.bf16.mxu1 %v2398_v4 }
  0x73   : > { %1586 = vmatmul.mubr.bf16.vlgmr.msra.gmra.mrb[32].mxu0 %v2392_v0 }
  0x74   : > { %1651 = vmatmul.mubr.bf16.vlgmr.msra.gmra.mrb[32].mxu1 %v2395_v2  ;;  %2224 = vmatpush3.bf16.msra.mxu0 %v2398_v4 }
  0x75   : > { %2237 = vmatpush3.bf16.msra.mxu1 %v2398_v4  ;;  %1593 = vmatprep.mubr.bf16.mxu0 %v2399_v5 }
  0x76   : > { %1658 = vmatprep.mubr.bf16.mxu1 %v2401_v6  ;;  %2225 = vmatprep.subr.bf16.mxu0 %v2411_v11 }
  0x77   : > { %2236 = vmatprep.subr.bf16.mxu1 %v2411_v11 }
  0x78   : > { %2226 = vmatpush3.bf16.msra.mxu0 %v2411_v11 }
  0x79   : > { %2238 = vmatpush3.bf16.msra.mxu1 %v2411_v11 }
  0x7b   : > { %1594 = vmatmul.mubr.bf16.gmra.mrb[36].mxu0 %v2403_v7 }
  0x7c   : > { %1659 = vmatmul.mubr.bf16.gmra.mrb[36].mxu1 %v2404_v8  ;;  %1601 = vmatprep.mubr.bf16.mxu0 %v2405_v9 }
  0x7d   : > { %1666 = vmatprep.mubr.bf16.mxu1 %v2407_v10 }
  0x83   : > { %1602 = vmatmul.mubr.bf16.gmra.mrb[40].mxu0 %v2409_v12 }
  0x84   : > { %1667 = vmatmul.mubr.bf16.gmra.mrb[40].mxu1 %v2410_v13  ;;  %1609 = vmatprep.mubr.bf16.mxu0 %v2412_v14  ;;  %v430_v14 = vld [vmem:[%s2788_s2 + $0x30] sm:$0xff] }
  0x85   : > { %1674 = vmatprep.mubr.bf16.mxu1 %v2414_v15 }
  0x8b   : > { %1610 = vmatmul.mubr.bf16.gmra.mrb[44].mxu0 %v2416_v16 }
  0x8c   : > { %1675 = vmatmul.mubr.bf16.gmra.mrb[44].mxu1 %v2417_v17  ;;  %2227 = vmatprep.mubr.msk.bf16.mxu0 %vm1280_vm0, %v2418_v18 }
  0x8d   : > { %2231 = vmatprep.mubr.msk.bf16.mxu1 %vm1280_vm0, %v2419_v19 }
  0x93   : > { %2228 = vmatmul.mubr.msk.bf16.vlgmr.msra.gmra.mrb[48].mxu0 %vm1280_vm0, %v2420_v20 }
  0x94   : > { %2232 = vmatmul.mubr.msk.bf16.vlgmr.msra.gmra.mrb[48].mxu1 %vm1280_vm0, %v2421_v21  ;;  %v431_v21 = vld [vmem:[%s2788_s2 + $0x38] sm:$0xff] }
 0x106   : > { %v1993_v22 = vpop.f32.mrb[0].mxu0 }
 0x107   : > { %v2033_v23 = vpop.f32.mrb[0].mxu1  ;;  %v1994_v25 = vpop.f32.mrb[1].mxu0 }
 0x108   : > { %v1995_v26 = vadd.f32 %v1994_v25, %v1993_v22  ;;  %v2034_v27 = vpop.f32.mrb[1].mxu1  ;;  %v1996_v28 = vpop.f32.mrb[2].mxu0 }
 0x109   : > { %v2035_v29 = vadd.f32 %v2034_v27, %v2033_v23  ;;  %v2036_v30 = vpop.f32.mrb[2].mxu1  ;;  %v1997_v32 = vpop.f32.mrb[3].mxu0 }
 0x10a   : > { %v1328_v33 = vadd.f32 %v1995_v26, %v424_v24  ;;  %v1998_v34 = vadd.f32 %v1997_v32, %v1996_v28  ;;  %v2037_v35 = vpop.f32.mrb[3].mxu1 }
 0x10b   : > { %v2038_v36 = vadd.f32 %v2037_v35, %v2036_v30 }
 0x10c   : > { %v2726_v37 = vadd.f32 %v2035_v29, %v1328_v33  ;;  %v1331_v38 = vadd.f32 %v1998_v34, %v425_v31 }
 0x10e   : > { %v2728_v39 = vadd.f32 %v2038_v36, %v1331_v38  ;;  %v1999_v40 = vpop.f32.mrb[4].mxu0 }
 0x10f   : > { %v2039_v41 = vpop.f32.mrb[4].mxu1  ;;  %v2000_v43 = vpop.f32.mrb[5].mxu0 }
 0x110   : > { %v2001_v44 = vadd.f32 %v2000_v43, %v1999_v40  ;;  %v2040_v45 = vpop.f32.mrb[5].mxu1  ;;  %v2002_v46 = vpop.f32.mrb[6].mxu0 }
 0x111   : > { %v2041_v47 = vadd.f32 %v2040_v45, %v2039_v41  ;;  %v2042_v48 = vpop.f32.mrb[6].mxu1  ;;  %v2003_v50 = vpop.f32.mrb[7].mxu0 }
 0x112   : > { %v1336_v51 = vadd.f32 %v2001_v44, %v426_v42  ;;  %v2004_v52 = vadd.f32 %v2003_v50, %v2002_v46  ;;  %v2043_v53 = vpop.f32.mrb[7].mxu1 }
 0x113   : > { %v2044_v54 = vadd.f32 %v2043_v53, %v2042_v48 }
 0x114   : > { %v2736_v55 = vadd.f32 %v2041_v47, %v1336_v51  ;;  %v1339_v56 = vadd.f32 %v2004_v52, %v427_v49 }
 0x116   : > { %v2738_v57 = vadd.f32 %v2044_v54, %v1339_v56  ;;  %v2005_v58 = vpop.f32.mrb[8].mxu0 }
 0x117   : > { %v2045_v59 = vpop.f32.mrb[8].mxu1  ;;  %v2006_v61 = vpop.f32.mrb[9].mxu0 }
 0x118   : > { %v2007_v62 = vadd.f32 %v2006_v61, %v2005_v58  ;;  %v2046_v63 = vpop.f32.mrb[9].mxu1  ;;  %v2008_v0 = vpop.f32.mrb[10].mxu0 }
 0x119   : > { %v2047_v1 = vadd.f32 %v2046_v63, %v2045_v59  ;;  %v2048_v2 = vpop.f32.mrb[10].mxu1  ;;  %v2009_v4 = vpop.f32.mrb[11].mxu0 }
 0x11a   : > { %v1344_v5 = vadd.f32 %v2007_v62, %v428_v60  ;;  %v2010_v6 = vadd.f32 %v2009_v4, %v2008_v0  ;;  %v2049_v7 = vpop.f32.mrb[11].mxu1 }
 0x11b   : > { %v2050_v8 = vadd.f32 %v2049_v7, %v2048_v2 }
 0x11c   : > { %v2746_v9 = vadd.f32 %v2047_v1, %v1344_v5  ;;  %v1347_v10 = vadd.f32 %v2010_v6, %v429_v3 }
 0x11e   : > { %v2748_v11 = vadd.f32 %v2050_v8, %v1347_v10  ;;  %v2011_v12 = vpop.f32.mrb[12].mxu0 }
 0x11f   : > { %v2051_v13 = vpop.f32.mrb[12].mxu1  ;;  %v2012_v15 = vpop.f32.mrb[13].mxu0 }
 0x120   : > { %v2052_v16 = vpop.f32.mrb[13].mxu1  ;;  %v2013_v17 = vadd.f32 %v2012_v15, %v2011_v12  ;;  %v2014_v19 = vpop.f32.mrb[14].mxu0 }
 0x121   : > { %v2053_v18 = vadd.f32 %v2052_v16, %v2051_v13  ;;  %v2054_v20 = vpop.f32.mrb[14].mxu1  ;;  %v2015_v22 = vpop.f32.mrb[15].mxu0 }
 0x122   : > { %v2055_v23 = vpop.f32.mrb[15].mxu1  ;;  %v1352_v24 = vadd.f32 %v2013_v17, %v430_v14  ;;  %v2016_v25 = vadd.f32 %v2015_v22, %v2014_v19 }
 0x123   : > { %v2056_v26 = vadd.f32 %v2055_v23, %v2054_v20 }
 0x124   : > { %v1417_v27 = vadd.f32 %v2053_v18, %v1352_v24  ;;  %v1355_v28 = vadd.f32 %v2016_v25, %v431_v21 }
 0x126   : > { %v2756_v29 = vadd.f32 %v2056_v26, %v1355_v28  ;;  %v2073_v30 = vpop.f32.mrb[16].mxu0 }
 0x127   : > { %v2074_v31 = vpop.f32.mrb[17].mxu0  ;;  %v2113_v32 = vpop.f32.mrb[16].mxu1 }
 0x128   : > { %v2075_v33 = vadd.f32 %v2074_v31, %v2073_v30  ;;  %v2076_v34 = vpop.f32.mrb[18].mxu0  ;;  %v2114_v35 = vpop.f32.mrb[17].mxu1 }
 0x129   : > { %v2077_v36 = vpop.f32.mrb[19].mxu0  ;;  %v2115_v40 = vadd.f32 %v2114_v35, %v2113_v32  ;;  %v2116_v41 = vpop.f32.mrb[18].mxu1 }
 0x12a   : > { %v1458_v38 = vadd.f32 %v2075_v33, %v2726_v37  ;;  %v2078_v42 = vadd.f32 %v2077_v36, %v2076_v34  ;;  %v2117_v43 = vpop.f32.mrb[19].mxu1 }
 0x12b   : > { %v2118_v46 = vadd.f32 %v2117_v43, %v2116_v41 }
 0x12c   : > { %v1523_v44 = vadd.f32 %v2115_v40, %v1458_v38  ;;  %v1461_v45 = vadd.f32 %v2078_v42, %v2728_v39 }
 0x12e   : > { %v1526_v47 = vadd.f32 %v2118_v46, %v1461_v45  ;;  %v2079_v48 = vpop.f32.mrb[20].mxu0 }
 0x12f   : > { %v2119_v49 = vpop.f32.mrb[20].mxu1  ;;  %v2080_v50 = vpop.f32.mrb[21].mxu0 }
 0x130   : > { %v2081_v51 = vadd.f32 %v2080_v50, %v2079_v48  ;;  %v2120_v52 = vpop.f32.mrb[21].mxu1  ;;  %v2082_v53 = vpop.f32.mrb[22].mxu0 }
 0x131   : > { %v2121_v54 = vadd.f32 %v2120_v52, %v2119_v49  ;;  %v2122_v56 = vpop.f32.mrb[22].mxu1  ;;  %v2083_v58 = vpop.f32.mrb[23].mxu0 }
 0x132   : > { %v1466_v37 = vadd.f32 %v2081_v51, %v2736_v55  ;;  %v2084_v59 = vadd.f32 %v2083_v58, %v2082_v53  ;;  %v2123_v60 = vpop.f32.mrb[23].mxu1 }
 0x133   : > { %v2124_v61 = vadd.f32 %v2123_v60, %v2122_v56 }
 0x134   : > { %v1531_v62 = vadd.f32 %v2121_v54, %v1466_v37  ;;  %v1469_v63 = vadd.f32 %v2084_v59, %v2738_v57 }
 0x136   : > { %v1534_v39 = vadd.f32 %v2124_v61, %v1469_v63  ;;  %v2085_v0 = vpop.f32.mrb[24].mxu0 }
 0x137   : > { %v2125_v1 = vpop.f32.mrb[24].mxu1  ;;  %v2086_v2 = vpop.f32.mrb[25].mxu0 }
 0x138   : > { %v2126_v3 = vpop.f32.mrb[25].mxu1  ;;  %v2087_v4 = vadd.f32 %v2086_v2, %v2085_v0  ;;  %v2088_v6 = vpop.f32.mrb[26].mxu0 }
 0x139   : > { %v2127_v5 = vadd.f32 %v2126_v3, %v2125_v1  ;;  %v2128_v7 = vpop.f32.mrb[26].mxu1  ;;  %v2089_v8 = vpop.f32.mrb[27].mxu0 }
 0x13a   : > { %v2129_v10 = vpop.f32.mrb[27].mxu1  ;;  %v1474_v12 = vadd.f32 %v2087_v4, %v2746_v9  ;;  %v2090_v55 = vadd.f32 %v2089_v8, %v2088_v6 }
 0x13b   : > { %v2130_v13 = vadd.f32 %v2129_v10, %v2128_v7 }
 0x13c   : > { %v1539_v14 = vadd.f32 %v2127_v5, %v1474_v12  ;;  %v1477_v15 = vadd.f32 %v2090_v55, %v2748_v11 }
 0x13e   : > { %v1542_v16 = vadd.f32 %v2130_v13, %v1477_v15  ;;  %v2091_v57 = vpop.f32.mrb[28].mxu0 }
 0x13f   : > { %v2131_v17 = vpop.f32.mrb[28].mxu1  ;;  %v2092_v18 = vpop.f32.mrb[29].mxu0 }
 0x140   : > { %v2093_v19 = vadd.f32 %v2092_v18, %v2091_v57  ;;  %v2132_v20 = vpop.f32.mrb[29].mxu1  ;;  %v2094_v21 = vpop.f32.mrb[30].mxu0 }
 0x141   : > { %v2133_v22 = vadd.f32 %v2132_v20, %v2131_v17  ;;  %v2134_v23 = vpop.f32.mrb[30].mxu1  ;;  %v2095_v24 = vpop.f32.mrb[31].mxu0 }
 0x142   : > { %v1482_v25 = vadd.f32 %v2093_v19, %v1417_v27  ;;  %v2096_v26 = vadd.f32 %v2095_v24, %v2094_v21  ;;  %v2135_v28 = vpop.f32.mrb[31].mxu1 }
 0x143   : > { %v2136_v30 = vadd.f32 %v2135_v28, %v2134_v23 }
 0x144   : > { %v1547_v9 = vadd.f32 %v2133_v22, %v1482_v25  ;;  %v1485_v31 = vadd.f32 %v2096_v26, %v2756_v29 }
 0x146   : > { %v2765_v32 = vadd.f32 %v2136_v30, %v1485_v31  ;;  %v2153_v11 = vpop.f32.mrb[32].mxu0 }
 0x147   : > { %v2193_v33 = vpop.f32.mrb[32].mxu1  ;;  %v2154_v34 = vpop.f32.mrb[33].mxu0 }
 0x148   : > { %v2155_v35 = vadd.f32 %v2154_v34, %v2153_v11  ;;  %v2194_v36 = vpop.f32.mrb[33].mxu1  ;;  %v2156_v38 = vpop.f32.mrb[34].mxu0 }
 0x149   : > { %v2195_v40 = vadd.f32 %v2194_v36, %v2193_v33  ;;  %v2196_v41 = vpop.f32.mrb[34].mxu1  ;;  %v2157_v42 = vpop.f32.mrb[35].mxu0 }
 0x14a   : > { %v1588_v43 = vadd.f32 %v2155_v35, %v1523_v44  ;;  %v2158_v45 = vadd.f32 %v2157_v42, %v2156_v38  ;;  %v2197_v27 = vpop.f32.mrb[35].mxu1 }
 0x14b   : > { %v2198_v46 = vadd.f32 %v2197_v27, %v2196_v41 }
 0x14c   : > { %v1591_v48 = vadd.f32 %v2158_v45, %v1526_v47  ;;  %v1653_v49 = vadd.f32 %v2195_v40, %v1588_v43 }
 0x14e   : > { %v2159_v50 = vpop.f32.mrb[36].mxu0  ;;  %v2767_v51 = vadd.f32 %v2198_v46, %v1591_v48 }
 0x14f   : > { %v2199_v29 = vpop.f32.mrb[36].mxu1  ;;  %v2160_v52 = vpop.f32.mrb[37].mxu0 }
 0x150   : > { %v2161_v53 = vadd.f32 %v2160_v52, %v2159_v50  ;;  %v2200_v54 = vpop.f32.mrb[37].mxu1  ;;  %v2162_v56 = vpop.f32.mrb[38].mxu0 }
 0x151   : > { %v2201_v58 = vadd.f32 %v2200_v54, %v2199_v29  ;;  %v2202_v37 = vpop.f32.mrb[38].mxu1  ;;  %v2163_v59 = vpop.f32.mrb[39].mxu0 }
 0x152   : > { %v1596_v60 = vadd.f32 %v2161_v53, %v1531_v62  ;;  %v2164_v61 = vadd.f32 %v2163_v59, %v2162_v56  ;;  %v2203_v63 = vpop.f32.mrb[39].mxu1 }
 0x153   : > { %v2204_v44 = vadd.f32 %v2203_v63, %v2202_v37 }
 0x154   : > { %v1599_v0 = vadd.f32 %v2164_v61, %v1534_v39  ;;  %v1661_v1 = vadd.f32 %v2201_v58, %v1596_v60 }
 0x156   : > { %v2165_v2 = vpop.f32.mrb[40].mxu0  ;;  %v1664_v47 = vadd.f32 %v2204_v44, %v1599_v0 }
 0x157   : > { %v2205_v3 = vpop.f32.mrb[40].mxu1  ;;  %v2166_v4 = vpop.f32.mrb[41].mxu0 }
 0x158   : > { %v2167_v5 = vadd.f32 %v2166_v4, %v2165_v2  ;;  %v2206_v6 = vpop.f32.mrb[41].mxu1  ;;  %v2168_v7 = vpop.f32.mrb[42].mxu0 }
 0x159   : > { %v2207_v8 = vadd.f32 %v2206_v6, %v2205_v3  ;;  %v2208_v10 = vpop.f32.mrb[42].mxu1  ;;  %v2169_v12 = vpop.f32.mrb[43].mxu0 }
 0x15a   : > { %v1604_v55 = vadd.f32 %v2167_v5, %v1539_v14  ;;  %v2170_v13 = vadd.f32 %v2169_v12, %v2168_v7  ;;  %v2209_v15 = vpop.f32.mrb[43].mxu1 }
 0x15b   : > { %v2210_v57 = vadd.f32 %v2209_v15, %v2208_v10 }
 0x15c   : > { %v1607_v62 = vadd.f32 %v2170_v13, %v1542_v16  ;;  %v1669_v17 = vadd.f32 %v2207_v8, %v1604_v55 }
 0x15e   : > { %v2171_v18 = vpop.f32.mrb[44].mxu0  ;;  %v1672_v39 = vadd.f32 %v2210_v57, %v1607_v62 }
 0x15f   : > { %v2211_v19 = vpop.f32.mrb[44].mxu1  ;;  %v2172_v20 = vpop.f32.mrb[45].mxu0 }
 0x160   : > { %v2173_v21 = vadd.f32 %v2172_v20, %v2171_v18  ;;  %v2212_v22 = vpop.f32.mrb[45].mxu1  ;;  %v2174_v23 = vpop.f32.mrb[46].mxu0 }
 0x161   : > { %v2213_v24 = vadd.f32 %v2212_v22, %v2211_v19  ;;  %v2214_v25 = vpop.f32.mrb[46].mxu1  ;;  %v2175_v26 = vpop.f32.mrb[47].mxu0 }
 0x162   : > { %v1612_v28 = vadd.f32 %v2173_v21, %v1547_v9  ;;  %v2176_v30 = vadd.f32 %v2175_v26, %v2174_v23  ;;  %v2215_v31 = vpop.f32.mrb[47].mxu1 }
 0x163   : > { %v2216_v14 = vadd.f32 %v2215_v31, %v2214_v25 }
 0x164   : > { %v1615_v11 = vadd.f32 %v2176_v30, %v2765_v32  ;;  %v1677_v16 = vadd.f32 %v2213_v24, %v1612_v28 }
 0x166   : > { %v2229_v33 = vpop.f32.mrb[48].mxu0  ;;  %v1680_v34 = vadd.f32 %v2216_v14, %v1615_v11 }
 0x167   : > { %v1726_v35 = vadd.f32 %v2229_v33, %v1661_v1  ;;  %v2233_v36 = vpop.f32.mrb[48].mxu1  ;;  %v1717_v38 = vpop.f32.mrb[49].mxu0 }
 0x168   : > { %v1742_v40 = vadd.f32 %v2233_v36, %v1677_v16  ;;  %v1718_v41 = vadd.f32 %v1717_v38, %v1653_v49  ;;  %v1733_v9 = vpop.f32.mrb[49].mxu1  ;;  %v2230_v42 = vpop.f32.mrb[50].mxu0 }
 0x169   : > { %1751 = vst.msk [vmem:[%s170_s18 + $0x10] sm:$0xff] %vm1748_vm1, %v1726_v35  ;;  %v1734_v43 = vadd.f32 %v1733_v9, %v1669_v17  ;;  %v1729_v45 = vadd.f32 %v2230_v42, %v1664_v47  ;;  %v2234_v32 = vpop.f32.mrb[50].mxu1  ;;  %v1720_v27 = vpop.f32.mrb[51].mxu0 }
 0x16a   : > { %1755 = vst.msk [vmem:[%s170_s18 + $0x30] sm:$0xff] %vm1748_vm1, %v1742_v40  ;;  %1749 = vst.msk [vmem:[%s170_s18] sm:$0xff] %vm1748_vm1, %v1718_v41  ;;  %v1745_v46 = vadd.f32 %v2234_v32, %v1680_v34  ;;  %v1721_v48 = vadd.f32 %v1720_v27, %v2767_v51  ;;  %v1736_v50 = vpop.f32.mrb[51].mxu1 }
 0x16b   : > { %1753 = vst.msk [vmem:[%s170_s18 + $0x20] sm:$0xff] %vm1748_vm1, %v1734_v43  ;;  %1752 = vst.msk [vmem:[%s170_s18 + $0x18] sm:$0xff] %vm1748_vm1, %v1729_v45  ;;  %v1737_v49 = vadd.f32 %v1736_v50, %v1672_v39 }
 0x16c   : > { %1756 = vst.msk [vmem:[%s170_s18 + $0x38] sm:$0xff] %vm1748_vm1, %v1745_v46  ;;  %1750 = vst.msk [vmem:[%s170_s18 + $0x8] sm:$0xff] %vm1748_vm1, %v1721_v48 }
 0x16d   : > { %1754 = vst.msk [vmem:[%s170_s18 + $0x28] sm:$0xff] %vm1748_vm1, %v1737_v49 }
 0x16e PF: > { %s13_s12 = sadd.s32 1, %s2428_s12  }
 0x16f   : > { %p10_p4 = scmp.ge.s32.totalorder %s13_s12, 4  }
 0x171   :  { %12 = sbr.rel (!%p10_p4) target bundleno = 1 (0x1), region = 62 }

// kernel: autoencoder_forward.9
= control target key start
LH: loop header
LB: loop body
LE: loop exit
PB: predicated region body
PF: predicated region fallthrough
CT: control target
= control target key end

     0   :  { %s3698_s12 = smov 0   ;;  %s4079_s0 = inlined_call_operand.vmem [shape: bf16[32,3136], index: 0, kind: input, shape index: {}]   ;;  %s4080_s1 = inlined_call_operand.vmem [shape: bf16[2,3136,49], index: 1, kind: input, shape index: {}]   ;;  %s4081_s2 = inlined_call_operand.vmem [shape: f32[32,1], index: 2, kind: input, shape index: {}]   ;;  %s4082_s3 = inlined_call_operand.vmem [shape: f32[2,32,49], index: 3, kind: output, shape index: {}]  }
   0x1 LB: > { %s2774_s13 = sadd.s32 4294967295, %s3675_s12   ;;  %p2778_p0 = scmp.ge.s32.totalorder %s3675_s12, 1  ;;  %s3675_s12 = sphi %s3698_s12, %s13_s12  }
   0x2   : > { %p137_p1 = scmp.lt.s32.totalorder %s3675_s12, 3 }
   0x4   : > { %p138_p2 = pnand %p2778_p0, %p137_p1 }
   0x5   : > { %p161_p3 = scmp.lt.s32.totalorder (!%p138_p2), %s2774_s13, 1  ;;  %v3432_v0 = vld [vmem:[%s4079_s0 + $0x4] ss:$100 sps:$4 sm:$0xff] (!%p138_p2)   ;;  %v3437_v1 = vld [vmem:[%s4079_s0 + $0xc] ss:$100 sps:$4 sm:$0xff] (!%p138_p2)   ;;  %v3677_v2 = vmov (!%p138_p2), 0  }
   0x6   : > { %141 = sbr.rel (%p138_p2) target bundleno = 446 (0x1be), region = 32  ;;  %2105 = vmatprep.mubr.bf16.mxu0 (!%p138_p2), %v3432_v0  ;;  %2154 = vmatprep.mubr.bf16.mxu1 (!%p138_p2), %v3437_v1  ;;  %v3430_v32 = vld [vmem:[%s4079_s0] ss:$100 sps:$4 sm:$0xff] (!%p138_p2)   ;;  %v3458_v34 = vld [vmem:[%s4079_s0 + $0xcc] ss:$100 sps:$4 sm:$0xff] (!%p138_p2)   ;;  %vm2066_vm0 = vcmask (!%p138_p2), 523264  }
   0x7   : > { %3397 = vset.pattern.permute.xlu0 (!%p138_p2), %v3677_v2  ;;  %3398 = vset.pattern.permute.xlu1 (!%p138_p2), %v3677_v2  ;;  %v3435_v36 = vld [vmem:[%s4079_s0 + $0x8] ss:$100 sps:$4 sm:$0xff] (!%p138_p2)   ;;  %v3463_v38 = vld [vmem:[%s4079_s0 + $0xd4] ss:$100 sps:$4 sm:$0xff] (!%p138_p2)   ;;  %vm2714_vm1 = vcmask (!%p138_p2), 400384  }
   0x8   : > { %v3461_v44 = vld [vmem:[%s4079_s0 + $0xc8] ss:$100 sps:$4 sm:$0xff] (!%p138_p2)   ;;  %v3476_v46 = vld [vmem:[%s4079_s0 + $0x14] ss:$100 sps:$4 sm:$0xff] (!%p138_p2)  }
   0x9   : > { %v3466_v48 = vld [vmem:[%s4079_s0 + $0xd0] ss:$100 sps:$4 sm:$0xff] (!%p138_p2)  }
   0xd   : > { %s4084_s13 = smov (!%p161_p3, %s2774_s13), 1 }
   0xe   : > { %s3387_s18 = smul.u32 1568, %s4084_s13 }
  0x10   : > { %s3718_s21 = scalar_lea.vmem %s4080_s1, %s3387_s18 }
  0x11   : > { %v3399_v3 = vld [vmem:[%s3718_s21 + $0x40] sm:$0xff]   ;;  %v3403_v7 = vld [vmem:[%s3718_s21 + $0x48] sm:$0xff]   ;;  %v3407_v11 = vld [vmem:[%s3718_s21 + $0x50] sm:$0xff]  }
  0x12   : > { %v3400_v4 = vld [vmem:[%s3718_s21] sm:$0xff]   ;;  %3033 = vmatprep.subr.bf16.mxu0 %v3399_v3  ;;  %v3404_v8 = vld [vmem:[%s3718_s21 + $0x8] sm:$0xff]   ;;  %v3408_v12 = vld [vmem:[%s3718_s21 + $0x10] sm:$0xff]  }
  0x13   : > { %v3401_v5 = vld [vmem:[%s3718_s21 + $0xc0] sm:$0xff]   ;;  %3034 = vmatpush3.bf16.msra.mxu0 %v3400_v4  ;;  %v3405_v9 = vld [vmem:[%s3718_s21 + $0xc8] sm:$0xff]   ;;  %v3409_v13 = vld [vmem:[%s3718_s21 + $0xd0] sm:$0xff]  }
  0x14   : > { %v3402_v6 = vld [vmem:[%s3718_s21 + $0x80] sm:$0xff]   ;;  %3061 = vmatprep.subr.bf16.mxu1 %v3401_v5  ;;  %3035 = vmatprep.subr.bf16.mxu0 %v3403_v7  ;;  %v3406_v10 = vld [vmem:[%s3718_s21 + $0x88] sm:$0xff]   ;;  %v3410_v14 = vld [vmem:[%s3718_s21 + $0x90] sm:$0xff]  }
  0x15   : > { %3062 = vmatpush3.bf16.msra.mxu1 %v3402_v6  ;;  %v3411_v15 = vld [vmem:[%s3718_s21 + $0x58] sm:$0xff]   ;;  %v3415_v19 = vld [vmem:[%s3718_s21 + $0x60] sm:$0xff]   ;;  %v3419_v23 = vld [vmem:[%s3718_s21 + $0x68] sm:$0xff]  }
  0x16   : > { %3063 = vmatprep.subr.bf16.mxu1 %v3405_v9  ;;  %v3412_v16 = vld [vmem:[%s3718_s21 + $0x18] sm:$0xff]   ;;  %v3416_v20 = vld [vmem:[%s3718_s21 + $0x20] sm:$0xff]   ;;  %v3420_v24 = vld [vmem:[%s3718_s21 + $0x28] sm:$0xff]  }
  0x17   : > { %3036 = vmatpush3.bf16.msra.mxu0 %v3404_v8  ;;  %v3413_v17 = vld [vmem:[%s3718_s21 + $0xd8] sm:$0xff]   ;;  %v3417_v21 = vld [vmem:[%s3718_s21 + $0xe0] sm:$0xff]   ;;  %v3421_v25 = vld [vmem:[%s3718_s21 + $0xe8] sm:$0xff]  }
  0x18   : > { %3037 = vmatprep.subr.bf16.mxu0 %v3407_v11  ;;  %v3414_v18 = vld [vmem:[%s3718_s21 + $0x98] sm:$0xff]   ;;  %v3418_v22 = vld [vmem:[%s3718_s21 + $0xa0] sm:$0xff]   ;;  %v3422_v26 = vld [vmem:[%s3718_s21 + $0xa8] sm:$0xff]  }
  0x19   : > { %3064 = vmatpush3.bf16.msra.mxu1 %v3406_v10  ;;  %v3423_v27 = vld [vmem:[%s3718_s21 + $0x70] sm:$0xff]   ;;  %v3427_v31 = vld [vmem:[%s3718_s21 + $0x78] sm:$0xff]   ;;  %v3434_v39 = vld [vmem:[%s3718_s21 + $0x140] sm:$0xff]  }
  0x1a   : > { %3065 = vmatprep.subr.bf16.mxu1 %v3409_v13  ;;  %v3424_v28 = vld [vmem:[%s3718_s21 + $0x30] sm:$0xff]   ;;  %v3428_v33 = vld [vmem:[%s3718_s21 + $0x38] sm:$0xff]   ;;  %v3438_v40 = vld [vmem:[%s3718_s21 + $0x100] sm:$0xff]  }
  0x1b   : > { %3038 = vmatpush3.bf16.msra.mxu0 %v3408_v12  ;;  %v3425_v29 = vld [vmem:[%s3718_s21 + $0xf0] sm:$0xff]   ;;  %v3429_v35 = vld [vmem:[%s3718_s21 + $0xf8] sm:$0xff]   ;;  %v3439_v41 = vld [vmem:[%s3718_s21 + $0x1c0] sm:$0xff]  }
  0x1c   : > { %3039 = vmatprep.subr.bf16.mxu0 %v3411_v15  ;;  %v3426_v30 = vld [vmem:[%s3718_s21 + $0xb0] sm:$0xff]   ;;  %v3433_v37 = vld [vmem:[%s3718_s21 + $0xb8] sm:$0xff]   ;;  %v3440_v42 = vld [vmem:[%s3718_s21 + $0x180] sm:$0xff]  }
  0x1d   : > { %3066 = vmatpush3.bf16.msra.mxu1 %v3410_v14  ;;  %v3441_v43 = vld [vmem:[%s3718_s21 + $0x148] sm:$0xff]   ;;  %v3445_v50 = vld [vmem:[%s3718_s21 + $0x150] sm:$0xff]   ;;  %v3449_v54 = vld [vmem:[%s3718_s21 + $0x158] sm:$0xff]  }
  0x1e   : > { %3067 = vmatprep.subr.bf16.mxu1 %v3413_v17  ;;  %v3442_v45 = vld [vmem:[%s3718_s21 + $0x108] sm:$0xff]   ;;  %v3446_v51 = vld [vmem:[%s3718_s21 + $0x110] sm:$0xff]   ;;  %v3450_v55 = vld [vmem:[%s3718_s21 + $0x118] sm:$0xff]  }
  0x1f   : > { %3040 = vmatpush3.bf16.msra.mxu0 %v3412_v16  ;;  %v3443_v47 = vld [vmem:[%s3718_s21 + $0x1c8] sm:$0xff]   ;;  %v3447_v52 = vld [vmem:[%s3718_s21 + $0x1d0] sm:$0xff]   ;;  %v3451_v56 = vld [vmem:[%s3718_s21 + $0x1d8] sm:$0xff]  }
  0x20   : > { %3041 = vmatprep.subr.bf16.mxu0 %v3415_v19  ;;  %v3444_v49 = vld [vmem:[%s3718_s21 + $0x188] sm:$0xff]   ;;  %v3448_v53 = vld [vmem:[%s3718_s21 + $0x190] sm:$0xff]   ;;  %v3452_v57 = vld [vmem:[%s3718_s21 + $0x198] sm:$0xff]  }
  0x21   : > { %3068 = vmatpush3.bf16.msra.mxu1 %v3414_v18  ;;  %v3453_v58 = vld [vmem:[%s3718_s21 + $0x160] sm:$0xff]   ;;  %v3457_v62 = vld [vmem:[%s3718_s21 + $0x168] sm:$0xff]   ;;  %v3467_v2 = vld [vmem:[%s3718_s21 + $0x170] sm:$0xff]  }
  0x22   : > { %3069 = vmatprep.subr.bf16.mxu1 %v3417_v21  ;;  %v3454_v59 = vld [vmem:[%s3718_s21 + $0x120] sm:$0xff]   ;;  %v3460_v63 = vld [vmem:[%s3718_s21 + $0x128] sm:$0xff]   ;;  %v3468_v3 = vld [vmem:[%s3718_s21 + $0x130] sm:$0xff]  }
  0x23   : > { %3042 = vmatpush3.bf16.msra.mxu0 %v3416_v20  ;;  %v3455_v60 = vld [vmem:[%s3718_s21 + $0x1e0] sm:$0xff]   ;;  %v3462_v0 = vld [vmem:[%s3718_s21 + $0x1e8] sm:$0xff]   ;;  %v3469_v4 = vld [vmem:[%s3718_s21 + $0x1f0] sm:$0xff]  }
  0x24   : > { %3043 = vmatprep.subr.bf16.mxu0 %v3419_v23  ;;  %v3456_v61 = vld [vmem:[%s3718_s21 + $0x1a0] sm:$0xff]   ;;  %v3465_v1 = vld [vmem:[%s3718_s21 + $0x1a8] sm:$0xff]   ;;  %v3470_v5 = vld [vmem:[%s3718_s21 + $0x1b0] sm:$0xff]  }
  0x25   : > { %3070 = vmatpush3.bf16.msra.mxu1 %v3418_v22  ;;  %v3471_v6 = vld [vmem:[%s3718_s21 + $0x178] sm:$0xff]   ;;  %v3474_v7 = vld [vmem:[%s4079_s0 + $0x10] ss:$100 sps:$4 sm:$0xff]   ;;  %v3478_v11 = vld [vmem:[%s3718_s21 + $0x240] sm:$0xff]  }
  0x26   : > { %3071 = vmatprep.subr.bf16.mxu1 %v3421_v25  ;;  %v3472_v8 = vld [vmem:[%s3718_s21 + $0x138] sm:$0xff]   ;;  %v3482_v14 = vld [vmem:[%s3718_s21 + $0x200] sm:$0xff]   ;;  %v3485_v17 = vld [vmem:[%s3718_s21 + $0x248] sm:$0xff]  }
  0x27   : > { %3044 = vmatpush3.bf16.msra.mxu0 %v3420_v24  ;;  %v3473_v9 = vld [vmem:[%s3718_s21 + $0x1f8] sm:$0xff]   ;;  %v3483_v15 = vld [vmem:[%s3718_s21 + $0x2c0] sm:$0xff]   ;;  %v3486_v18 = vld [vmem:[%s3718_s21 + $0x208] sm:$0xff]  }
  0x28   : > { %3045 = vmatprep.subr.bf16.mxu0 %v3423_v27  ;;  %v3477_v10 = vld [vmem:[%s3718_s21 + $0x1b8] sm:$0xff]   ;;  %v3484_v16 = vld [vmem:[%s3718_s21 + $0x280] sm:$0xff]   ;;  %v3487_v19 = vld [vmem:[%s3718_s21 + $0x2c8] sm:$0xff]  }
  0x29   : > { %3072 = vmatpush3.bf16.msra.mxu1 %v3422_v26  ;;  %v3479_v12 = vld [vmem:[%s4079_s0 + $0x18] ss:$100 sps:$4 sm:$0xff]   ;;  %v3490_v21 = vld [vmem:[%s3718_s21 + $0x288] sm:$0xff]   ;;  %v3492_v23 = vld [vmem:[%s3718_s21 + $0x250] sm:$0xff]  }
  0x2a   : > { %3073 = vmatprep.subr.bf16.mxu1 %v3425_v29  ;;  %v3481_v13 = vld [vmem:[%s4079_s0 + $0x1c] ss:$100 sps:$4 sm:$0xff]   ;;  %v3493_v24 = vld [vmem:[%s4079_s0 + $0xe4] ss:$100 sps:$4 sm:$0xff]   ;;  %v3495_v25 = vld [vmem:[%s3718_s21 + $0x210] sm:$0xff]  }
  0x2b   : > { %3046 = vmatpush3.bf16.msra.mxu0 %v3424_v28  ;;  %v3488_v20 = vld [vmem:[%s4079_s0 + $0xdc] ss:$100 sps:$4 sm:$0xff]   ;;  %v3497_v27 = vld [vmem:[%s3718_s21 + $0x2d0] sm:$0xff]  }
  0x2c   : > { %3047 = vmatprep.subr.bf16.mxu0 %v3427_v31  ;;  %v3491_v22 = vld [vmem:[%s4079_s0 + $0xd8] ss:$100 sps:$4 sm:$0xff]   ;;  %v3496_v26 = vld [vmem:[%s4079_s0 + $0xe0] ss:$100 sps:$4 sm:$0xff]   ;;  %v3498_v28 = vld [vmem:[%s3718_s21 + $0x290] sm:$0xff]  }
  0x2d   : > { %3074 = vmatpush3.bf16.msra.mxu1 %v3426_v30  ;;  %v3499_v29 = vld [vmem:[%s3718_s21 + $0x258] sm:$0xff]  }
  0x2e   : > { %3075 = vmatprep.subr.bf16.mxu1 %v3429_v35  ;;  %v3500_v30 = vld [vmem:[%s3718_s21 + $0x218] sm:$0xff]   ;;  %v3505_v35 = vld [vmem:[%s3718_s21 + $0x2e0] sm:$0xff]  }
  0x2f   : > { %3048 = vmatpush3.bf16.msra.mxu0 %v3428_v33  ;;  %v3501_v31 = vld [vmem:[%s3718_s21 + $0x2d8] sm:$0xff]   ;;  %v3503_v33 = vld [vmem:[%s3718_s21 + $0x260] sm:$0xff]  }
  0x30   : > { %3089 = vmatprep.subr.bf16.mxu0 %v3434_v39  ;;  %v3509_v39 = vld [vmem:[%s3718_s21 + $0x2e8] sm:$0xff]  }
  0x31   : > { %3076 = vmatpush3.bf16.msra.mxu1 %v3433_v37  ;;  %v3507_v37 = vld [vmem:[%s3718_s21 + $0x268] sm:$0xff]  }
  0x32   : > { %2106 = vmatmul.mubr.bf16.vlgmr.msra.gmra.mrb[0].mxu0 %v3430_v32  ;;  %3117 = vmatprep.subr.bf16.mxu1 %v3439_v41  ;;  %v3502_v32 = vld [vmem:[%s3718_s21 + $0x298] sm:$0xff]   ;;  %v3511_v41 = vld [vmem:[%s3718_s21 + $0x270] sm:$0xff]  }
  0x33   : > { %3090 = vmatpush3.bf16.msra.mxu0 %v3438_v40  ;;  %2113 = vmatprep.mubr.bf16.mxu0 %v3458_v34  ;;  %v3504_v34 = vld [vmem:[%s3718_s21 + $0x220] sm:$0xff]   ;;  %v3510_v40 = vld [vmem:[%s3718_s21 + $0x2a8] sm:$0xff]  }
  0x34   : > { %2155 = vmatmul.mubr.bf16.vlgmr.msra.gmra.mrb[0].mxu1 %v3435_v36  ;;  %3091 = vmatprep.subr.bf16.mxu0 %v3441_v43  ;;  %v3506_v36 = vld [vmem:[%s3718_s21 + $0x2a0] sm:$0xff]   ;;  %v3513_v43 = vld [vmem:[%s3718_s21 + $0x2f0] sm:$0xff]  }
  0x35   : > { %3118 = vmatpush3.bf16.msra.mxu1 %v3440_v42  ;;  %2162 = vmatprep.mubr.bf16.mxu1 %v3463_v38  ;;  %v3508_v38 = vld [vmem:[%s3718_s21 + $0x228] sm:$0xff]   ;;  %v3512_v42 = vld [vmem:[%s3718_s21 + $0x230] sm:$0xff]  }
  0x36   : > { %3119 = vmatprep.subr.bf16.mxu1 %v3443_v47  ;;  %v3517_v47 = vld [vmem:[%s3718_s21 + $0x2f8] sm:$0xff]  }
  0x37   : > { %3092 = vmatpush3.bf16.msra.mxu0 %v3442_v45  ;;  %v3515_v45 = vld [vmem:[%s3718_s21 + $0x278] sm:$0xff]  }
  0x38   : > { %3093 = vmatprep.subr.bf16.mxu0 %v3445_v50  ;;  %v3521_v50 = vld [vmem:[%s3718_s21 + $0x2b8] sm:$0xff]  }
  0x39   : > { %3120 = vmatpush3.bf16.msra.mxu1 %v3444_v49  ;;  %v3520_v49 = vld [vmem:[%s4079_s0 + $0x24] ss:$100 sps:$4 sm:$0xff]  }
  0x3a   : > { %2114 = vmatmul.mubr.bf16.gmra.mrb[4].mxu0 %v3461_v44  ;;  %3121 = vmatprep.subr.bf16.mxu1 %v3447_v52  ;;  %v3514_v44 = vld [vmem:[%s3718_s21 + $0x2b0] sm:$0xff]   ;;  %v3523_v52 = vld [vmem:[%s4079_s0 + $0x28] ss:$100 sps:$4 sm:$0xff]  }
  0x3b   : > { %3094 = vmatpush3.bf16.msra.mxu0 %v3446_v51  ;;  %2203 = vmatprep.mubr.bf16.mxu0 %v3476_v46  ;;  %v3516_v46 = vld [vmem:[%s3718_s21 + $0x238] sm:$0xff]   ;;  %v3522_v51 = vld [vmem:[%s3718_s21 + $0x340] sm:$0xff]  }
  0x3c   : > { %2163 = vmatmul.mubr.bf16.gmra.mrb[4].mxu1 %v3466_v48  ;;  %3095 = vmatprep.subr.bf16.mxu0 %v3449_v54  ;;  %v3518_v48 = vld [vmem:[%s4079_s0 + $0x20] ss:$100 sps:$4 sm:$0xff]  }
  0x3d   : > { %3122 = vmatpush3.bf16.msra.mxu1 %v3448_v53  ;;  %2252 = vmatprep.mubr.bf16.mxu1 %v3481_v13  ;;  %v3525_v53 = vld [vmem:[%s4079_s0 + $0x2c] ss:$100 sps:$4 sm:$0xff]   ;;  %v3526_v54 = vld [vmem:[%s3718_s21 + $0x300] sm:$0xff]  }
  0x3e   : > { %3123 = vmatprep.subr.bf16.mxu1 %v3451_v56  ;;  %v3528_v56 = vld [vmem:[%s3718_s21 + $0x380] sm:$0xff]   ;;  %v3551_v13 = vld [vmem:[%s3718_s21 + $0x368] sm:$0xff]  }
  0x3f   : > { %3096 = vmatpush3.bf16.msra.mxu0 %v3450_v55  ;;  %v3527_v55 = vld [vmem:[%s3718_s21 + $0x3c0] sm:$0xff]  }
  0x40   : > { %3097 = vmatprep.subr.bf16.mxu0 %v3453_v58  ;;  %v3530_v58 = vld [vmem:[%s3718_s21 + $0x308] sm:$0xff]  }
  0x41   : > { %3124 = vmatpush3.bf16.msra.mxu1 %v3452_v57  ;;  %v3529_v57 = vld [vmem:[%s3718_s21 + $0x348] sm:$0xff]  }
  0x42   : > { %3125 = vmatprep.subr.bf16.mxu1 %v3455_v60  ;;  %v3532_v60 = vld [vmem:[%s4079_s0 + $0xec] ss:$100 sps:$4 sm:$0xff]  }
  0x43   : > { %3098 = vmatpush3.bf16.msra.mxu0 %v3454_v59  ;;  %v3531_v59 = vld [vmem:[%s3718_s21 + $0x3c8] sm:$0xff]  }
  0x44   : > { %3099 = vmatprep.subr.bf16.mxu0 %v3457_v62  ;;  %v3535_v62 = vld [vmem:[%s4079_s0 + $0xe8] ss:$100 sps:$4 sm:$0xff]  }
  0x45   : > { %3126 = vmatpush3.bf16.msra.mxu1 %v3456_v61  ;;  %v3534_v61 = vld [vmem:[%s3718_s21 + $0x388] sm:$0xff]  }
  0x46   : > { %3127 = vmatprep.subr.bf16.mxu1 %v3462_v0  ;;  %v3537_v0 = vld [vmem:[%s4079_s0 + $0xf4] ss:$100 sps:$4 sm:$0xff]  }
  0x47   : > { %3100 = vmatpush3.bf16.msra.mxu0 %v3460_v63  ;;  %v3536_v63 = vld [vmem:[%s3718_s21 + $0x350] sm:$0xff]  }
  0x48   : > { %3101 = vmatprep.subr.bf16.mxu0 %v3467_v2  ;;  %v3540_v2 = vld [vmem:[%s4079_s0 + $0xf0] ss:$100 sps:$4 sm:$0xff]  }
  0x49   : > { %3128 = vmatpush3.bf16.msra.mxu1 %v3465_v1  ;;  %v3539_v1 = vld [vmem:[%s3718_s21 + $0x310] sm:$0xff]  }
  0x4a   : > { %3129 = vmatprep.subr.bf16.mxu1 %v3469_v4  ;;  %v3542_v4 = vld [vmem:[%s3718_s21 + $0x390] sm:$0xff]  }
  0x4b   : > { %3102 = vmatpush3.bf16.msra.mxu0 %v3468_v3  ;;  %v3541_v3 = vld [vmem:[%s3718_s21 + $0x3d0] sm:$0xff]  }
  0x4c   : > { %3103 = vmatprep.subr.bf16.mxu0 %v3471_v6  ;;  %v3544_v6 = vld [vmem:[%s3718_s21 + $0x318] sm:$0xff]  }
  0x4d   : > { %3130 = vmatpush3.bf16.msra.mxu1 %v3470_v5  ;;  %v3543_v5 = vld [vmem:[%s3718_s21 + $0x358] sm:$0xff]  }
  0x4e   : > { %3131 = vmatprep.subr.bf16.mxu1 %v3473_v9  ;;  %v3547_v9 = vld [vmem:[%s3718_s21 + $0x360] sm:$0xff]  }
  0x4f   : > { %3104 = vmatpush3.bf16.msra.mxu0 %v3472_v8  ;;  %v3546_v8 = vld [vmem:[%s3718_s21 + $0x398] sm:$0xff]  }
  0x50   : > { %3145 = vmatprep.subr.bf16.mxu0 %v3478_v11  ;;  %v3549_v11 = vld [vmem:[%s3718_s21 + $0x3e0] sm:$0xff]  }
  0x51   : > { %3132 = vmatpush3.bf16.msra.mxu1 %v3477_v10  ;;  %v3548_v10 = vld [vmem:[%s3718_s21 + $0x320] sm:$0xff]  }
  0x52   : > { %2204 = vmatmul.mubr.bf16.vlgmr.msra.gmra.mrb[8].mxu0 %v3474_v7  ;;  %3173 = vmatprep.subr.bf16.mxu1 %v3483_v15  ;;  %v3545_v7 = vld [vmem:[%s3718_s21 + $0x3d8] sm:$0xff]   ;;  %v3552_v15 = vld [vmem:[%s3718_s21 + $0x328] sm:$0xff]  }
  0x53   : > { %3146 = vmatpush3.bf16.msra.mxu0 %v3482_v14  ;;  %2211 = vmatprep.mubr.bf16.mxu0 %v3488_v20  ;;  %v616_v14 = vld [vmem:[%s4081_s2] sm:$0xff]  ;;  %v3556_v20 = vld [vmem:[%s3718_s21 + $0x330] sm:$0xff]  }
  0x54   : > { %2253 = vmatmul.mubr.bf16.vlgmr.msra.gmra.mrb[8].mxu1 %v3479_v12  ;;  %3147 = vmatprep.subr.bf16.mxu0 %v3485_v17  ;;  %v3550_v12 = vld [vmem:[%s3718_s21 + $0x3a0] sm:$0xff]   ;;  %v3554_v17 = vld [vmem:[%s3718_s21 + $0x3a8] sm:$0xff]  }
  0x55   : > { %3174 = vmatpush3.bf16.msra.mxu1 %v3484_v16  ;;  %2260 = vmatprep.mubr.bf16.mxu1 %v3493_v24  ;;  %v3553_v16 = vld [vmem:[%s3718_s21 + $0x3e8] sm:$0xff]   ;;  %v3560_v24 = vld [vmem:[%s3718_s21 + $0x338] sm:$0xff]  }
  0x56   : > { %3175 = vmatprep.subr.bf16.mxu1 %v3487_v19  ;;  %622 = vperm.xlu0 %3397, %v616_v14   ;;  %v617_v19 = vld [vmem:[%s4081_s2 + $0x8] sm:$0xff] }
  0x57   : > { %3148 = vmatpush3.bf16.msra.mxu0 %v3486_v18  ;;  %v3555_v18 = vld [vmem:[%s3718_s21 + $0x370] sm:$0xff]   ;;  %v3618_v14 = vld [vmem:[%s3718_s21 + $0x508] sm:$0xff]  }
  0x58   : > { %3149 = vmatprep.subr.bf16.mxu0 %v3492_v23  ;;  %v3559_v23 = vld [vmem:[%s3718_s21 + $0x378] sm:$0xff]  }
  0x59   : > { %3176 = vmatpush3.bf16.msra.mxu1 %v3490_v21  ;;  %v3557_v21 = vld [vmem:[%s3718_s21 + $0x3f0] sm:$0xff]  }
  0x5a   : > { %2212 = vmatmul.mubr.bf16.gmra.mrb[12].mxu0 %v3491_v22  ;;  %3177 = vmatprep.subr.bf16.mxu1 %v3497_v27  ;;  %v3558_v22 = vld [vmem:[%s3718_s21 + $0x3b0] sm:$0xff]  }
  0x5b   : > { %3150 = vmatpush3.bf16.msra.mxu0 %v3495_v25  ;;  %2301 = vmatprep.mubr.bf16.mxu0 %v3520_v49  ;;  %v3561_v25 = vld [vmem:[%s3718_s21 + $0x3f8] sm:$0xff]  }
  0x5c   : > { %2261 = vmatmul.mubr.bf16.gmra.mrb[12].mxu1 %v3496_v26  ;;  %3151 = vmatprep.subr.bf16.mxu0 %v3499_v29  ;;  %v3562_v26 = vld [vmem:[%s4079_s0 + $0x30] ss:$100 sps:$4 sm:$0xff]   ;;  %v3566_v29 = vld [vmem:[%s3718_s21 + $0x440] sm:$0xff]   ;;  %v3588_v49 = vld [vmem:[%s3718_s21 + $0x418] sm:$0xff]  }
  0x5d   : > { %3178 = vmatpush3.bf16.msra.mxu1 %v3498_v28  ;;  %2350 = vmatprep.mubr.bf16.mxu1 %v3525_v53  ;;  %v3564_v27 = vld [vmem:[%s4079_s0 + $0x34] ss:$100 sps:$4 sm:$0xff]   ;;  %v3591_v53 = vld [vmem:[%s3718_s21 + $0x460] sm:$0xff]  }
  0x5e   : > { %3179 = vmatprep.subr.bf16.mxu1 %v3501_v31  ;;  %627 = vperm.xlu0 %3397, %v617_v19   ;;  %v3565_v28 = vld [vmem:[%s3718_s21 + $0x3b8] sm:$0xff]   ;;  %v3624_v19 = vld [vmem:[%s3718_s21 + $0x550] sm:$0xff]  }
  0x5f   : > { %3152 = vmatpush3.bf16.msra.mxu0 %v3500_v30  ;;  %v3567_v30 = vld [vmem:[%s4079_s0 + $0x38] ss:$100 sps:$4 sm:$0xff]  }
  0x60   : > { %3153 = vmatprep.subr.bf16.mxu0 %v3503_v33  ;;  %v3569_v31 = vld [vmem:[%s4079_s0 + $0x3c] ss:$100 sps:$4 sm:$0xff]  }
  0x61   : > { %3180 = vmatpush3.bf16.msra.mxu1 %v3502_v32  ;;  %v3570_v32 = vld [vmem:[%s3718_s21 + $0x400] sm:$0xff]  }
  0x62   : > { %3181 = vmatprep.subr.bf16.mxu1 %v3505_v35  ;;  %v3571_v33 = vld [vmem:[%s3718_s21 + $0x4c0] sm:$0xff]   ;;  %v3573_v35 = vld [vmem:[%s3718_s21 + $0x448] sm:$0xff]  }
  0x63   : > { %3154 = vmatpush3.bf16.msra.mxu0 %v3504_v34  ;;  %v3572_v34 = vld [vmem:[%s3718_s21 + $0x480] sm:$0xff]  }
  0x64   : > { %3155 = vmatprep.subr.bf16.mxu0 %v3507_v37  ;;  %v3575_v37 = vld [vmem:[%s3718_s21 + $0x4c8] sm:$0xff]  }
  0x65   : > { %3182 = vmatpush3.bf16.msra.mxu1 %v3506_v36  ;;  %v3574_v36 = vld [vmem:[%s3718_s21 + $0x408] sm:$0xff]  }
  0x66   : > { %3183 = vmatprep.subr.bf16.mxu1 %v3509_v39  ;;  %v3578_v39 = vld [vmem:[%s3718_s21 + $0x488] sm:$0xff]  }
  0x67   : > { %3156 = vmatpush3.bf16.msra.mxu0 %v3508_v38  ;;  %v3576_v38 = vld [vmem:[%s4079_s0 + $0xfc] ss:$100 sps:$4 sm:$0xff]  }
  0x68   : > { %3157 = vmatprep.subr.bf16.mxu0 %v3511_v41  ;;  %v3580_v41 = vld [vmem:[%s3718_s21 + $0x450] sm:$0xff]  }
  0x69   : > { %3184 = vmatpush3.bf16.msra.mxu1 %v3510_v40  ;;  %v3579_v40 = vld [vmem:[%s4079_s0 + $0xf8] ss:$100 sps:$4 sm:$0xff]  }
  0x6a   : > { %3185 = vmatprep.subr.bf16.mxu1 %v3513_v43  ;;  %v3583_v43 = vld [vmem:[%s3718_s21 + $0x410] sm:$0xff]  }
  0x6b   : > { %3158 = vmatpush3.bf16.msra.mxu0 %v3512_v42  ;;  %v3581_v42 = vld [vmem:[%s4079_s0 + $0x104] ss:$100 sps:$4 sm:$0xff]  }
  0x6c   : > { %3159 = vmatprep.subr.bf16.mxu0 %v3515_v45  ;;  %v3585_v45 = vld [vmem:[%s3718_s21 + $0x4d0] sm:$0xff]  }
  0x6d   : > { %3186 = vmatpush3.bf16.msra.mxu1 %v3514_v44  ;;  %v3584_v44 = vld [vmem:[%s4079_s0 + $0x100] ss:$100 sps:$4 sm:$0xff]  }
  0x6e   : > { %3187 = vmatprep.subr.bf16.mxu1 %v3517_v47  ;;  %v3586_v47 = vld [vmem:[%s3718_s21 + $0x490] sm:$0xff]  }
  0x6f   : > { %3160 = vmatpush3.bf16.msra.mxu0 %v3516_v46  ;;  %v618_v46 = vld [vmem:[%s4081_s2 + $0x10] sm:$0xff] }
  0x70   : > { %3201 = vmatprep.subr.bf16.mxu0 %v3522_v51  ;;  %632 = vperm.xlu1 %3398, %v618_v46   ;;  %v619_v51 = vld [vmem:[%s4081_s2 + $0x18] sm:$0xff] }
  0x71   : > { %3188 = vmatpush3.bf16.msra.mxu1 %v3521_v50  ;;  %v3589_v50 = vld [vmem:[%s3718_s21 + $0x4d8] sm:$0xff]  }
  0x72   : > { %2302 = vmatmul.mubr.bf16.vlgmr.msra.gmra.mrb[16].mxu0 %v3518_v48  ;;  %3229 = vmatprep.subr.bf16.mxu1 %v3527_v55  ;;  %v3587_v48 = vld [vmem:[%s3718_s21 + $0x458] sm:$0xff]   ;;  %v3593_v55 = vld [vmem:[%s3718_s21 + $0x4e0] sm:$0xff]  }
  0x73   : > { %3202 = vmatpush3.bf16.msra.mxu0 %v3526_v54  ;;  %2309 = vmatprep.mubr.bf16.mxu0 %v3532_v60  ;;  %v3592_v54 = vld [vmem:[%s3718_s21 + $0x420] sm:$0xff]   ;;  %v3598_v60 = vld [vmem:[%s3718_s21 + $0x4a8] sm:$0xff]   ;;  %v3653_v46 = vld [vmem:[%s3718_s21 + $0x5b8] sm:$0xff]  }
  0x74   : > { %2351 = vmatmul.mubr.bf16.vlgmr.msra.gmra.mrb[16].mxu1 %v3523_v52  ;;  %3203 = vmatprep.subr.bf16.mxu0 %v3529_v57  ;;  %v3590_v52 = vld [vmem:[%s3718_s21 + $0x498] sm:$0xff]   ;;  %v3595_v57 = vld [vmem:[%s3718_s21 + $0x468] sm:$0xff]  }
  0x75   : > { %3230 = vmatpush3.bf16.msra.mxu1 %v3528_v56  ;;  %2358 = vmatprep.mubr.bf16.mxu1 %v3537_v0  ;;  %v3594_v56 = vld [vmem:[%s3718_s21 + $0x4a0] sm:$0xff]   ;;  %v3602_v0 = vld [vmem:[%s3718_s21 + $0x4b0] sm:$0xff]  }
  0x76   : > { %3231 = vmatprep.subr.bf16.mxu1 %v3531_v59  ;;  %637 = vperm.xlu1 %3398, %v619_v51   ;;  %v3597_v59 = vld [vmem:[%s3718_s21 + $0x4e8] sm:$0xff]   ;;  %v3659_v51 = vld [vmem:[%s4079_s0 + $0x11c] ss:$100 sps:$4 sm:$0xff]  }
  0x77   : > { %3204 = vmatpush3.bf16.msra.mxu0 %v3530_v58  ;;  %v3596_v58 = vld [vmem:[%s3718_s21 + $0x428] sm:$0xff]  }
  0x78   : > { %3205 = vmatprep.subr.bf16.mxu0 %v3536_v63  ;;  %v3601_v63 = vld [vmem:[%s3718_s21 + $0x4f0] sm:$0xff]  }
  0x79   : > { %3232 = vmatpush3.bf16.msra.mxu1 %v3534_v61  ;;  %v3599_v61 = vld [vmem:[%s3718_s21 + $0x470] sm:$0xff]  }
  0x7a   : > { %2310 = vmatmul.mubr.bf16.gmra.mrb[20].mxu0 %v3535_v62  ;;  %3233 = vmatprep.subr.bf16.mxu1 %v3541_v3  ;;  %v3600_v62 = vld [vmem:[%s3718_s21 + $0x430] sm:$0xff]   ;;  %v3605_v3 = vld [vmem:[%s3718_s21 + $0x4f8] sm:$0xff]  }
  0x7b   : > { %3206 = vmatpush3.bf16.msra.mxu0 %v3539_v1  ;;  %2399 = vmatprep.mubr.bf16.mxu0 %v3564_v27  ;;  %v3603_v1 = vld [vmem:[%s3718_s21 + $0x478] sm:$0xff]  }
  0x7c   : > { %2359 = vmatmul.mubr.bf16.gmra.mrb[20].mxu1 %v3540_v2  ;;  %3207 = vmatprep.subr.bf16.mxu0 %v3543_v5  ;;  %v3604_v2 = vld [vmem:[%s3718_s21 + $0x438] sm:$0xff]   ;;  %v3608_v5 = vld [vmem:[%s4079_s0 + $0x44] ss:$100 sps:$4 sm:$0xff]  }
  0x7d   : > { %3234 = vmatpush3.bf16.msra.mxu1 %v3542_v4  ;;  %2448 = vmatprep.mubr.bf16.mxu1 %v3569_v31  ;;  %v3606_v4 = vld [vmem:[%s4079_s0 + $0x40] ss:$100 sps:$4 sm:$0xff]   ;;  %v3633_v27 = vld [vmem:[%s3718_s21 + $0x5d8] sm:$0xff]  }
  0x7e   : > { %3235 = vmatprep.subr.bf16.mxu1 %v3545_v7  ;;  %v3610_v7 = vld [vmem:[%s3718_s21 + $0x540] sm:$0xff]  }
  0x7f   : > { %3208 = vmatpush3.bf16.msra.mxu0 %v3544_v6  ;;  %v3609_v6 = vld [vmem:[%s3718_s21 + $0x4b8] sm:$0xff]   ;;  %v3637_v31 = vld [vmem:[%s3718_s21 + $0x5e0] sm:$0xff]  }
  0x80   : > { %3209 = vmatprep.subr.bf16.mxu0 %v3547_v9  ;;  %v3613_v9 = vld [vmem:[%s4079_s0 + $0x4c] ss:$100 sps:$4 sm:$0xff]  }
  0x81   : > { %3236 = vmatpush3.bf16.msra.mxu1 %v3546_v8  ;;  %v3611_v8 = vld [vmem:[%s4079_s0 + $0x48] ss:$100 sps:$4 sm:$0xff]  }
  0x82   : > { %3237 = vmatprep.subr.bf16.mxu1 %v3549_v11  ;;  %v3615_v11 = vld [vmem:[%s3718_s21 + $0x5c0] sm:$0xff]  }
  0x83   : > { %3210 = vmatpush3.bf16.msra.mxu0 %v3548_v10  ;;  %v3614_v10 = vld [vmem:[%s3718_s21 + $0x500] sm:$0xff]  }
  0x84   : > { %3211 = vmatprep.subr.bf16.mxu0 %v3551_v13  ;;  %v3617_v13 = vld [vmem:[%s3718_s21 + $0x548] sm:$0xff]  }
  0x85   : > { %3238 = vmatpush3.bf16.msra.mxu1 %v3550_v12  ;;  %v3616_v12 = vld [vmem:[%s3718_s21 + $0x580] sm:$0xff]  }
  0x86   : > { %3239 = vmatprep.subr.bf16.mxu1 %v3553_v16  ;;  %v3620_v16 = vld [vmem:[%s4079_s0 + $0x10c] ss:$100 sps:$4 sm:$0xff]  }
  0x87   : > { %3212 = vmatpush3.bf16.msra.mxu0 %v3552_v15  ;;  %v3619_v15 = vld [vmem:[%s3718_s21 + $0x5c8] sm:$0xff]  }
  0x88   : > { %3213 = vmatprep.subr.bf16.mxu0 %v3555_v18  ;;  %v3623_v18 = vld [vmem:[%s4079_s0 + $0x108] ss:$100 sps:$4 sm:$0xff]  }
  0x89   : > { %3240 = vmatpush3.bf16.msra.mxu1 %v3554_v17  ;;  %v3622_v17 = vld [vmem:[%s3718_s21 + $0x588] sm:$0xff]  }
  0x8a   : > { %3241 = vmatprep.subr.bf16.mxu1 %v3557_v21  ;;  %v3627_v21 = vld [vmem:[%s3718_s21 + $0x510] sm:$0xff]  }
  0x8b   : > { %3214 = vmatpush3.bf16.msra.mxu0 %v3556_v20  ;;  %v3625_v20 = vld [vmem:[%s4079_s0 + $0x114] ss:$100 sps:$4 sm:$0xff]  }
  0x8c   : > { %3215 = vmatprep.subr.bf16.mxu0 %v3559_v23  ;;  %v3629_v23 = vld [vmem:[%s3718_s21 + $0x5d0] sm:$0xff]  }
  0x8d   : > { %3242 = vmatpush3.bf16.msra.mxu1 %v3558_v22  ;;  %v3628_v22 = vld [vmem:[%s4079_s0 + $0x110] ss:$100 sps:$4 sm:$0xff]  }
  0x8e   : > { %3243 = vmatprep.subr.bf16.mxu1 %v3561_v25  ;;  %v3631_v25 = vld [vmem:[%s3718_s21 + $0x558] sm:$0xff]  }
  0x8f   : > { %3216 = vmatpush3.bf16.msra.mxu0 %v3560_v24  ;;  %v3630_v24 = vld [vmem:[%s3718_s21 + $0x590] sm:$0xff]  }
  0x90   : > { %3257 = vmatprep.subr.bf16.mxu0 %v3566_v29  ;;  %v3635_v29 = vld [vmem:[%s3718_s21 + $0x560] sm:$0xff]  }
  0x91   : > { %3244 = vmatpush3.bf16.msra.mxu1 %v3565_v28  ;;  %v3634_v28 = vld [vmem:[%s3718_s21 + $0x598] sm:$0xff]  }
  0x92   : > { %2400 = vmatmul.mubr.bf16.vlgmr.msra.gmra.mrb[24].mxu0 %v3562_v26  ;;  %3285 = vmatprep.subr.bf16.mxu1 %v3571_v33  ;;  %v3632_v26 = vld [vmem:[%s3718_s21 + $0x518] sm:$0xff]   ;;  %v3639_v33 = vld [vmem:[%s3718_s21 + $0x568] sm:$0xff]  }
  0x93   : > { %3258 = vmatpush3.bf16.msra.mxu0 %v3570_v32  ;;  %2407 = vmatprep.mubr.bf16.mxu0 %v3576_v38  ;;  %v3638_v32 = vld [vmem:[%s3718_s21 + $0x5a0] sm:$0xff]   ;;  %v3644_v38 = vld [vmem:[%s3718_s21 + $0x530] sm:$0xff]  }
  0x94   : > { %2449 = vmatmul.mubr.bf16.vlgmr.msra.gmra.mrb[24].mxu1 %v3567_v30  ;;  %3259 = vmatprep.subr.bf16.mxu0 %v3573_v35  ;;  %v3636_v30 = vld [vmem:[%s3718_s21 + $0x520] sm:$0xff]   ;;  %v3641_v35 = vld [vmem:[%s3718_s21 + $0x5e8] sm:$0xff]  }
  0x95   : > { %3286 = vmatpush3.bf16.msra.mxu1 %v3572_v34  ;;  %2456 = vmatprep.mubr.bf16.mxu1 %v3581_v42  ;;  %v3640_v34 = vld [vmem:[%s3718_s21 + $0x528] sm:$0xff]   ;;  %v3648_v42 = vld [vmem:[%s3718_s21 + $0x538] sm:$0xff]  }
  0x96   : > { %3287 = vmatprep.subr.bf16.mxu1 %v3575_v37  ;;  %v3643_v37 = vld [vmem:[%s3718_s21 + $0x570] sm:$0xff]  }
  0x97   : > { %3260 = vmatpush3.bf16.msra.mxu0 %v3574_v36  ;;  %v3642_v36 = vld [vmem:[%s3718_s21 + $0x5a8] sm:$0xff]  }
  0x98   : > { %3261 = vmatprep.subr.bf16.mxu0 %v3580_v41  ;;  %v3647_v41 = vld [vmem:[%s3718_s21 + $0x578] sm:$0xff]  }
  0x99   : > { %3288 = vmatpush3.bf16.msra.mxu1 %v3578_v39  ;;  %v3645_v39 = vld [vmem:[%s3718_s21 + $0x5f0] sm:$0xff]  }
  0x9a   : > { %2408 = vmatmul.mubr.bf16.gmra.mrb[28].mxu0 %v3579_v40  ;;  %3289 = vmatprep.subr.bf16.mxu1 %v3585_v45  ;;  %v3646_v40 = vld [vmem:[%s3718_s21 + $0x5b0] sm:$0xff]  }
  0x9b   : > { %3262 = vmatpush3.bf16.msra.mxu0 %v3583_v43  ;;  %2497 = vmatprep.mubr.bf16.mxu0 %v3608_v5  ;;  %v3649_v43 = vld [vmem:[%s3718_s21 + $0x5f8] sm:$0xff]  }
  0x9c   : > { %2457 = vmatmul.mubr.bf16.gmra.mrb[28].mxu1 %v3584_v44  ;;  %3263 = vmatprep.subr.bf16.mxu0 %v3587_v48  ;;  %v3650_v44 = vld [vmem:[%s4079_s0 + $0x50] ss:$100 sps:$4 sm:$0xff]   ;;  %v3655_v48 = vld [vmem:[%s4079_s0 + $0x58] ss:$100 sps:$4 sm:$0xff]  }
  0x9d   : > { %3290 = vmatpush3.bf16.msra.mxu1 %v3586_v47  ;;  %2546 = vmatprep.mubr.bf16.mxu1 %v3613_v9  ;;  %v3652_v45 = vld [vmem:[%s4079_s0 + $0x54] ss:$100 sps:$4 sm:$0xff]   ;;  %v3654_v47 = vld [vmem:[%s3718_s21 + $0x600] sm:$0xff]  }
  0x9e   : > { %3291 = vmatprep.subr.bf16.mxu1 %v3589_v50  ;;  %v3658_v50 = vld [vmem:[%s3718_s21 + $0x608] sm:$0xff]  }
  0x9f   : > { %3264 = vmatpush3.bf16.msra.mxu0 %v3588_v49  ;;  %v3657_v49 = vld [vmem:[%s4079_s0 + $0x5c] ss:$100 sps:$4 sm:$0xff]  }
  0xa0   : > { %3265 = vmatprep.subr.bf16.mxu0 %v3591_v53  ;;  %v3662_v53 = vld [vmem:[%s3718_s21 + $0x610] sm:$0xff]  }
  0xa1   : > { %3292 = vmatpush3.bf16.msra.mxu1 %v3590_v52  ;;  %v3661_v52 = vld [vmem:[%s4079_s0 + $0x118] ss:$100 sps:$4 sm:$0xff]  }
  0xa2   : > { %3293 = vmatprep.subr.bf16.mxu1 %v3593_v55  ;;  %v3665_v55 = vld [vmem:[%s4079_s0 + $0x120] ss:$100 sps:$4 sm:$0xff]  }
  0xa3   : > { %3266 = vmatpush3.bf16.msra.mxu0 %v3592_v54  ;;  %v3663_v54 = vld [vmem:[%s4079_s0 + $0x124] ss:$100 sps:$4 sm:$0xff]  }
  0xa4   : > { %3267 = vmatprep.subr.bf16.mxu0 %v3595_v57  ;;  %v3667_v57 = vld [vmem:[%s4079_s0 + $0x60] ss:$100 sps:$4 sm:$0xff]  }
  0xa5   : > { %3294 = vmatpush3.bf16.msra.mxu1 %v3594_v56  ;;  %v3666_v56 = vld [vmem:[%s3718_s21 + $0x618] sm:$0xff]   ;;  %s3032_s21 = sshll.u32 %s4084_s13, 5 }
  0xa6   : > { %3295 = vmatprep.subr.bf16.mxu1 %v3597_v59  ;;  %s170_s5 = scalar_lea.vmem %s4082_s3, %s3032_s21 }
  0xa7   : > { %3268 = vmatpush3.bf16.msra.mxu0 %v3596_v58  ;;  %v3668_v58 = vld [vmem:[%s4079_s0 + $0x128] ss:$100 sps:$4 sm:$0xff]  }
  0xa8   : > { %3269 = vmatprep.subr.bf16.mxu0 %v3599_v61 }
  0xa9   : > { %3296 = vmatpush3.bf16.msra.mxu1 %v3598_v60 }
  0xaa   : > { %3297 = vmatprep.subr.bf16.mxu1 %v3601_v63 }
  0xab   : > { %3270 = vmatpush3.bf16.msra.mxu0 %v3600_v62 }
  0xac   : > { %3271 = vmatprep.subr.bf16.mxu0 %v3603_v1 }
  0xad   : > { %3298 = vmatpush3.bf16.msra.mxu1 %v3602_v0 }
  0xae   : > { %3299 = vmatprep.subr.bf16.mxu1 %v3605_v3 }
  0xaf   : > { %3272 = vmatpush3.bf16.msra.mxu0 %v3604_v2 }
  0xb0   : > { %3313 = vmatprep.subr.bf16.mxu0 %v3610_v7 }
  0xb1   : > { %3300 = vmatpush3.bf16.msra.mxu1 %v3609_v6 }
  0xb2   : > { %2498 = vmatmul.mubr.bf16.vlgmr.msra.gmra.mrb[32].mxu0 %v3606_v4  ;;  %3341 = vmatprep.subr.bf16.mxu1 %v3615_v11 }
  0xb3   : > { %3314 = vmatpush3.bf16.msra.mxu0 %v3614_v10  ;;  %2505 = vmatprep.mubr.bf16.mxu0 %v3620_v16 }
  0xb4   : > { %2547 = vmatmul.mubr.bf16.vlgmr.msra.gmra.mrb[32].mxu1 %v3611_v8  ;;  %3315 = vmatprep.subr.bf16.mxu0 %v3617_v13 }
  0xb5   : > { %3342 = vmatpush3.bf16.msra.mxu1 %v3616_v12  ;;  %2554 = vmatprep.mubr.bf16.mxu1 %v3625_v20 }
  0xb6   : > { %3343 = vmatprep.subr.bf16.mxu1 %v3619_v15 }
  0xb7   : > { %3316 = vmatpush3.bf16.msra.mxu0 %v3618_v14 }
  0xb8   : > { %3317 = vmatprep.subr.bf16.mxu0 %v3624_v19 }
  0xb9   : > { %3344 = vmatpush3.bf16.msra.mxu1 %v3622_v17 }
  0xba   : > { %2506 = vmatmul.mubr.bf16.gmra.mrb[36].mxu0 %v3623_v18  ;;  %3345 = vmatprep.subr.bf16.mxu1 %v3629_v23 }
  0xbb   : > { %3318 = vmatpush3.bf16.msra.mxu0 %v3627_v21  ;;  %2595 = vmatprep.mubr.bf16.mxu0 %v3652_v45 }
  0xbc   : > { %2555 = vmatmul.mubr.bf16.gmra.mrb[36].mxu1 %v3628_v22  ;;  %3319 = vmatprep.subr.bf16.mxu0 %v3631_v25 }
  0xbd   : > { %3346 = vmatpush3.bf16.msra.mxu1 %v3630_v24  ;;  %2644 = vmatprep.mubr.bf16.mxu1 %v3657_v49 }
  0xbe   : > { %3347 = vmatprep.subr.bf16.mxu1 %v3633_v27 }
  0xbf   : > { %3320 = vmatpush3.bf16.msra.mxu0 %v3632_v26 }
  0xc0   : > { %3321 = vmatprep.subr.bf16.mxu0 %v3635_v29 }
  0xc1   : > { %3348 = vmatpush3.bf16.msra.mxu1 %v3634_v28 }
  0xc2   : > { %3349 = vmatprep.subr.bf16.mxu1 %v3637_v31 }
  0xc3   : > { %3322 = vmatpush3.bf16.msra.mxu0 %v3636_v30 }
  0xc4   : > { %3323 = vmatprep.subr.bf16.mxu0 %v3639_v33 }
  0xc5   : > { %3350 = vmatpush3.bf16.msra.mxu1 %v3638_v32 }
  0xc6   : > { %3351 = vmatprep.subr.bf16.mxu1 %v3641_v35 }
  0xc7   : > { %3324 = vmatpush3.bf16.msra.mxu0 %v3640_v34 }
  0xc8   : > { %3325 = vmatprep.subr.bf16.mxu0 %v3643_v37 }
  0xc9   : > { %3352 = vmatpush3.bf16.msra.mxu1 %v3642_v36 }
  0xca   : > { %3353 = vmatprep.subr.bf16.mxu1 %v3645_v39 }
  0xcb   : > { %3326 = vmatpush3.bf16.msra.mxu0 %v3644_v38 }
  0xcc   : > { %3327 = vmatprep.subr.bf16.mxu0 %v3647_v41 }
  0xcd   : > { %3354 = vmatpush3.bf16.msra.mxu1 %v3646_v40 }
  0xce   : > { %3355 = vmatprep.subr.bf16.mxu1 %v3649_v43 }
  0xcf   : > { %3328 = vmatpush3.bf16.msra.mxu0 %v3648_v42 }
  0xd0   : > { %3375 = vmatprep.subr.bf16.mxu0 %v3654_v47 }
  0xd1   : > { %3356 = vmatpush3.bf16.msra.mxu1 %v3653_v46 }
  0xd2   : > { %2596 = vmatmul.mubr.bf16.vlgmr.msra.gmra.mrb[40].mxu0 %v3650_v44 }
  0xd3   : > { %3376 = vmatpush3.bf16.msra.mxu0 %v3654_v47  ;;  %2603 = vmatprep.mubr.bf16.mxu0 %v3659_v51 }
  0xd4   : > { %2645 = vmatmul.mubr.bf16.vlgmr.msra.gmra.mrb[40].mxu1 %v3655_v48  ;;  %3377 = vmatprep.subr.bf16.mxu0 %v3658_v50 }
  0xd5   : > { %2652 = vmatprep.mubr.bf16.mxu1 %v3663_v54  ;;  %v623_v8 = vpop.permute.xlu0 %622 }
  0xd7   : > { %3378 = vmatpush3.bf16.msra.mxu0 %v3658_v50 }
  0xd8   : > { %3379 = vmatprep.subr.bf16.mxu0 %v3662_v53 }
  0xda   : > { %2604 = vmatmul.mubr.bf16.gmra.mrb[44].mxu0 %v3661_v52 }
  0xdb   : > { %3383 = vmatprep.mubr.msk.bf16.mxu0 %vm2066_vm0, %v3667_v57  ;;  %3380 = vmatpush3.bf16.msra.mxu0 %v3662_v53 }
  0xdc   : > { %2653 = vmatmul.mubr.bf16.gmra.mrb[44].mxu1 %v3665_v55  ;;  %3381 = vmatprep.subr.bf16.mxu0 %v3666_v56 }
  0xdd   : > { %v628_v20 = vpop.permute.xlu0 %627 }
  0xdf   : > { %3382 = vmatpush3.bf16.msra.mxu0 %v3666_v56 }
  0xe2   : > { %3384 = vmatmul.mubr.msk.bf16.vlgmr.msra.gmra.mrb[48].mxu0 %vm2066_vm0, %v3668_v58 }
  0xef   : > { %v633_v36 = vpop.permute.xlu1 %632 }
  0xf5   : > { %v638_v44 = vpop.permute.xlu1 %637 }
 0x105   : > { %v3049_v59 = vpop.f32.mrb[0].mxu0 }
 0x106   : > { %v3050_v60 = vpop.f32.mrb[1].mxu0 }
 0x107   : > { %v3051_v61 = vadd.f32 %v3050_v60, %v3049_v59  ;;  %v3052_v62 = vpop.f32.mrb[2].mxu0  ;;  %v3077_v63 = vpop.f32.mrb[0].mxu1 }
 0x108   : > { %v3053_v0 = vpop.f32.mrb[3].mxu0  ;;  %v3078_v1 = vpop.f32.mrb[1].mxu1 }
 0x109   : > { %v3054_v2 = vadd.f32 %v3053_v0, %v3052_v62  ;;  %v3079_v3 = vadd.f32 %v3078_v1, %v3077_v63  ;;  %v3080_v4 = vpop.f32.mrb[2].mxu1  ;;  %v2108_v10 = vadd.f32 %v3051_v61, %v623_v8 }
 0x10a   : > { %v3081_v5 = vpop.f32.mrb[3].mxu1 }
 0x10b   : > { %v3082_v6 = vadd.f32 %v3081_v5, %v3080_v4  ;;  %v2157_v16 = vadd.f32 %v3079_v3, %v2108_v10  ;;  %v2111_v22 = vadd.f32 %v3054_v2, %v628_v20 }
 0x10d   : > { %v3055_v7 = vpop.f32.mrb[4].mxu0  ;;  %v2160_v24 = vadd.f32 %v3082_v6, %v2111_v22 }
 0x10e   : > { %v3056_v9 = vpop.f32.mrb[5].mxu0 }
 0x10f   : > { %v3057_v11 = vadd.f32 %v3056_v9, %v3055_v7  ;;  %v3058_v12 = vpop.f32.mrb[6].mxu0  ;;  %v3083_v13 = vpop.f32.mrb[4].mxu1 }
 0x110   : > { %v3059_v14 = vpop.f32.mrb[7].mxu0  ;;  %v3084_v15 = vpop.f32.mrb[5].mxu1 }
 0x111   : > { %v3060_v17 = vadd.f32 %v3059_v14, %v3058_v12  ;;  %v3085_v18 = vadd.f32 %v3084_v15, %v3083_v13  ;;  %v3086_v19 = vpop.f32.mrb[6].mxu1  ;;  %v2116_v38 = vadd.f32 %v3057_v11, %v633_v36 }
 0x112   : > { %v3087_v21 = vpop.f32.mrb[7].mxu1 }
 0x113   : > { %v3088_v23 = vadd.f32 %v3087_v21, %v3086_v19  ;;  %v2165_v42 = vadd.f32 %v3085_v18, %v2116_v38  ;;  %v2119_v45 = vadd.f32 %v3060_v17, %v638_v44 }
 0x115   : > { %v2168_v48 = vadd.f32 %v3088_v23, %v2119_v45 }
 0x125   : > { %v3105_v25 = vpop.f32.mrb[8].mxu0 }
 0x126   : > { %v3106_v26 = vpop.f32.mrb[9].mxu0 }
 0x127   : > { %v3107_v27 = vadd.f32 %v3106_v26, %v3105_v25  ;;  %v3108_v28 = vpop.f32.mrb[10].mxu0  ;;  %v3133_v29 = vpop.f32.mrb[8].mxu1 }
 0x128   : > { %v3109_v30 = vpop.f32.mrb[11].mxu0  ;;  %v3134_v31 = vpop.f32.mrb[9].mxu1 }
 0x129   : > { %v2206_v32 = vadd.f32 %v3107_v27, %v2157_v16  ;;  %v3110_v33 = vadd.f32 %v3109_v30, %v3108_v28  ;;  %v3135_v34 = vadd.f32 %v3134_v31, %v3133_v29  ;;  %v3136_v35 = vpop.f32.mrb[10].mxu1 }
 0x12a   : > { %v3137_v37 = vpop.f32.mrb[11].mxu1 }
 0x12b   : > { %v2209_v39 = vadd.f32 %v3110_v33, %v2160_v24  ;;  %v2255_v40 = vadd.f32 %v3135_v34, %v2206_v32  ;;  %v3138_v41 = vadd.f32 %v3137_v37, %v3136_v35 }
 0x12d   : > { %v2258_v43 = vadd.f32 %v3138_v41, %v2209_v39  ;;  %v3111_v46 = vpop.f32.mrb[12].mxu0 }
 0x12e   : > { %v3112_v47 = vpop.f32.mrb[13].mxu0 }
 0x12f   : > { %v3113_v49 = vadd.f32 %v3112_v47, %v3111_v46  ;;  %v3114_v50 = vpop.f32.mrb[14].mxu0  ;;  %v3139_v51 = vpop.f32.mrb[12].mxu1 }
 0x130   : > { %v3115_v52 = vpop.f32.mrb[15].mxu0  ;;  %v3140_v55 = vpop.f32.mrb[13].mxu1 }
 0x131   : > { %v2214_v53 = vadd.f32 %v3113_v49, %v2165_v42  ;;  %v3116_v54 = vadd.f32 %v3115_v52, %v3114_v50  ;;  %v3141_v56 = vadd.f32 %v3140_v55, %v3139_v51  ;;  %v3142_v57 = vpop.f32.mrb[14].mxu1 }
 0x132   : > { %v3143_v59 = vpop.f32.mrb[15].mxu1 }
 0x133   : > { %v2217_v58 = vadd.f32 %v3116_v54, %v2168_v48  ;;  %v2263_v60 = vadd.f32 %v3141_v56, %v2214_v53  ;;  %v3144_v61 = vadd.f32 %v3143_v59, %v3142_v57 }
 0x135   : > { %v2266_v62 = vadd.f32 %v3144_v61, %v2217_v58 }
 0x145   : > { %v3161_v63 = vpop.f32.mrb[16].mxu0 }
 0x146   : > { %v3162_v0 = vpop.f32.mrb[17].mxu0 }
 0x147   : > { %v3163_v1 = vadd.f32 %v3162_v0, %v3161_v63  ;;  %v3164_v2 = vpop.f32.mrb[18].mxu0  ;;  %v3189_v5 = vpop.f32.mrb[16].mxu1 }
 0x148   : > { %v3165_v3 = vpop.f32.mrb[19].mxu0  ;;  %v3190_v7 = vpop.f32.mrb[17].mxu1 }
 0x149   : > { %v2304_v4 = vadd.f32 %v3163_v1, %v2255_v40  ;;  %v3166_v6 = vadd.f32 %v3165_v3, %v3164_v2  ;;  %v3191_v9 = vadd.f32 %v3190_v7, %v3189_v5  ;;  %v3192_v10 = vpop.f32.mrb[18].mxu1 }
 0x14a   : > { %v3193_v11 = vpop.f32.mrb[19].mxu1 }
 0x14b   : > { %v2307_v8 = vadd.f32 %v3166_v6, %v2258_v43  ;;  %v2353_v12 = vadd.f32 %v3191_v9, %v2304_v4  ;;  %v3194_v13 = vadd.f32 %v3193_v11, %v3192_v10 }
 0x14d   : > { %v2356_v14 = vadd.f32 %v3194_v13, %v2307_v8  ;;  %v3167_v15 = vpop.f32.mrb[20].mxu0 }
 0x14e   : > { %v3168_v16 = vpop.f32.mrb[21].mxu0 }
 0x14f   : > { %v3169_v17 = vadd.f32 %v3168_v16, %v3167_v15  ;;  %v3170_v18 = vpop.f32.mrb[22].mxu0  ;;  %v3195_v19 = vpop.f32.mrb[20].mxu1 }
 0x150   : > { %v3171_v20 = vpop.f32.mrb[23].mxu0  ;;  %v3196_v23 = vpop.f32.mrb[21].mxu1 }
 0x151   : > { %v2312_v21 = vadd.f32 %v3169_v17, %v2263_v60  ;;  %v3172_v22 = vadd.f32 %v3171_v20, %v3170_v18  ;;  %v3197_v24 = vadd.f32 %v3196_v23, %v3195_v19  ;;  %v3198_v25 = vpop.f32.mrb[22].mxu1 }
 0x152   : > { %v3199_v27 = vpop.f32.mrb[23].mxu1 }
 0x153   : > { %v2315_v26 = vadd.f32 %v3172_v22, %v2266_v62  ;;  %v2361_v28 = vadd.f32 %v3197_v24, %v2312_v21  ;;  %v3200_v29 = vadd.f32 %v3199_v27, %v3198_v25 }
 0x155   : > { %v2364_v30 = vadd.f32 %v3200_v29, %v2315_v26 }
 0x165   : > { %v3217_v31 = vpop.f32.mrb[24].mxu0 }
 0x166   : > { %v3218_v32 = vpop.f32.mrb[25].mxu0 }
 0x167   : > { %v3219_v33 = vadd.f32 %v3218_v32, %v3217_v31  ;;  %v3220_v34 = vpop.f32.mrb[26].mxu0  ;;  %v3245_v37 = vpop.f32.mrb[24].mxu1 }
 0x168   : > { %v3221_v35 = vpop.f32.mrb[27].mxu0  ;;  %v3246_v39 = vpop.f32.mrb[25].mxu1 }
 0x169   : > { %v2402_v36 = vadd.f32 %v3219_v33, %v2353_v12  ;;  %v3222_v38 = vadd.f32 %v3221_v35, %v3220_v34  ;;  %v3247_v41 = vadd.f32 %v3246_v39, %v3245_v37  ;;  %v3248_v42 = vpop.f32.mrb[26].mxu1 }
 0x16a   : > { %v3249_v43 = vpop.f32.mrb[27].mxu1 }
 0x16b   : > { %v2405_v40 = vadd.f32 %v3222_v38, %v2356_v14  ;;  %v2451_v44 = vadd.f32 %v3247_v41, %v2402_v36  ;;  %v3250_v45 = vadd.f32 %v3249_v43, %v3248_v42 }
 0x16d   : > { %v2454_v46 = vadd.f32 %v3250_v45, %v2405_v40  ;;  %v3223_v47 = vpop.f32.mrb[28].mxu0 }
 0x16e   : > { %v3224_v48 = vpop.f32.mrb[29].mxu0 }
 0x16f   : > { %v3225_v49 = vadd.f32 %v3224_v48, %v3223_v47  ;;  %v3226_v50 = vpop.f32.mrb[30].mxu0  ;;  %v3251_v51 = vpop.f32.mrb[28].mxu1 }
 0x170   : > { %v3227_v52 = vpop.f32.mrb[31].mxu0  ;;  %v3252_v55 = vpop.f32.mrb[29].mxu1 }
 0x171   : > { %v2410_v53 = vadd.f32 %v3225_v49, %v2361_v28  ;;  %v3228_v54 = vadd.f32 %v3227_v52, %v3226_v50  ;;  %v3253_v56 = vadd.f32 %v3252_v55, %v3251_v51  ;;  %v3254_v57 = vpop.f32.mrb[30].mxu1 }
 0x172   : > { %v3255_v59 = vpop.f32.mrb[31].mxu1 }
 0x173   : > { %v2413_v58 = vadd.f32 %v3228_v54, %v2364_v30  ;;  %v2459_v60 = vadd.f32 %v3253_v56, %v2410_v53  ;;  %v3256_v61 = vadd.f32 %v3255_v59, %v3254_v57 }
 0x175   : > { %v2462_v62 = vadd.f32 %v3256_v61, %v2413_v58 }
 0x185   : > { %v3273_v63 = vpop.f32.mrb[32].mxu0 }
 0x186   : > { %v3274_v0 = vpop.f32.mrb[33].mxu0 }
 0x187   : > { %v3275_v1 = vadd.f32 %v3274_v0, %v3273_v63  ;;  %v3276_v2 = vpop.f32.mrb[34].mxu0  ;;  %v3301_v5 = vpop.f32.mrb[32].mxu1 }
 0x188   : > { %v3277_v3 = vpop.f32.mrb[35].mxu0  ;;  %v3302_v7 = vpop.f32.mrb[33].mxu1 }
 0x189   : > { %v2500_v4 = vadd.f32 %v3275_v1, %v2451_v44  ;;  %v3278_v6 = vadd.f32 %v3277_v3, %v3276_v2  ;;  %v3303_v9 = vadd.f32 %v3302_v7, %v3301_v5  ;;  %v3304_v10 = vpop.f32.mrb[34].mxu1 }
 0x18a   : > { %v3305_v11 = vpop.f32.mrb[35].mxu1 }
 0x18b   : > { %v2503_v8 = vadd.f32 %v3278_v6, %v2454_v46  ;;  %v2549_v12 = vadd.f32 %v3303_v9, %v2500_v4  ;;  %v3306_v13 = vadd.f32 %v3305_v11, %v3304_v10 }
 0x18d   : > { %v2552_v14 = vadd.f32 %v3306_v13, %v2503_v8  ;;  %v3279_v15 = vpop.f32.mrb[36].mxu0 }
 0x18e   : > { %v3280_v16 = vpop.f32.mrb[37].mxu0 }
 0x18f   : > { %v3281_v17 = vadd.f32 %v3280_v16, %v3279_v15  ;;  %v3282_v18 = vpop.f32.mrb[38].mxu0  ;;  %v3307_v19 = vpop.f32.mrb[36].mxu1 }
 0x190   : > { %v3283_v20 = vpop.f32.mrb[39].mxu0  ;;  %v3308_v23 = vpop.f32.mrb[37].mxu1 }
 0x191   : > { %v2508_v21 = vadd.f32 %v3281_v17, %v2459_v60  ;;  %v3284_v22 = vadd.f32 %v3283_v20, %v3282_v18  ;;  %v3309_v24 = vadd.f32 %v3308_v23, %v3307_v19  ;;  %v3310_v25 = vpop.f32.mrb[38].mxu1 }
 0x192   : > { %v3311_v27 = vpop.f32.mrb[39].mxu1 }
 0x193   : > { %v2511_v26 = vadd.f32 %v3284_v22, %v2462_v62  ;;  %v2557_v28 = vadd.f32 %v3309_v24, %v2508_v21  ;;  %v3312_v29 = vadd.f32 %v3311_v27, %v3310_v25 }
 0x195   : > { %v2560_v30 = vadd.f32 %v3312_v29, %v2511_v26 }
 0x1a5   : > { %v3329_v31 = vpop.f32.mrb[40].mxu0 }
 0x1a6   : > { %v3330_v32 = vpop.f32.mrb[41].mxu0 }
 0x1a7   : > { %v3331_v33 = vadd.f32 %v3330_v32, %v3329_v31  ;;  %v3332_v34 = vpop.f32.mrb[42].mxu0  ;;  %v3357_v35 = vpop.f32.mrb[40].mxu1 }
 0x1a8   : > { %v3333_v36 = vpop.f32.mrb[43].mxu0  ;;  %v3358_v39 = vpop.f32.mrb[41].mxu1 }
 0x1a9   : > { %v2598_v37 = vadd.f32 %v3331_v33, %v2549_v12  ;;  %v3334_v38 = vadd.f32 %v3333_v36, %v3332_v34  ;;  %v3359_v40 = vadd.f32 %v3358_v39, %v3357_v35  ;;  %v3360_v41 = vpop.f32.mrb[42].mxu1 }
 0x1aa   : > { %v3361_v43 = vpop.f32.mrb[43].mxu1 }
 0x1ab   : > { %v2601_v42 = vadd.f32 %v3334_v38, %v2552_v14  ;;  %v3362_v44 = vadd.f32 %v3361_v43, %v3360_v41  ;;  %v2647_v45 = vadd.f32 %v3359_v40, %v2598_v37 }
 0x1ad   : > { %v3335_v46 = vpop.f32.mrb[44].mxu0  ;;  %v2650_v48 = vadd.f32 %v3362_v44, %v2601_v42 }
 0x1ae   : > { %v3336_v47 = vpop.f32.mrb[45].mxu0 }
 0x1af   : > { %v3337_v49 = vadd.f32 %v3336_v47, %v3335_v46  ;;  %v3338_v50 = vpop.f32.mrb[46].mxu0  ;;  %v3363_v51 = vpop.f32.mrb[44].mxu1 }
 0x1b0   : > { %v3339_v52 = vpop.f32.mrb[47].mxu0  ;;  %v3364_v55 = vpop.f32.mrb[45].mxu1 }
 0x1b1   : > { %v2606_v53 = vadd.f32 %v3337_v49, %v2557_v28  ;;  %v3340_v54 = vadd.f32 %v3339_v52, %v3338_v50  ;;  %v3365_v56 = vadd.f32 %v3364_v55, %v3363_v51  ;;  %v3366_v57 = vpop.f32.mrb[46].mxu1 }
 0x1b2   : > { %v3367_v59 = vpop.f32.mrb[47].mxu1 }
 0x1b3   : > { %v2609_v58 = vadd.f32 %v3340_v54, %v2560_v30  ;;  %v3368_v60 = vadd.f32 %v3367_v59, %v3366_v57  ;;  %v2655_v61 = vadd.f32 %v3365_v56, %v2606_v53 }
 0x1b5   : > { %v3385_v62 = vpop.f32.mrb[48].mxu0  ;;  %v2658_v63 = vadd.f32 %v3368_v60, %v2609_v58 }
 0x1b6   : > { %v2704_v0 = vadd.f32 %v3385_v62, %v2655_v61  ;;  %v2695_v1 = vpop.f32.mrb[49].mxu0 }
 0x1b7   : > { %v2696_v2 = vadd.f32 %v2695_v1, %v2647_v45  ;;  %v3386_v3 = vpop.f32.mrb[50].mxu0 }
 0x1b8   : > { %v2712_v4 = vmax.f32 %v2704_v0, 0.0  ;;  %v2707_v5 = vadd.f32 %v3386_v3, %v2658_v63  ;;  %v2698_v6 = vpop.f32.mrb[51].mxu0 }
 0x1b9   : > { %v2710_v7 = vmax.f32 %v2696_v2, 0.0  ;;  %v2699_v8 = vadd.f32 %v2698_v6, %v2650_v48 }
 0x1ba   : > { %2717 = vst.msk [vmem:[%s170_s5 + $0x10] sm:$0xff] %vm2714_vm1, %v2712_v4  ;;  %v2713_v9 = vmax.f32 %v2707_v5, 0.0 }
 0x1bb   : > { %2715 = vst.msk [vmem:[%s170_s5] sm:$0xff] %vm2714_vm1, %v2710_v7  ;;  %v2711_v10 = vmax.f32 %v2699_v8, 0.0 }
 0x1bc   : > { %2718 = vst.msk [vmem:[%s170_s5 + $0x18] sm:$0xff] %vm2714_vm1, %v2713_v9 }
 0x1bd   : > { %2716 = vst.msk [vmem:[%s170_s5 + $0x8] sm:$0xff] %vm2714_vm1, %v2711_v10 }
 0x1be PF: > { %s13_s12 = sadd.s32 1, %s3675_s12  }
 0x1bf   : > { %p10_p4 = scmp.ge.s32.totalorder %s13_s12, 4  }
 0x1c1   :  { %12 = sbr.rel (!%p10_p4) target bundleno = 1 (0x1), region = 62 }

// kernel: tile.13
= control target key start
LH: loop header
LB: loop body
LE: loop exit
PB: predicated region body
PF: predicated region fallthrough
CT: control target
= control target key end

     0   :  { %s22_s0 = inlined_call_operand.vmem [shape: f32[16], index: 0, kind: input, shape index: {}]   ;;  %s23_s1 = inlined_call_operand.vmem [shape: f32[4,16], index: 1, kind: output, shape index: {}]  }
   0x1   :  { %v4_v0 = vld [vmem:[%s22_s0] ss:$0 sm:$0xff] }
   0x2   :  { %5 = vst [vmem:[%s23_s1] sm:$0xf] %v4_v0 }

// kernel: tile.0
= control target key start
LH: loop header
LB: loop body
LE: loop exit
PB: predicated region body
PF: predicated region fallthrough
CT: control target
= control target key end

     0   :  { %s176_s8 = smov 125   ;;  %s177_s9 = smov 126   ;;  %vm7_vm0 = vcmask 7168   ;;  %s331_s0 = inlined_call_operand.vmem [shape: f32[4,16], index: 0, kind: input, shape index: {}]   ;;  %s332_s1 = inlined_call_operand.vmem [shape: f32[64,1], index: 1, kind: output, shape index: {}]  }
   0x1   :  { %v4_v0 = vld [vmem:[%s331_s0] sm:$0xf]  ;;  %s175_s0 = smov 127   ;;  %s178_s10 = smov 124  }
   0x2   :  { %5 = vst [vmem:[#allocation0] sm:$0xf] %v4_v0  ;;  %s179_s11 = smov 123   ;;  %s180_s12 = smov 122  }
   0x3   :  { %s181_s13 = smov 121   ;;  %s182_s14 = smov 120  }
   0x4   :  { %s183_s19 = smov 119   ;;  %s184_s20 = smov 118  }
   0x5   :  { %s185_s21 = smov 117   ;;  %s186_s22 = smov 116  }
   0x6   :  { %s187_s23 = smov 115   ;;  %s188_s24 = smov 114  }
   0x7   :  { %s189_s25 = smov 113  }
   0x9   :  { %v10_v1 = vld [vmem:[#allocation0] sm:$0xf]  }
   0xa   :  { %v26_v2 = vld [vmem:[#allocation0] sm:$0xf]   ;;  %11 = vrot.lane.b32.xlu0 %v10_v1, %s175_s0 }
   0xb   :  { %27 = vrot.lane.b32.xlu1 %v26_v2, %s176_s8  ;;  %v18_v3 = vld [vmem:[#allocation0] sm:$0xf]  }
   0xc   :  { %v34_v4 = vld [vmem:[#allocation0] sm:$0xf]  }
   0xd   :  { %v42_v5 = vld [vmem:[#allocation0] sm:$0xf]  }
   0xe   :  { %19 = vrot.lane.b32.xlu0 %v18_v3, %s177_s9  ;;  %v50_v6 = vld [vmem:[#allocation0] sm:$0xf]  }
   0xf   :  { %35 = vrot.lane.b32.xlu1 %v34_v4, %s178_s10  ;;  %v58_v7 = vld [vmem:[#allocation0] sm:$0xf]  }
  0x10   :  { %v66_v8 = vld [vmem:[#allocation0] sm:$0xf]  }
  0x11   :  { %v74_v9 = vld [vmem:[#allocation0] sm:$0xf]  }
  0x12   :  { %43 = vrot.lane.b32.xlu0 %v42_v5, %s179_s11  ;;  %v82_v10 = vld [vmem:[#allocation0] sm:$0xf]  }
  0x13   :  { %51 = vrot.lane.b32.xlu1 %v50_v6, %s180_s12  ;;  %v6_v11 = vld [vmem:[#allocation0] sm:$0xf]  }
  0x14   :  { %8 = vst.msk [vmem:[%s332_s1] ss:$16 sm:$0x3] %vm7_vm0, %v6_v11   ;;  %9 = vst.msk [vmem:[%s332_s1] ss:$16 sm:$0xc] %vm7_vm0, %v6_v11  }
  0x15   :  { %v90_v12 = vld [vmem:[#allocation0] sm:$0xf]  }
  0x16   :  { %59 = vrot.lane.b32.xlu0 %v58_v7, %s181_s13  ;;  %v98_v13 = vld [vmem:[#allocation0] sm:$0xf]  }
  0x17   :  { %67 = vrot.lane.b32.xlu1 %v66_v8, %s182_s14  ;;  %v106_v14 = vld [vmem:[#allocation0] sm:$0xf]  }
  0x18   :  { %v114_v15 = vld [vmem:[#allocation0] sm:$0xf]  }
  0x19   :  { %v122_v16 = vld [vmem:[#allocation0] sm:$0xf]  }
  0x1a   :  { %75 = vrot.lane.b32.xlu0 %v74_v9, %s183_s19 }
  0x1b   :  { %83 = vrot.lane.b32.xlu1 %v82_v10, %s184_s20 }
  0x1e   :  { %91 = vrot.lane.b32.xlu0 %v90_v12, %s185_s21 }
  0x1f   :  { %99 = vrot.lane.b32.xlu1 %v98_v13, %s186_s22 }
  0x22   :  { %107 = vrot.lane.b32.xlu0 %v106_v14, %s187_s23 }
  0x23   :  { %115 = vrot.lane.b32.xlu1 %v114_v15, %s188_s24 }
  0x26   :  { %123 = vrot.lane.b32.xlu0 %v122_v16, %s189_s25 }
  0x7c   :  { %v12_v17 = vpop.permute.xlu0 %11  }
  0x7d   :  { %v28_v18 = vpop.permute.xlu1 %27   ;;  %130 = vst.msk [vmem:[%s332_s1 + $0x1] ss:$16 sm:$0x3] %vm7_vm0, %v12_v17   ;;  %131 = vst.msk [vmem:[%s332_s1 + $0x1] ss:$16 sm:$0xc] %vm7_vm0, %v12_v17  }
  0x7e   :  { %134 = vst.msk [vmem:[%s332_s1 + $0x3] ss:$16 sm:$0x3] %vm7_vm0, %v28_v18   ;;  %135 = vst.msk [vmem:[%s332_s1 + $0x3] ss:$16 sm:$0xc] %vm7_vm0, %v28_v18  }
  0x80   :  { %v20_v19 = vpop.permute.xlu0 %19  }
  0x81   :  { %v36_v20 = vpop.permute.xlu1 %35   ;;  %132 = vst.msk [vmem:[%s332_s1 + $0x2] ss:$16 sm:$0x3] %vm7_vm0, %v20_v19   ;;  %133 = vst.msk [vmem:[%s332_s1 + $0x2] ss:$16 sm:$0xc] %vm7_vm0, %v20_v19  }
  0x82   :  { %136 = vst.msk [vmem:[%s332_s1 + $0x4] ss:$16 sm:$0x3] %vm7_vm0, %v36_v20   ;;  %137 = vst.msk [vmem:[%s332_s1 + $0x4] ss:$16 sm:$0xc] %vm7_vm0, %v36_v20  }
  0x84   :  { %v44_v21 = vpop.permute.xlu0 %43  }
  0x85   :  { %v52_v22 = vpop.permute.xlu1 %51   ;;  %138 = vst.msk [vmem:[%s332_s1 + $0x5] ss:$16 sm:$0x3] %vm7_vm0, %v44_v21   ;;  %139 = vst.msk [vmem:[%s332_s1 + $0x5] ss:$16 sm:$0xc] %vm7_vm0, %v44_v21  }
  0x86   :  { %140 = vst.msk [vmem:[%s332_s1 + $0x6] ss:$16 sm:$0x3] %vm7_vm0, %v52_v22   ;;  %141 = vst.msk [vmem:[%s332_s1 + $0x6] ss:$16 sm:$0xc] %vm7_vm0, %v52_v22  }
  0x88   :  { %v60_v23 = vpop.permute.xlu0 %59  }
  0x89   :  { %v68_v24 = vpop.permute.xlu1 %67   ;;  %142 = vst.msk [vmem:[%s332_s1 + $0x7] ss:$16 sm:$0x3] %vm7_vm0, %v60_v23   ;;  %143 = vst.msk [vmem:[%s332_s1 + $0x7] ss:$16 sm:$0xc] %vm7_vm0, %v60_v23  }
  0x8a   :  { %144 = vst.msk [vmem:[%s332_s1 + $0x8] ss:$16 sm:$0x3] %vm7_vm0, %v68_v24   ;;  %145 = vst.msk [vmem:[%s332_s1 + $0x8] ss:$16 sm:$0xc] %vm7_vm0, %v68_v24  }
  0x8c   :  { %v76_v25 = vpop.permute.xlu0 %75  }
  0x8d   :  { %v84_v26 = vpop.permute.xlu1 %83   ;;  %146 = vst.msk [vmem:[%s332_s1 + $0x9] ss:$16 sm:$0x3] %vm7_vm0, %v76_v25   ;;  %147 = vst.msk [vmem:[%s332_s1 + $0x9] ss:$16 sm:$0xc] %vm7_vm0, %v76_v25  }
  0x8e   :  { %148 = vst.msk [vmem:[%s332_s1 + $0xa] ss:$16 sm:$0x3] %vm7_vm0, %v84_v26   ;;  %149 = vst.msk [vmem:[%s332_s1 + $0xa] ss:$16 sm:$0xc] %vm7_vm0, %v84_v26  }
  0x90   :  { %v92_v27 = vpop.permute.xlu0 %91  }
  0x91   :  { %v100_v28 = vpop.permute.xlu1 %99   ;;  %150 = vst.msk [vmem:[%s332_s1 + $0xb] ss:$16 sm:$0x3] %vm7_vm0, %v92_v27   ;;  %151 = vst.msk [vmem:[%s332_s1 + $0xb] ss:$16 sm:$0xc] %vm7_vm0, %v92_v27  }
  0x92   :  { %152 = vst.msk [vmem:[%s332_s1 + $0xc] ss:$16 sm:$0x3] %vm7_vm0, %v100_v28   ;;  %153 = vst.msk [vmem:[%s332_s1 + $0xc] ss:$16 sm:$0xc] %vm7_vm0, %v100_v28  }
  0x94   :  { %v108_v29 = vpop.permute.xlu0 %107  }
  0x95   :  { %v116_v30 = vpop.permute.xlu1 %115   ;;  %154 = vst.msk [vmem:[%s332_s1 + $0xd] ss:$16 sm:$0x3] %vm7_vm0, %v108_v29   ;;  %155 = vst.msk [vmem:[%s332_s1 + $0xd] ss:$16 sm:$0xc] %vm7_vm0, %v108_v29  }
  0x96   :  { %156 = vst.msk [vmem:[%s332_s1 + $0xe] ss:$16 sm:$0x3] %vm7_vm0, %v116_v30   ;;  %157 = vst.msk [vmem:[%s332_s1 + $0xe] ss:$16 sm:$0xc] %vm7_vm0, %v116_v30  }
  0x98   :  { %v124_v31 = vpop.permute.xlu0 %123  }
  0x99   :  { %158 = vst.msk [vmem:[%s332_s1 + $0xf] ss:$16 sm:$0x3] %vm7_vm0, %v124_v31   ;;  %159 = vst.msk [vmem:[%s332_s1 + $0xf] ss:$16 sm:$0xc] %vm7_vm0, %v124_v31  }

// kernel: autoencoder_forward.10
= control target key start
LH: loop header
LB: loop body
LE: loop exit
PB: predicated region body
PF: predicated region fallthrough
CT: control target
= control target key end

     0   :  { %s582_s12 = smov 0   ;;  %s660_s0 = inlined_call_operand.vmem [shape: bf16[64,128], index: 0, kind: input, shape index: {}]   ;;  %s661_s1 = inlined_call_operand.vmem [shape: bf16[2,128,49], index: 1, kind: input, shape index: {}]   ;;  %s662_s2 = inlined_call_operand.vmem [shape: f32[64,1], index: 2, kind: input, shape index: {}]   ;;  %s663_s3 = inlined_call_operand.vmem [shape: f32[2,64,49], index: 3, kind: output, shape index: {}]  }
   0x1 LB: > { %s453_s13 = sadd.s32 4294967295, %s559_s12   ;;  %p457_p0 = scmp.ge.s32.totalorder %s559_s12, 1  ;;  %s559_s12 = sphi %s582_s12, %s13_s12  }
   0x2   : > { %p137_p1 = scmp.lt.s32.totalorder %s559_s12, 3 }
   0x4   : > { %p138_p2 = pnand %p457_p0, %p137_p1 }
   0x5   : > { %p161_p3 = scmp.lt.s32.totalorder (!%p138_p2), %s453_s13, 1  ;;  %v549_v0 = vld [vmem:[%s660_s0] sm:$0xff] (!%p138_p2)   ;;  %v550_v1 = vld [vmem:[%s660_s0 + $0x10] sm:$0xff] (!%p138_p2)   ;;  %v561_v2 = vmov (!%p138_p2), 0   ;;  %v199_v6 = vld [vmem:[%s662_s2 + $0x18] sm:$0xff] (!%p138_p2)  ;;  %vm389_vm0 = vcmask (!%p138_p2), 400384  }
   0x6   : > { %141 = sbr.rel (%p138_p2) target bundleno = 269 (0x10d), region = 32  ;;  %506 = vmatprep.mubr.bf16.mxu0 (!%p138_p2), %v549_v0  ;;  %540 = vset.pattern.permute.xlu1 (!%p138_p2), %v561_v2  ;;  %v198_v3 = vld [vmem:[%s662_s2 + $0x10] sm:$0xff] (!%p138_p2)  ;;  %v196_v4 = vld [vmem:[%s662_s2] sm:$0xff] (!%p138_p2)  ;;  %v197_v8 = vld [vmem:[%s662_s2 + $0x8] sm:$0xff] (!%p138_p2) }
   0x7   : > { %510 = vmatprep.mubr.bf16.mxu1 (!%p138_p2), %v550_v1  ;;  %539 = vset.pattern.permute.xlu0 (!%p138_p2), %v561_v2  ;;  %v201_v10 = vld [vmem:[%s662_s2 + $0x28] sm:$0xff] (!%p138_p2)  ;;  %v200_v11 = vld [vmem:[%s662_s2 + $0x20] sm:$0xff] (!%p138_p2)  ;;  %v203_v13 = vld [vmem:[%s662_s2 + $0x38] sm:$0xff] (!%p138_p2) }
   0x8   : > { %216 = vperm.xlu1 (!%p138_p2), %540, %v198_v3   ;;  %206 = vperm.xlu0 (!%p138_p2), %539, %v196_v4   ;;  %v202_v14 = vld [vmem:[%s662_s2 + $0x30] sm:$0xff] (!%p138_p2)  ;;  %v551_v19 = vld [vmem:[%s660_s0 + $0x8] sm:$0xff] (!%p138_p2)   ;;  %v552_v20 = vld [vmem:[%s660_s0 + $0x18] sm:$0xff] (!%p138_p2)  }
   0xc   : > { %221 = vperm.xlu1 (!%p138_p2), %540, %v199_v6   ;;  %211 = vperm.xlu0 (!%p138_p2), %539, %v197_v8  }
   0xd   : > { %s665_s13 = smov (!%p161_p3, %s453_s13), 1 }
   0xe   : > { %s476_s18 = sshll.u32 %s665_s13, 6 }
   0xf   : > { %s610_s25 = scalar_lea.vmem %s661_s1, %s476_s18  ;;  %s170_s20 = scalar_lea.vmem %s663_s3, %s476_s18 }
  0x10   : > { %v541_v5 = vld [vmem:[%s610_s25] sm:$0xff]   ;;  %v542_v7 = vld [vmem:[%s610_s25 + $0x8] sm:$0xff]   ;;  %v543_v9 = vld [vmem:[%s610_s25 + $0x10] sm:$0xff]   ;;  %231 = vperm.xlu1 %540, %v201_v10   ;;  %226 = vperm.xlu0 %539, %v200_v11  }
  0x11   : > { %490 = vmatprep.subr.bf16.mxu0 %v541_v5  ;;  %514 = vmatprep.subr.bf16.mxu1 %v541_v5  ;;  %v544_v12 = vld [vmem:[%s610_s25 + $0x18] sm:$0xff]   ;;  %v545_v15 = vld [vmem:[%s610_s25 + $0x20] sm:$0xff]   ;;  %v546_v16 = vld [vmem:[%s610_s25 + $0x28] sm:$0xff]  }
  0x12   : > { %491 = vmatpush3.bf16.msra.mxu0 %v541_v5  ;;  %522 = vmatpush3.bf16.msra.mxu1 %v541_v5  ;;  %v547_v17 = vld [vmem:[%s610_s25 + $0x30] sm:$0xff]   ;;  %v548_v18 = vld [vmem:[%s610_s25 + $0x38] sm:$0xff]  }
  0x13   : > { %492 = vmatprep.subr.bf16.mxu0 %v542_v7  ;;  %515 = vmatprep.subr.bf16.mxu1 %v542_v7 }
  0x14   : > { %241 = vperm.xlu1 %540, %v203_v13   ;;  %236 = vperm.xlu0 %539, %v202_v14  }
  0x16   : > { %493 = vmatpush3.bf16.msra.mxu0 %v542_v7  ;;  %523 = vmatpush3.bf16.msra.mxu1 %v542_v7 }
  0x17   : > { %494 = vmatprep.subr.bf16.mxu0 %v543_v9  ;;  %516 = vmatprep.subr.bf16.mxu1 %v543_v9 }
  0x1a   : > { %495 = vmatpush3.bf16.msra.mxu0 %v543_v9  ;;  %524 = vmatpush3.bf16.msra.mxu1 %v543_v9 }
  0x1b   : > { %496 = vmatprep.subr.bf16.mxu0 %v544_v12  ;;  %517 = vmatprep.subr.bf16.mxu1 %v544_v12 }
  0x1e   : > { %497 = vmatpush3.bf16.msra.mxu0 %v544_v12  ;;  %525 = vmatpush3.bf16.msra.mxu1 %v544_v12 }
  0x1f   : > { %498 = vmatprep.subr.bf16.mxu0 %v545_v15  ;;  %518 = vmatprep.subr.bf16.mxu1 %v545_v15 }
  0x22   : > { %499 = vmatpush3.bf16.msra.mxu0 %v545_v15  ;;  %526 = vmatpush3.bf16.msra.mxu1 %v545_v15 }
  0x23   : > { %500 = vmatprep.subr.bf16.mxu0 %v546_v16  ;;  %519 = vmatprep.subr.bf16.mxu1 %v546_v16 }
  0x26   : > { %501 = vmatpush3.bf16.msra.mxu0 %v546_v16  ;;  %527 = vmatpush3.bf16.msra.mxu1 %v546_v16 }
  0x27   : > { %502 = vmatprep.subr.bf16.mxu0 %v547_v17  ;;  %520 = vmatprep.subr.bf16.mxu1 %v547_v17 }
  0x2a   : > { %503 = vmatpush3.bf16.msra.mxu0 %v547_v17  ;;  %528 = vmatpush3.bf16.msra.mxu1 %v547_v17 }
  0x2b   : > { %504 = vmatprep.subr.bf16.mxu0 %v548_v18  ;;  %521 = vmatprep.subr.bf16.mxu1 %v548_v18 }
  0x2e   : > { %505 = vmatpush3.bf16.msra.mxu0 %v548_v18  ;;  %529 = vmatpush3.bf16.msra.mxu1 %v548_v18 }
  0x31   : > { %507 = vmatmul.mubr.bf16.vlgmr.msra.gmra.mrb[0].mxu0 %v551_v19  ;;  %511 = vmatmul.mubr.bf16.vlgmr.msra.gmra.mrb[0].mxu1 %v552_v20 }
  0x87   : > { %v217_v21 = vpop.permute.xlu1 %216  ;;  %v207_v22 = vpop.permute.xlu0 %206 }
  0x8b   : > { %v222_v23 = vpop.permute.xlu1 %221  ;;  %v212_v24 = vpop.permute.xlu0 %211 }
  0x8f   : > { %v232_v25 = vpop.permute.xlu1 %231  ;;  %v227_v26 = vpop.permute.xlu0 %226 }
  0x93   : > { %v242_v27 = vpop.permute.xlu1 %241  ;;  %v237_v28 = vpop.permute.xlu0 %236 }
 0x104   : > { %v508_v29 = vpop.f32.mrb[0].mxu0  ;;  %v512_v30 = vpop.f32.mrb[0].mxu1 }
 0x105   : > { %v359_v31 = vadd.f32 %v508_v29, %v217_v21  ;;  %v375_v32 = vadd.f32 %v512_v30, %v237_v28  ;;  %v350_v33 = vpop.f32.mrb[1].mxu0  ;;  %v366_v34 = vpop.f32.mrb[1].mxu1 }
 0x106   : > { %v351_v35 = vadd.f32 %v350_v33, %v207_v22  ;;  %v367_v36 = vadd.f32 %v366_v34, %v227_v26  ;;  %v509_v37 = vpop.f32.mrb[2].mxu0  ;;  %v513_v38 = vpop.f32.mrb[2].mxu1 }
 0x107   : > { %v383_v39 = vmax.f32 %v359_v31, 0.0  ;;  %v387_v40 = vmax.f32 %v375_v32, 0.0  ;;  %v362_v41 = vadd.f32 %v509_v37, %v222_v23  ;;  %v378_v42 = vadd.f32 %v513_v38, %v242_v27  ;;  %v353_v43 = vpop.f32.mrb[3].mxu0  ;;  %v369_v44 = vpop.f32.mrb[3].mxu1 }
 0x108   : > { %v381_v45 = vmax.f32 %v351_v35, 0.0  ;;  %v385_v46 = vmax.f32 %v367_v36, 0.0  ;;  %v354_v47 = vadd.f32 %v353_v43, %v212_v24  ;;  %v370_v48 = vadd.f32 %v369_v44, %v232_v25 }
 0x109   : > { %392 = vst.msk [vmem:[%s170_s20 + $0x10] sm:$0xff] %vm389_vm0, %v383_v39  ;;  %396 = vst.msk [vmem:[%s170_s20 + $0x30] sm:$0xff] %vm389_vm0, %v387_v40  ;;  %v384_v49 = vmax.f32 %v362_v41, 0.0  ;;  %v388_v50 = vmax.f32 %v378_v42, 0.0 }
 0x10a   : > { %390 = vst.msk [vmem:[%s170_s20] sm:$0xff] %vm389_vm0, %v381_v45  ;;  %394 = vst.msk [vmem:[%s170_s20 + $0x20] sm:$0xff] %vm389_vm0, %v385_v46  ;;  %v382_v51 = vmax.f32 %v354_v47, 0.0  ;;  %v386_v52 = vmax.f32 %v370_v48, 0.0 }
 0x10b   : > { %393 = vst.msk [vmem:[%s170_s20 + $0x18] sm:$0xff] %vm389_vm0, %v384_v49  ;;  %397 = vst.msk [vmem:[%s170_s20 + $0x38] sm:$0xff] %vm389_vm0, %v388_v50 }
 0x10c   : > { %391 = vst.msk [vmem:[%s170_s20 + $0x8] sm:$0xff] %vm389_vm0, %v382_v51  ;;  %395 = vst.msk [vmem:[%s170_s20 + $0x28] sm:$0xff] %vm389_vm0, %v386_v52 }
 0x10d PF: > { %s13_s12 = sadd.s32 1, %s559_s12  }
 0x10e   : > { %p10_p4 = scmp.ge.s32.totalorder %s13_s12, 4  }
 0x110   :  { %12 = sbr.rel (!%p10_p4) target bundleno = 1 (0x1), region = 62 }

// kernel: tile.18
= control target key start
LH: loop header
LB: loop body
LE: loop exit
PB: predicated region body
PF: predicated region fallthrough
CT: control target
= control target key end

     0   :  { %s22_s0 = inlined_call_operand.vmem [shape: f32[3], index: 0, kind: input, shape index: {}]   ;;  %s23_s1 = inlined_call_operand.vmem [shape: f32[4,3], index: 1, kind: output, shape index: {}]  }
   0x1   :  { %v4_v0 = vld [vmem:[%s22_s0] ss:$0 sm:$0xff] }
   0x2   :  { %5 = vst [vmem:[%s23_s1] sm:$0xf] %v4_v0 }

// kernel: tile.1
= control target key start
LH: loop header
LB: loop body
LE: loop exit
PB: predicated region body
PF: predicated region fallthrough
CT: control target
= control target key end

     0   :  { %vm7_vm0 = vcmask 7168   ;;  %s26_s10 = smov 126   ;;  %s49_s0 = inlined_call_operand.vmem [shape: f32[4,3], index: 0, kind: input, shape index: {}]   ;;  %s50_s1 = inlined_call_operand.vmem [shape: f32[12,1], index: 1, kind: output, shape index: {}]  }
   0x1   :  { %v4_v0 = vld [vmem:[%s49_s0] sm:$0xf]  ;;  %s25_s0 = smov 127  }
   0x2   :  { %5 = vst [vmem:[#allocation0] sm:$0xf] %v4_v0 }
   0x9   :  { %v9_v1 = vld [vmem:[#allocation0] sm:$0xf]  }
   0xa   :  { %v6_v2 = vld [vmem:[#allocation0] sm:$0xf]   ;;  %10 = vrot.lane.b32.xlu0 %v9_v1, %s25_s0 }
   0xb   :  { %8 = vst.msk [vmem:[%s50_s1] ss:$3 sm:$0xf] %vm7_vm0, %v6_v2   ;;  %v15_v3 = vld [vmem:[#allocation0] sm:$0xf]  }
   0xe   :  { %16 = vrot.lane.b32.xlu0 %v15_v3, %s26_s10 }
  0x7c   :  { %v11_v4 = vpop.permute.xlu0 %10  }
  0x7d   :  { %21 = vst.msk [vmem:[%s50_s1 + $0x1] ss:$3 sm:$0xf] %vm7_vm0, %v11_v4  }
  0x80   :  { %v17_v5 = vpop.permute.xlu0 %16  }
  0x81   :  { %22 = vst.msk [vmem:[%s50_s1 + $0x2] ss:$3 sm:$0xf] %vm7_vm0, %v17_v5  }

// kernel: autoencoder_forward.11
= control target key start
LH: loop header
LB: loop body
LE: loop exit
PB: predicated region body
PF: predicated region fallthrough
CT: control target
= control target key end

     0   :  { %s458_s12 = smov 0   ;;  %s488_s0 = inlined_call_operand.vmem [shape: bf16[12,64], index: 0, kind: input, shape index: {}]   ;;  %s489_s1 = inlined_call_operand.vmem [shape: bf16[2,64,196], index: 1, kind: input, shape index: {}]   ;;  %s490_s2 = inlined_call_operand.vmem [shape: f32[12,1], index: 2, kind: input, shape index: {}]   ;;  %s491_s3 = inlined_call_operand.vmem [shape: f32[2,12,196], index: 3, kind: output, shape index: {}]  }
   0x1 LB: > { %s367_s13 = sadd.s32 4294967295, %s435_s12   ;;  %p371_p0 = scmp.ge.s32.totalorder %s435_s12, 1  ;;  %s435_s12 = sphi %s458_s12, %s13_s12  }
   0x2   : > { %p137_p1 = scmp.lt.s32.totalorder %s435_s12, 3 }
   0x4   : > { %p138_p2 = pnand %p371_p0, %p137_p1 }
   0x5   : > { %p161_p3 = scmp.lt.s32.totalorder (!%p138_p2), %s367_s13, 1  ;;  %v437_v0 = vmov (!%p138_p2), 0   ;;  %v182_v1 = vld [vmem:[%s490_s2] sm:$0xff] (!%p138_p2)  ;;  %v183_v2 = vld [vmem:[%s490_s2 + $0x8] sm:$0xf] (!%p138_p2)  ;;  %vm239_vm0 = vcmask (!%p138_p2), 523264  }
   0x6   : > { %141 = sbr.rel (%p138_p2) target bundleno = 279 (0x117), region = 32  ;;  %275 = vmatprep.mubr.bf16.mxu0 (!%p138_p2), %v437_v0  ;;  %399 = vset.pattern.permute.xlu0 (!%p138_p2), %v437_v0  ;;  %v412_v11 = vld [vmem:[%s488_s0] sm:$0x3f] (!%p138_p2)   ;;  %vm307_vm1 = vcmask (!%p138_p2), 556032   ;;  %vm310_vm2 = vcmask (!%p138_p2), 551936  }
   0x7   : > { %186 = vperm.xlu0 (!%p138_p2), %399, %v182_v1  }
   0xb   : > { %191 = vperm.xlu0 (!%p138_p2), %399, %v183_v2  }
   0xd   : > { %s493_s13 = smov (!%p161_p3, %s367_s13), 1 }
   0xe   : > { %s388_s18 = sshll.u32 %s493_s13, 6  ;;  %s389_s24 = sshll.u32 %s493_s13, 5 }
   0xf   : > { %s165_s21 = scalar_lea.vmem %s489_s1, %s388_s18  ;;  %s170_s27 = scalar_lea.vmem %s491_s3, %s389_s24 }
  0x10   : > { %v400_v3 = vld [vmem:[%s165_s21 + $0x4] ss:$8 sps:$4 sm:$0xff]   ;;  %v402_v4 = vld [vmem:[%s165_s21] ss:$8 sps:$4 sm:$0xff]   ;;  %v403_v5 = vld [vmem:[%s165_s21 + $0x14] ss:$8 sps:$4 sm:$0xff]  }
  0x11   : > { %243 = vmatprep.subr.bf16.mxu0 %v400_v3  ;;  %v405_v6 = vld [vmem:[%s165_s21 + $0x10] ss:$8 sps:$4 sm:$0xff]   ;;  %v406_v7 = vld [vmem:[%s165_s21 + $0x24] ss:$8 sps:$4 sm:$0xff]   ;;  %v408_v8 = vld [vmem:[%s165_s21 + $0x20] ss:$8 sps:$4 sm:$0xff]  }
  0x12   : > { %244 = vmatpush1.bf16.msra.mxu0 %v402_v4  ;;  %v409_v9 = vld [vmem:[%s165_s21 + $0x34] ss:$8 sps:$4 sm:$0xff]   ;;  %v411_v10 = vld [vmem:[%s165_s21 + $0x30] ss:$8 sps:$4 sm:$0xff]  }
  0x13   : > { %245 = vmatprep.subr.bf16.mxu0 %v403_v5 }
  0x16   : > { %246 = vmatpush1.bf16.msra.mxu0 %v405_v6 }
  0x17   : > { %247 = vmatprep.subr.bf16.mxu0 %v406_v7 }
  0x1a   : > { %248 = vmatpush1.bf16.msra.mxu0 %v408_v8 }
  0x1b   : > { %249 = vmatprep.subr.bf16.mxu0 %v409_v9 }
  0x1e   : > { %250 = vmatpush1.bf16.msra.mxu0 %v411_v10 }
  0x21   : > { %385 = vmatmul.mubr.msk.bf16.vlgmr.msra.gmra.mrb[0].mxu0 %vm239_vm0, %v412_v11 }
  0x86   : > { %v187_v12 = vpop.permute.xlu0 %186 }
  0x8a   : > { %v192_v16 = vpop.permute.xlu0 %191 }
  0xf4   : > { %v277_v13 = vpop.f32.mrb[0].mxu0 }
  0xf5   : > { %v278_v14 = vadd.f32 %v277_v13, %v187_v12  ;;  %v279_v15 = vpop.f32.mrb[1].mxu0 }
  0xf6   : > { %v280_v17 = vadd.f32 %v279_v15, %v187_v12  ;;  %v281_v18 = vpop.f32.mrb[2].mxu0 }
  0xf7   : > { %v286_v19 = vsub.f32 0.0, %v278_v14  ;;  %v282_v20 = vadd.f32 %v281_v18, %v192_v16  ;;  %v283_v21 = vpop.f32.mrb[3].mxu0 }
  0xf8   : > { %v287_v22 = vsub.f32 0.0, %v280_v17  ;;  %v284_v23 = vadd.f32 %v283_v21, %v192_v16 }
  0xf9   : > { %v290_v24 = vmul.f32 1.442695, %v286_v19  ;;  %v288_v25 = vsub.f32 0.0, %v282_v20 }
  0xfa   : > { %v292_v26 = vmul.f32 1.442695, %v287_v22  ;;  %v289_v27 = vsub.f32 0.0, %v284_v23 }
  0xfb   : > { %413 = vpow2.f32 %v290_v24  ;;  %v294_v28 = vmul.f32 1.442695, %v288_v25 }
  0xfc   : > { %415 = vpow2.f32 %v292_v26  ;;  %v296_v29 = vmul.f32 1.442695, %v289_v27 }
  0xfd   : > { %417 = vpow2.f32 %v294_v28 }
  0xfe   : > { %419 = vpow2.f32 %v296_v29 }
 0x105   : > { %v414_v30 = vpop.eup %413 }
 0x106   : > { %v416_v31 = vpop.eup %415  ;;  %v298_v32 = vadd.f32 1.0, %v414_v30 }
 0x107   : > { %v418_v33 = vpop.eup %417  ;;  %v299_v34 = vadd.f32 1.0, %v416_v31 }
 0x108   : > { %v420_v35 = vpop.eup %419  ;;  %421 = vrcp.f32 %v298_v32  ;;  %v300_v36 = vadd.f32 1.0, %v418_v33 }
 0x109   : > { %423 = vrcp.f32 %v299_v34  ;;  %v301_v37 = vadd.f32 1.0, %v420_v35 }
 0x10a   : > { %425 = vrcp.f32 %v300_v36 }
 0x10b   : > { %427 = vrcp.f32 %v301_v37 }
 0x112   : > { %v422_v38 = vpop.eup %421 }
 0x113   : > { %v424_v39 = vpop.eup %423  ;;  %306 = vst [vmem:[%s170_s27] sm:$0xff] %v422_v38 }
 0x114   : > { %v426_v40 = vpop.eup %425  ;;  %308 = vst.msk [vmem:[%s170_s27 + $0x8] sm:$0xff] %vm307_vm1, %v424_v39 }
 0x115   : > { %v428_v41 = vpop.eup %427  ;;  %309 = vst [vmem:[%s170_s27 + $0x10] sm:$0xf] %v426_v40 }
 0x116   : > { %311 = vst.msk [vmem:[%s170_s27 + $0x18] sm:$0xf] %vm310_vm2, %v428_v41 }
 0x117 PF: > { %s13_s12 = sadd.s32 1, %s435_s12  }
 0x118   : > { %p10_p4 = scmp.ge.s32.totalorder %s13_s12, 4  }
 0x11a   :  { %12 = sbr.rel (!%p10_p4) target bundleno = 1 (0x1), region = 62 }

</bundles_post_ra>
